<compile_context>
chip_gen: v7x
topology: tpu7x:2x2x1
jax: 0.10.0
libtpu: 0.0.40
codegen_flags: <defaults>
</compile_context>

<pallas_src>
import math

import jax
import jax.numpy as jnp
from jax import lax
from jax.experimental import pallas as pl
from jax.experimental.pallas import tpu as pltpu


# -----------------------------------------------------------------------------
# Kernel A: tag pooling + 2-layer GCN (runs once; all data is KB-scale).
# Emits x_gcn transposed: (D, Cp).
# -----------------------------------------------------------------------------
def _gcn_tag_kernel(tag_emb_ref, tag_mask_ref, adj_ref, w1_ref, w2_ref, xt_ref):
    tag_emb = tag_emb_ref[...].astype(jnp.float32)             # (Cp, T, D)
    tag_mask = tag_mask_ref[...]                               # (Cp, T)  f32
    num = jnp.sum(tag_emb * tag_mask[:, :, None], axis=1)      # (Cp, D)
    den = jnp.maximum(jnp.sum(tag_mask, axis=1, keepdims=True), 1.0)
    tag_pooled = num / den                                     # exact; off hot path

    adj = adj_ref[...]                                         # (Cp, Cp) f32
    x = jnp.dot(tag_pooled, w1_ref[...], preferred_element_type=jnp.float32)
    x = jnp.dot(adj, x, preferred_element_type=jnp.float32)
    x = jnp.where(x > 0, x, 0.2 * x)                           # LeakyReLU(0.2)
    x = jnp.dot(x, w2_ref[...], preferred_element_type=jnp.float32)
    x = jnp.dot(adj, x, preferred_element_type=jnp.float32)
    xt_ref[...] = x.T                                          # (D, Cp) f32


# -----------------------------------------------------------------------------
# Kernel B: streamed masked-mean pooling of token_feat + logits projection.
# grid = (B_tiles, S_tiles); S is the reduction axis ("arbitrary", last).
# -----------------------------------------------------------------------------
def _pool_logits_kernel(mask_ref, tok_ref, xg_ref, out_ref, acc_ref, den_ref):
    s = pl.program_id(1)

    @pl.when(s == 0)
    def _():
        acc_ref[...] = jnp.zeros_like(acc_ref)
        den_ref[...] = jnp.zeros_like(den_ref)

    tok = tok_ref[...].astype(jnp.float32)                     # (TB, TS, D), bf16 in HBM
    mask = mask_ref[...]                                       # (TB, TS)    f32
    acc_ref[...] += jnp.sum(tok * mask[:, :, None], axis=1)    # (TB, D) f32 accumulator
    den_ref[...] += jnp.sum(mask, axis=1, keepdims=True)       # (TB, 1) mask count

    @pl.when(s == pl.num_programs(1) - 1)
    def _():
        sentence_feat = acc_ref[...] / jnp.maximum(den_ref[...], 1.0)   # (TB, D)
        # logits = sentence_feat @ x_gcn^T; xg is already (D, Cp) -> plain MXU dot,
        # lane-dense (TB, Cp) output.
        out_ref[...] = jnp.dot(sentence_feat, xg_ref[...],
                               preferred_element_type=jnp.float32)


# -----------------------------------------------------------------------------
# Wrapper
# -----------------------------------------------------------------------------
def gcn_bert_forward(token_feat, attn_mask, emb_table, encoded_tag, tag_mask,
                     adj, w1, w2, *, tb=8, ts=128):
    """Plain-JAX glue (gather, padding) + two Pallas kernels."""
    B, S, D = token_feat.shape
    C = adj.shape[0]

    cp = ((C + 127) // 128) * 128                 # lane-dense class padding

    # bf16 stream for the HBM-heavy tensor; small resident tensors stay f32.
    token_feat = token_feat.astype(jnp.bfloat16)
    attn_mask = attn_mask.astype(jnp.float32)

    # Embedding lookup (bert.get_input_embeddings()(encoded_tag)) — gather glue.
    tag_emb = jnp.take(emb_table, encoded_tag, axis=0).astype(jnp.bfloat16)

    # Pad the class axis to cp; zero rows/cols stay zero through the GCN.
    tag_emb_p = jnp.pad(tag_emb, ((0, cp - C), (0, 0), (0, 0)))
    tag_mask_p = jnp.pad(tag_mask.astype(jnp.float32), ((0, cp - C), (0, 0)))
    adj_p = jnp.pad(adj.astype(jnp.float32), ((0, cp - C), (0, cp - C)))

    vmem = pl.BlockSpec(memory_space=pltpu.MemorySpace.VMEM)
    x_gcn_t = pl.pallas_call(
        _gcn_tag_kernel,
        out_shape=jax.ShapeDtypeStruct((D, cp), jnp.float32),
        in_specs=[vmem] * 5,
        out_specs=vmem,
    )(tag_emb_p, tag_mask_p, adj_p,
      w1.astype(jnp.float32), w2.astype(jnp.float32))

    # --- tile / pad B and S for the streaming kernel --------------------------
    tb = min(tb, B)                               # tb==B (<8) or multiple of 8
    ts = min(ts, S)                               # ts==S (<128) or multiple of 128
    bp = ((B + tb - 1) // tb) * tb
    sp = ((S + ts - 1) // ts) * ts
    token_feat = jnp.pad(token_feat, ((0, bp - B), (0, sp - S), (0, 0)))
    attn_mask = jnp.pad(attn_mask, ((0, bp - B), (0, sp - S)))

    grid = (bp // tb, sp // ts)
    logits = pl.pallas_call(
        _pool_logits_kernel,
        out_shape=jax.ShapeDtypeStruct((bp, cp), jnp.float32),
        grid=grid,
        in_specs=[
            pl.BlockSpec((tb, ts), lambda b, s: (b, s)),         # attn_mask tile
            pl.BlockSpec((tb, ts, D), lambda b, s: (b, s, 0)),   # token_feat (bf16 stream)
            pl.BlockSpec((D, cp), lambda b, s: (0, 0)),          # x_gcn^T resident
        ],
        out_specs=pl.BlockSpec((tb, cp), lambda b, s: (b, 0)),   # lane-dense logits
        scratch_shapes=[pltpu.VMEM((tb, D), jnp.float32),        # masked token sum
                        pltpu.VMEM((tb, 1), jnp.float32)],       # mask count
        compiler_params=pltpu.CompilerParams(
            dimension_semantics=("parallel", "arbitrary")),
    )(attn_mask, token_feat, x_gcn_t)

    return logits[:B, :C]


# -----------------------------------------------------------------------------
# Pure-JAX reference (bf16-rounded inputs, same div-by-zero guard).
# -----------------------------------------------------------------------------
def _reference(token_feat, attn_mask, emb_table, encoded_tag, tag_mask, adj, w1, w2):
    hp = lax.Precision.HIGHEST
    tf = token_feat.astype(jnp.bfloat16).astype(jnp.float32)
    sent = jnp.sum(tf * attn_mask[:, :, None], axis=1) / \
        jnp.maximum(jnp.sum(attn_mask, axis=1, keepdims=True), 1.0)
    tag_emb = jnp.take(emb_table, encoded_tag, axis=0)
    tag_emb = tag_emb.astype(jnp.bfloat16).astype(jnp.float32)
    tp = jnp.sum(tag_emb * tag_mask[:, :, None], axis=1) / \
        jnp.maximum(jnp.sum(tag_mask, axis=1, keepdims=True), 1.0)
    x = jnp.dot(tp, w1, precision=hp)
    x = jnp.dot(adj, x, precision=hp)
    x = jnp.where(x > 0, x, 0.2 * x)
    x = jnp.dot(x, w2, precision=hp)
    x = jnp.dot(adj, x, precision=hp)
    return jnp.dot(sent, x.T, precision=hp)


if __name__ == "__main__":
    # Small shapes consistent with the forward pass (orig hidden=768 -> D=128 here);
    # B=16, S=256 chosen so the (B-tile, S-tile) grid is actually exercised.
    B, S, D = 16, 256, 128    # batch, sequence length, hidden size
    C, T = 10, 4              # num_classes, tag-token length
    V = 64                    # toy vocab size for the embedding table

    key = jax.random.PRNGKey(0)
    k_tok, k_emb, k_tag, k_adj, k_w1, k_w2 = jax.random.split(key, 6)

    # Synthetic BERT output and attention mask (last 32 positions padded).
    token_feat = jax.random.normal(k_tok, (B, S, D), dtype=jnp.float32)
    attn_mask = jnp.concatenate(
        [jnp.ones((B, S - 32), jnp.float32), jnp.zeros((B, 32), jnp.float32)], axis=1)

    # Input-embedding table + tag token ids / mask.
    emb_table = jax.random.normal(k_emb, (V, D), dtype=jnp.float32)
    encoded_tag = jax.random.randint(k_tag, (C, T), 0, V).astype(jnp.int32)
    tag_mask = jnp.concatenate(
        [jnp.ones((C, T - 1), jnp.float32), jnp.zeros((C, 1), jnp.float32)], axis=1)

    # GraphConvolution weights: uniform(-stdv, stdv), stdv = 1/sqrt(out_features).
    stdv = 1.0 / math.sqrt(D)
    w1 = jax.random.uniform(k_w1, (D, D), jnp.float32, -stdv, stdv)
    w2 = jax.random.uniform(k_w2, (D, D), jnp.float32, -stdv, stdv)

    # Deterministic symmetrically-normalized adjacency (stand-in for gen_adj(gen_A(...))).
    a_raw = jax.random.uniform(k_adj, (C, C), jnp.float32) + jnp.eye(C, dtype=jnp.float32)
    a_sym = 0.5 * (a_raw + a_raw.T)
    d_inv_sqrt = 1.0 / jnp.sqrt(jnp.sum(a_sym, axis=1))
    adj = d_inv_sqrt[:, None] * a_sym * d_inv_sqrt[None, :]

    out = gcn_bert_forward(token_feat, attn_mask, emb_table, encoded_tag,
                           tag_mask, adj, w1, w2)
    out = jax.block_until_ready(out)

    ref = _reference(token_feat, attn_mask, emb_table, encoded_tag,
                     tag_mask, adj, w1, w2)
    assert out.shape == (B, C)
    err = jnp.max(jnp.abs(out - ref))
    assert jnp.allclose(out, ref, atol=1e-3, rtol=1e-2), f"mismatch, max abs err {err}"

    print("KERNEL_OK")
</pallas_src>

<mosaic_0001>
module attributes {stable_mosaic.version = 11 : i64} {
  func.func @_gcn_tag_kernel(%arg0: memref<128x4x128xbf16, #tpu.memory_space<vmem>>, %arg1: memref<128x4xf32, #tpu.memory_space<vmem>>, %arg2: memref<128x128xf32, #tpu.memory_space<vmem>>, %arg3: memref<128x128xf32, #tpu.memory_space<vmem>>, %arg4: memref<128x128xf32, #tpu.memory_space<vmem>>, %arg5: memref<128x128xf32, #tpu.memory_space<vmem>>) attributes {dimension_semantics = [], scalar_prefetch = 0 : i64, scratch_operands = 0 : i64, tpu.core_type = #tpu.core_type<tc>} {
    %c0 = arith.constant 0 : index
    %c0_0 = arith.constant 0 : index
    %c0_1 = arith.constant 0 : index
    %0 = vector.load %arg0[%c0, %c0_0, %c0_1] : memref<128x4x128xbf16, #tpu.memory_space<vmem>>, vector<128x4x128xbf16>
    %1 = arith.extf %0 : vector<128x4x128xbf16> to vector<128x4x128xf32>
    %c0_2 = arith.constant 0 : index
    %c0_3 = arith.constant 0 : index
    %2 = vector.load %arg1[%c0_2, %c0_3] : memref<128x4xf32, #tpu.memory_space<vmem>>, vector<128x4xf32>
    %3 = vector.shape_cast %2 : vector<128x4xf32> to vector<128x4x1xf32>
    %4 = vector.broadcast %3 : vector<128x4x1xf32> to vector<128x4x128xf32>
    %5 = arith.mulf %1, %4 : vector<128x4x128xf32>
    %cst = arith.constant dense<0.000000e+00> : vector<128x128xf32>
    %6 = vector.multi_reduction <add>, %5, %cst [1] : vector<128x4x128xf32> to vector<128x128xf32>
    %cst_4 = arith.constant dense<0.000000e+00> : vector<128xf32>
    %7 = vector.multi_reduction <add>, %2, %cst_4 [1] : vector<128x4xf32> to vector<128xf32>
    %8 = vector.shape_cast %7 : vector<128xf32> to vector<128x1xf32>
    %cst_5 = arith.constant 1.000000e+00 : f32
    %9 = vector.broadcast %cst_5 : f32 to vector<128x1xf32>
    %10 = arith.maximumf %8, %9 : vector<128x1xf32>
    %11 = vector.broadcast %10 : vector<128x1xf32> to vector<128x128xf32>
    %12 = arith.divf %6, %11 : vector<128x128xf32>
    %c0_6 = arith.constant 0 : index
    %c0_7 = arith.constant 0 : index
    %13 = vector.load %arg2[%c0_6, %c0_7] : memref<128x128xf32, #tpu.memory_space<vmem>>, vector<128x128xf32>
    %c0_8 = arith.constant 0 : index
    %c0_9 = arith.constant 0 : index
    %14 = vector.load %arg3[%c0_8, %c0_9] : memref<128x128xf32, #tpu.memory_space<vmem>>, vector<128x128xf32>
    %cst_10 = arith.constant dense<0.000000e+00> : vector<128x128xf32>
    %15 = tpu.matmul %12, %14, %cst_10 {dimension_numbers = #tpu.dot_dimension_numbers<[1], [0], [0], [1], [0, 0, 1, 1], [], []>} : vector<128x128xf32>, vector<128x128xf32>, vector<128x128xf32> -> vector<128x128xf32>
    %cst_11 = arith.constant dense<0.000000e+00> : vector<128x128xf32>
    %16 = tpu.matmul %13, %15, %cst_11 {dimension_numbers = #tpu.dot_dimension_numbers<[1], [0], [0], [1], [0, 0, 1, 1], [], []>} : vector<128x128xf32>, vector<128x128xf32>, vector<128x128xf32> -> vector<128x128xf32>
    %cst_12 = arith.constant 0.000000e+00 : f32
    %17 = vector.broadcast %cst_12 : f32 to vector<128x128xf32>
    %18 = arith.cmpf ogt, %16, %17 : vector<128x128xf32>
    %cst_13 = arith.constant 2.000000e-01 : f32
    %19 = vector.broadcast %cst_13 : f32 to vector<128x128xf32>
    %20 = arith.mulf %19, %16 : vector<128x128xf32>
    %21 = arith.select %18, %16, %20 : vector<128x128xi1>, vector<128x128xf32>
    %c0_14 = arith.constant 0 : index
    %c0_15 = arith.constant 0 : index
    %22 = vector.load %arg4[%c0_14, %c0_15] : memref<128x128xf32, #tpu.memory_space<vmem>>, vector<128x128xf32>
    %cst_16 = arith.constant dense<0.000000e+00> : vector<128x128xf32>
    %23 = tpu.matmul %21, %22, %cst_16 {dimension_numbers = #tpu.dot_dimension_numbers<[1], [0], [0], [1], [0, 0, 1, 1], [], []>} : vector<128x128xf32>, vector<128x128xf32>, vector<128x128xf32> -> vector<128x128xf32>
    %cst_17 = arith.constant dense<0.000000e+00> : vector<128x128xf32>
    %24 = tpu.matmul %13, %23, %cst_17 {dimension_numbers = #tpu.dot_dimension_numbers<[1], [0], [0], [1], [0, 0, 1, 1], [], []>} : vector<128x128xf32>, vector<128x128xf32>, vector<128x128xf32> -> vector<128x128xf32>
    %25 = tpu.transpose %24, [1, 0] : vector<128x128xf32> -> vector<128x128xf32>
    %c0_18 = arith.constant 0 : index
    %c0_19 = arith.constant 0 : index
    %26 = vector.load %arg5[%c0_18, %c0_19] : memref<128x128xf32, #tpu.memory_space<vmem>>, vector<128x128xf32>
    tpu.vector_store %arg5[%c0_18, %c0_19], %25 {strides = array<i32>} : memref<128x128xf32, #tpu.memory_space<vmem>>, vector<128x128xf32>,
    return
  }
}

</mosaic_0001>

<bundles_post_ra>
// kernel: tpu_custom_call.1
= control target key start
LH: loop header
LB: loop body
LE: loop exit
PB: predicated region body
PF: predicated region fallthrough
CT: control target
= control target key end

     0   :  { %10 = vsyncpa [#allocation3], 0  ;;  %s7193_s0 = inlined_call_operand.hbm [shape: bf16[128,4,128], index: 0, kind: input, shape index: {}]   ;;  %s7194_s1 = inlined_call_operand.vmem [shape: f32[128,4], index: 1, kind: input, shape index: {}]   ;;  %s7195_s2 = inlined_call_operand.vmem [shape: f32[128,128], index: 2, kind: input, shape index: {}]   ;;  %s7196_s3 = inlined_call_operand.hbm [shape: f32[128,128], index: 3, kind: input, shape index: {}]   ;;  %s7197_s4 = inlined_call_operand.hbm [shape: f32[128,128], index: 4, kind: input, shape index: {}]   ;;  %s7198_s5 = inlined_call_operand.hbm [shape: f32[128,128], index: 5, kind: output, shape index: {}]  }
   0x1   :  { %11 = vsyncpa [#allocation6], 0 }
   0x2   :  { %12 = vsyncpa [#allocation4], 0  ;;  %s4798_s18 = smov [#allocation5]   ;;  %s4704_s22 = scalar_lea.hbm %s7196_s3, 2048 }
   0x3   :  { %s34_s19 = sshll.u32 %s4798_s18, 4  ;;  %p4705_p0 = scmp.ne.s32.totalorder %s7196_s3, %s4704_s22  ;;  %s35_s19 = int_to_ptr.vmem [resolvable:$true] %s34_s19 }
   0x4   :  { %p4708_p1 = scmp.lt.u32.totalorder %s4704_s22, %s7196_s3 }
   0x6   :  { %p4710_p2 = pnand %p4708_p1, %p4705_p0 }
   0x8   :  { %4713 = shalt.err (!%p4710_p2)
}
   0x9   :  { %s4714_s27 = scalar_lea.vmem %s35_s19, 2048  ;;  %p4719_p4 = scmp.lt.s32.totalorder %s35_s19, %s35_s19 }
   0xa   :  { %p4715_p3 = scmp.ne.s32.totalorder %s35_s19, %s4714_s27  ;;  %p4720_p5 = scmp.lt.s32.totalorder %s4714_s27, %s4714_s27 }
   0xc   :  { %p4721_p6 = por %p4720_p5, %p4719_p4 }
   0xe   :  { %p4722_p7 = pnand %p4721_p6, %p4715_p3 }
  0x10   :  { %4725 = shalt.err (!%p4722_p7)
}
  0x11   :  { %s4799_s28 = smov 128   ;;  %s4800_s29 = smov 8  }
  0x12   :  { %40 = dma.hbm_to_vmem [thread:$0]  %s7196_s3, 2048, %s35_s19, [#allocation6], %s4799_s28, %s4799_s28, %s4800_s29  }
  0x13   :  { %s4801_s7 = smov [#allocation2]   ;;  %s4726_s11 = scalar_lea.hbm %s7193_s0, 4096 }
  0x14   :  { %s18_s8 = sshll.u32 %s4801_s7, 4  ;;  %p4727_p8 = scmp.ne.s32.totalorder %s7193_s0, %s4726_s11  ;;  %s19_s8 = int_to_ptr.vmem [resolvable:$true] %s18_s8 }
  0x15   :  { %p4730_p9 = scmp.lt.u32.totalorder %s4726_s11, %s7193_s0 }
  0x17   :  { %p4732_p10 = pnand %p4730_p9, %p4727_p8 }
  0x19   :  { %4735 = shalt.err (!%p4732_p10)
}
  0x1a   :  { %s4736_s16 = scalar_lea.vmem %s19_s8, 4096  ;;  %p4741_p12 = scmp.lt.s32.totalorder %s19_s8, %s19_s8 }
  0x1b   :  { %p4737_p11 = scmp.ne.s32.totalorder %s19_s8, %s4736_s16  ;;  %p4742_p13 = scmp.lt.s32.totalorder %s4736_s16, %s4736_s16 }
  0x1d   :  { %p4743_p0 = por %p4742_p13, %p4741_p12 }
  0x1f   :  { %p4744_p1 = pnand %p4743_p0, %p4737_p11 }
  0x21   :  { %4747 = shalt.err (!%p4744_p1)
}
  0x22   :  { %s4802_s3 = smov 32   ;;  %s4803_s17 = smov 2  }
  0x23   :  { %24 = dma.hbm_to_vmem [thread:$0]  %s7193_s0, 4096, %s19_s8, [#allocation3], %s4802_s3, %s4802_s3, %s4803_s17  }
  0x24   :  { %s4804_s20 = smov [#allocation7]   ;;  %s4748_s24 = scalar_lea.hbm %s7197_s4, 2048 }
  0x25   :  { %s46_s21 = sshll.u32 %s4804_s20, 4  ;;  %p4749_p2 = scmp.ne.s32.totalorder %s7197_s4, %s4748_s24  ;;  %s47_s21 = int_to_ptr.vmem [resolvable:$true] %s46_s21 }
  0x26   :  { %p4752_p3 = scmp.lt.u32.totalorder %s4748_s24, %s7197_s4 }
  0x28   :  { %p4754_p4 = pnand %p4752_p3, %p4749_p2 }
  0x2a   :  { %4757 = shalt.err (!%p4754_p4)
}
  0x2b   :  { %s4758_s6 = scalar_lea.vmem %s47_s21, 2048  ;;  %p4763_p6 = scmp.lt.s32.totalorder %s47_s21, %s47_s21 }
  0x2c   :  { %p4759_p5 = scmp.ne.s32.totalorder %s47_s21, %s4758_s6  ;;  %p4764_p7 = scmp.lt.s32.totalorder %s4758_s6, %s4758_s6 }
  0x2e   :  { %p4765_p8 = por %p4764_p7, %p4763_p6 }
  0x30   :  { %p4766_p9 = pnand %p4765_p8, %p4759_p5 }
  0x32   :  { %4769 = shalt.err (!%p4766_p9)
}
  0x33   :  { %52 = dma.hbm_to_vmem [thread:$0]  %s7197_s4, 2048, %s47_s21, [#allocation6], %s4799_s28, %s4799_s28, %s4800_s29  }
  0x34   :  { %4792 = dma.done.wait [#allocation3], 4096  }
  0x35   :  { %4793 = vsyncadd [#allocation3], 4294963200 }
  0x36   :  { %4794 = dma.done.wait [#allocation6], 4096  }
  0x37   :  { %4795 = vsyncadd [#allocation6], 4294963200  ;;  %vm2255_vm0 = vcmask 31744   ;;  %v4881_v0 = vld [vmem:[%s7194_s1 + $0x10] sm:$0xff]  ;;  %v4886_v1 = vld [vmem:[%s7194_s1] sm:$0xff]  ;;  %v334_v16 = vlaneseq  ;;  %vm1358_vm1 = vcmask 1043456  }
  0x38   :  { %v4891_v2 = vld [vmem:[%s7194_s1 + $0x18] sm:$0xff]  ;;  %v2262_v3 = vsel %vm2255_vm0, %v4881_v0, 0.0  ;;  %v2256_v4 = vsel %vm2255_vm0, %v4886_v1, 0.0  ;;  %v4900_v5 = vld [vmem:[%s7194_s1 + $0x8] sm:$0xff]  ;;  %v4914_v9 = vld [vmem:[%s7194_s1 + $0x20] sm:$0xff]  ;;  %vm2993_vm2 = vcmask 1041409  }
  0x39   :  { %2263 = vadd.xlane.f32.xlu1 %v2262_v3  ;;  %2257 = vadd.xlane.f32.xlu0 %v2256_v4  ;;  %v2265_v6 = vsel %vm2255_vm0, %v4891_v2, 0.0  ;;  %v2259_v7 = vsel %vm2255_vm0, %v4900_v5, 0.0  ;;  %v4909_v8 = vld [vmem:[%s7194_s1 + $0x28] sm:$0xff]  ;;  %v2268_v11 = vsel %vm2255_vm0, %v4914_v9, 0.0  ;;  %v4923_v12 = vld [vmem:[%s7194_s1 + $0x38] sm:$0xff]  ;;  %v4928_v13 = vld [vmem:[%s7194_s1 + $0x30] sm:$0xff] }
  0x3a   :  { %v2271_v10 = vsel %vm2255_vm0, %v4909_v8, 0.0  ;;  %7238 = vst [vmem:[#allocation12_spill] sm:$0xff] %v4923_v12  ;;  %v2277_v14 = vsel %vm2255_vm0, %v4923_v12, 0.0  ;;  %v2274_v15 = vsel %vm2255_vm0, %v4928_v13, 0.0  ;;  %v335_v17 = vshrl.u32 %v334_v16, 7  ;;  %v326_v32 = vld [vmem:[%s7194_s1 + $0x40] sm:$0xff] }
  0x3b   :  { %v2280_v33 = vsel %vm2255_vm0, %v326_v32, 0.0  ;;  %v327_v34 = vld [vmem:[%s7194_s1 + $0x48] sm:$0xff]  ;;  %v2848_v50 = vld [vmem:[#allocation5] sm:$0xff]  ;;  %v2850_v54 = vld [vmem:[#allocation5 + $0x10] sm:$0xff]  ;;  %vm2996_vm3 = vcmask 1042434   ;;  %vm2999_vm4 = vcmask 1043459  }
  0x3c   :  { %v4934_v18 = vsub.s32 2, %v335_v17  ;;  %v4938_v20 = vsub.s32 1, %v335_v17  ;;  %v4942_v22 = vsub.s32 0, %v335_v17  ;;  %v4946_v24 = vsub.s32 3, %v335_v17  ;;  %v2849_v52 = vld [vmem:[#allocation5 + $0x8] sm:$0xff]  ;;  %v2851_v56 = vld [vmem:[#allocation5 + $0x18] sm:$0xff] }
  0x3d   :  { %2266 = vadd.xlane.f32.xlu1 %v2265_v6  ;;  %2260 = vadd.xlane.f32.xlu0 %v2259_v7  ;;  %v4954_v28 = vsub.s32 4, %v335_v17  ;;  %v4969_v35 = vsub.s32 5, %v335_v17  ;;  %v2283_v36 = vsel %vm2255_vm0, %v327_v34, 0.0  ;;  %v4976_v39 = vsub.s32 6, %v335_v17  ;;  %v2852_v58 = vld [vmem:[#allocation5 + $0x20] sm:$0xff]  ;;  %v2853_v60 = vld [vmem:[#allocation5 + $0x28] sm:$0xff] }
  0x3e   :  { %7239 = vst [vmem:[#allocation13_spill] sm:$0xff] %v4934_v18  ;;  %v351_v19 = vrot.slane %v4886_v1, %v4934_v18  ;;  %v400_v21 = vrot.slane %v4900_v5, %v4938_v20  ;;  %7240 = vst [vmem:[#allocation14_spill] sm:$0xff] %v4942_v22  ;;  %v344_v23 = vrot.slane %v4886_v1, %v4938_v20  ;;  %v4986_v44 = vsub.s32 7, %v335_v17  ;;  %v2854_v63 = vld [vmem:[#allocation5 + $0x30] sm:$0xff]  ;;  %v2857_v6 = vld [vmem:[#allocation5 + $0x48] sm:$0xff] }
  0x3f   :  { %7241 = vst [vmem:[#allocation15_spill] sm:$0xff] %v4946_v24  ;;  %v337_v25 = vrot.slane %v4886_v1, %v4942_v22  ;;  %v358_v26 = vrot.slane %v4886_v1, %v4946_v24  ;;  %v407_v27 = vrot.slane %v4900_v5, %v4934_v18  ;;  %7242 = vst [vmem:[#allocation16_spill] sm:$0xff] %v4954_v28  ;;  %v2860_v16 = vld [vmem:[#allocation5 + $0x60] sm:$0xff]  ;;  %v2861_v17 = vld [vmem:[#allocation5 + $0x68] sm:$0xff]  ;;  %vm3002_vm5 = vcmask 1044484  }
  0x40   :  { %v365_v29 = vrot.slane %v4886_v1, %v4954_v28  ;;  %v393_v30 = vrot.slane %v4900_v5, %v4942_v22  ;;  %v414_v31 = vrot.slane %v4900_v5, %v4946_v24  ;;  %v372_v37 = vrot.slane %v4886_v1, %v4969_v35  ;;  %7243 = vst [vmem:[#allocation17_spill] sm:$0xff] %v4986_v44 }
  0x41   :  { %2272 = vadd.xlane.f32.xlu1 %v2271_v10  ;;  %2269 = vadd.xlane.f32.xlu0 %v2268_v11  ;;  %v456_v38 = vrot.slane %v4881_v0, %v4938_v20  ;;  %v379_v40 = vrot.slane %v4886_v1, %v4976_v39  ;;  %v428_v41 = vrot.slane %v4900_v5, %v4969_v35  ;;  %v2858_v10 = vld [vmem:[#allocation5 + $0x50] sm:$0xff]  ;;  %v2859_v11 = vld [vmem:[#allocation5 + $0x58] sm:$0xff]  ;;  %vm3005_vm6 = vcmask 1045509  }
  0x42   :  { %v421_v42 = vrot.slane %v4900_v5, %v4954_v28  ;;  %v463_v43 = vrot.slane %v4881_v0, %v4934_v18  ;;  %v512_v45 = vrot.slane %v4891_v2, %v4938_v20  ;;  %v386_v46 = vrot.slane %v4886_v1, %v4986_v44  ;;  %v2855_v1 = vld [vmem:[#allocation5 + $0x38] sm:$0xff] }
  0x43   :  { %v435_v47 = vrot.slane %v4900_v5, %v4976_v39  ;;  %v449_v48 = vrot.slane %v4881_v0, %v4942_v22  ;;  %v470_v49 = vrot.slane %v4881_v0, %v4946_v24  ;;  %v519_v51 = vrot.slane %v4891_v2, %v4934_v18 }
  0x44   :  { %v4301_v53 = vpack.c.bf16 %v2849_v52, %v2848_v50  ;;  %v442_v55 = vrot.slane %v4900_v5, %v4986_v44  ;;  %v4305_v57 = vpack.c.bf16 %v2851_v56, %v2850_v54  ;;  %v477_v59 = vrot.slane %v4881_v0, %v4954_v28  ;;  %v2856_v5 = vld [vmem:[#allocation5 + $0x40] sm:$0xff] }
  0x45   :  { %2278 = vadd.xlane.f32.xlu1 %v2277_v14  ;;  %2275 = vadd.xlane.f32.xlu0 %v2274_v15  ;;  %v4309_v61 = vpack.c.bf16 %v2853_v60, %v2852_v58  ;;  %v505_v62 = vrot.slane %v4891_v2, %v4942_v22  ;;  %v526_v3 = vrot.slane %v4891_v2, %v4946_v24  ;;  %v328_v15 = vld [vmem:[%s7194_s1 + $0x50] sm:$0xff]  ;;  %v63_v56 = vld [vmem:[#allocation2 + $0x2] sm:$0x3]  ;;  %v64_v58 = vld [vmem:[#allocation2 + $0x4] sm:$0x3]  ;;  %vm3008_vm7 = vcmask 1046534  }
  0x46   :  { %4302 = vmatprep.subr.bf16.mxu0 %v4301_v53  ;;  %v4313_v4 = vpack.c.bf16 %v2855_v1, %v2854_v63  ;;  %v4317_v7 = vpack.c.bf16 %v2857_v6, %v2856_v5  ;;  %v4321_v14 = vpack.c.bf16 %v2859_v11, %v2858_v10  ;;  %v484_v32 = vrot.slane %v4881_v0, %v4969_v35  ;;  %v5066_v1 = vld [vmem:[#allocation2] sm:$0x3]  ;;  %v5072_v5 = vld [vmem:[#allocation2 + $0x8] sm:$0x3]  ;;  %v5076_v6 = vld [vmem:[#allocation2 + $0x16] sm:$0x3] }
  0x47   :  { %4304 = vmatpush3.bf16.msra.mxu0 %v4301_v53  ;;  %v568_v34 = vrot.slane %v4914_v9, %v4938_v20  ;;  %v547_v50 = vrot.slane %v4891_v2, %v4976_v39  ;;  %v582_v54 = vrot.slane %v4914_v9, %v4946_v24  ;;  %v191_v60 = vunpack.c.l.bf16 %v63_v56  ;;  %v331_v56 = vld [vmem:[%s7194_s1 + $0x68] sm:$0xff] }
  0x48   :  { %4306 = vmatprep.subr.bf16.mxu0 %v4305_v57  ;;  %v192_v63 = vunpack.c.l.bf16 %v64_v58  ;;  %vm3011_vm8 = vcmask 1047559  }
  0x4b   :  { %4308 = vmatpush3.bf16.msra.mxu0 %v4305_v57  ;;  %v554_v57 = vrot.slane %v4891_v2, %v4986_v44 }
  0x4c   :  { %4310 = vmatprep.subr.bf16.mxu0 %v4309_v61 }
  0x4f   :  { %4312 = vmatpush3.bf16.msra.mxu0 %v4309_v61  ;;  %v5062_v61 = vld [vmem:[#allocation2 + $0x12] sm:$0x3] }
  0x50   :  { %4314 = vmatprep.subr.bf16.mxu0 %v4313_v4 }
  0x53   :  { %4316 = vmatpush3.bf16.msra.mxu0 %v4313_v4  ;;  %v589_v4 = vrot.slane %v4914_v9, %v4954_v28 }
  0x54   :  { %4318 = vmatprep.subr.bf16.mxu0 %v4317_v7 }
  0x56   :  { %353 = vbcast.lane.b32.xlu1 %v351_v19, 256  ;;  %v2862_v19 = vld [vmem:[#allocation5 + $0x70] sm:$0xff] }
  0x57   :  { %4320 = vmatpush3.bf16.msra.mxu0 %v4317_v7  ;;  %v199_v7 = vunpack.c.l.bf16 %v5062_v61 }
  0x58   :  { %4322 = vmatprep.subr.bf16.mxu0 %v4321_v14 }
  0x5a   :  { %402 = vbcast.lane.b32.xlu1 %v400_v21, 256  ;;  %v2863_v21 = vld [vmem:[#allocation5 + $0x78] sm:$0xff] }
  0x5b   :  { %346 = vbcast.lane.b32.xlu0 %v344_v23, 256  ;;  %4324 = vmatpush3.bf16.msra.mxu0 %v4321_v14  ;;  %v2286_v23 = vsel %vm2255_vm0, %v328_v15, 0.0  ;;  %v5082_v14 = vld [vmem:[#allocation2 + $0xa] sm:$0x3]  ;;  %v5084_v15 = vld [vmem:[#allocation2 + $0xc] sm:$0x3] }
  0x5e   :  { %339 = vbcast.lane.b32.xlu1 %v337_v25, 256  ;;  %v4325_v25 = vpack.c.bf16 %v2861_v17, %v2860_v16  ;;  %v5086_v16 = vld [vmem:[#allocation2 + $0x1a] sm:$0x3] }
  0x5f   :  { %360 = vbcast.lane.b32.xlu0 %v358_v26, 256  ;;  %v4329_v26 = vpack.c.bf16 %v2863_v21, %v2862_v19  ;;  %v190_v21 = vunpack.c.l.bf16 %v5066_v1 }
  0x60   :  { %4326 = vmatprep.subr.bf16.mxu0 %v4325_v25 }
  0x61   :  { %4328 = vmatpush3.bf16.msra.mxu0 %v4325_v25 }
  0x62   :  { %409 = vbcast.lane.b32.xlu1 %v407_v27, 256  ;;  %4330 = vmatprep.subr.bf16.mxu0 %v4329_v26 }
  0x65   :  { %4332 = vmatpush3.bf16.msra.mxu0 %v4329_v26  ;;  %v5094_v26 = vld [vmem:[#allocation2 + $0xe] sm:$0x3] }
  0x66   :  { %367 = vbcast.lane.b32.xlu1 %v365_v29, 256  ;;  %v329_v29 = vld [vmem:[%s7194_s1 + $0x58] sm:$0xff] }
  0x6a   :  { %395 = vbcast.lane.b32.xlu1 %v393_v30, 256  ;;  %v2289_v30 = vsel %vm2255_vm0, %v329_v29, 0.0  ;;  %v5096_v29 = vld [vmem:[#allocation2 + $0x18] sm:$0x3] }
  0x6e   :  { %416 = vbcast.lane.b32.xlu1 %v414_v31, 256 }
  0x7e   :  { %2281 = vadd.xlane.f32.xlu0 %v2280_v33 }
  0x92   :  { %2284 = vadd.xlane.f32.xlu1 %v2283_v36  ;;  %v491_v36 = vrot.slane %v4881_v0, %v4976_v39 }
  0x94   :  { %374 = vbcast.lane.b32.xlu0 %v372_v37, 256 }
  0x98   :  { %458 = vbcast.lane.b32.xlu0 %v456_v38, 256 }
  0x9c   :  { %381 = vbcast.lane.b32.xlu0 %v379_v40, 256  ;;  %v540_v40 = vrot.slane %v4891_v2, %v4969_v35 }
  0xa0   :  { %430 = vbcast.lane.b32.xlu0 %v428_v41, 256 }
  0xa3   :  { %423 = vbcast.lane.b32.xlu1 %v421_v42, 256 }
  0xa4   :  { %465 = vbcast.lane.b32.xlu0 %v463_v43, 256  ;;  %v575_v43 = vrot.slane %v4914_v9, %v4934_v18 }
  0xa7   :  { %514 = vbcast.lane.b32.xlu1 %v512_v45, 256  ;;  %v533_v45 = vrot.slane %v4891_v2, %v4954_v28  ;;  %v5074_v2 = vld [vmem:[#allocation2 + $0x10] sm:$0x3] }
  0xa8   :  { %388 = vbcast.lane.b32.xlu0 %v386_v46, 256  ;;  %v624_v46 = vrot.slane %v4909_v8, %v4938_v20 }
  0xab   :  { %437 = vbcast.lane.b32.xlu1 %v435_v47, 256 }
  0xac   :  { %451 = vbcast.lane.b32.xlu0 %v449_v48, 256  ;;  %v498_v48 = vrot.slane %v4881_v0, %v4986_v44  ;;  %v631_v0 = vrot.slane %v4909_v8, %v4934_v18  ;;  %v7261_v44 = vunpack.c.l.bf16 %v5096_v29 }
  0xaf   :  { %472 = vbcast.lane.b32.xlu1 %v470_v49, 256 }
  0xb0   :  { %521 = vbcast.lane.b32.xlu0 %v519_v51, 256  ;;  %v561_v51 = vrot.slane %v4914_v9, %v4942_v22 }
  0xb4   :  { %444 = vbcast.lane.b32.xlu0 %v442_v55, 256 }
  0xb8   :  { %479 = vbcast.lane.b32.xlu0 %v477_v59, 256 }
  0xbc   :  { %507 = vbcast.lane.b32.xlu0 %v505_v62, 256  ;;  %v5064_v62 = vld [vmem:[#allocation2 + $0x6] sm:$0x3] }
  0xbd   :  { %v193_v11 = vunpack.c.l.bf16 %v5064_v62 }
  0xc0   :  { %528 = vbcast.lane.b32.xlu0 %v526_v3, 256  ;;  %v5068_v3 = vld [vmem:[#allocation2 + $0x14] sm:$0x3] }
  0xc6   :  { %v5012_v27 = vpop.xlane.xlu1 %2263  ;;  %v2258_v37 = vpop.xlane.xlu0 %2257 }
  0xc7   :  { %v5088_v17 = vmax.f32 %v2258_v37, 1.0  ;;  %v330_v37 = vld [vmem:[%s7194_s1 + $0x60] sm:$0xff] }
  0xc9   :  { %4437 = vrcp.f32 %v5088_v17 }
  0xca   :  { %v5018_v31 = vpop.xlane.xlu1 %2266  ;;  %v5032_v41 = vpop.xlane.xlu0 %2260 }
  0xce   :  { %v5022_v33 = vpop.xlane.xlu1 %2272  ;;  %v5040_v47 = vpop.xlane.xlu0 %2269 }
  0xcf   :  { %7244 = vst [vmem:[#allocation18_spill] sm:$0xff] %v5022_v33 }
  0xd2   :  { %v5028_v38 = vpop.xlane.xlu1 %2278  ;;  %v5050_v52 = vpop.xlane.xlu0 %2275 }
  0xd3   :  { %2287 = vadd.xlane.f32.xlu1 %v2286_v23  ;;  %7245 = vst [vmem:[#allocation19_spill] sm:$0xff] %v5028_v38  ;;  %7246 = vst [vmem:[#allocation20_spill] sm:$0xff] %v5050_v52  ;;  %v200_v23 = vunpack.c.l.bf16 %v5068_v3  ;;  %v7251_v3 = vunpack.c.l.bf16 %v5072_v5  ;;  %v7254_v5 = vunpack.c.l.bf16 %v5084_v15 }
  0xd6   :  { %v354_v42 = vpop.permute.xlu1 %353  ;;  %v347_v55 = vpop.permute.xlu0 %346 }
  0xd7   :  { %v1231_v19 = vmul.f32 %v347_v55, %v191_v60  ;;  %v5128_v60 = vsel %vm2255_vm0, %v330_v37, 0.0  ;;  %v5182_v37 = vpop.eup %4437 }
  0xd9   :  { %v1366_v58 = vsel %vm1358_vm1, %v1231_v19, 0.0  ;;  %v5139_v19 = vsel %vm2255_vm0, %v331_v56, 0.0 }
  0xda   :  { %v5044_v49 = vpop.permute.xlu1 %402  ;;  %v5079_v10 = vpop.permute.xlu0 %360 }
  0xde   :  { %v5052_v53 = vpop.permute.xlu1 %339 }
  0xdf   :  { %2290 = vadd.xlane.f32.xlu0 %v2289_v30  ;;  %v1232_v30 = vmul.f32 %v354_v42, %v192_v63  ;;  %v638_v42 = vrot.slane %v4909_v8, %v4946_v24  ;;  %v5132_v63 = vmax.f32 %v5032_v41, 1.0 }
  0xe1   :  { %v1373_v1 = vsel %vm1358_vm1, %v1232_v30, 0.0  ;;  %v2338_v30 = vrot.slane %v5088_v17, 3  ;;  %v2343_v41 = vrot.slane %v5132_v63, 1  ;;  %v2346_v61 = vrot.slane %v5132_v63, 4 }
  0xe2   :  { %v5060_v59 = vpop.permute.xlu1 %409  ;;  %v1374_v55 = vrot.slane %v1373_v1, 4 }
  0xe3   :  { %v1240_v62 = vmul.f32 %v5060_v59, %v200_v23 }
  0xe4   :  { %486 = vbcast.lane.b32.xlu1 %v484_v32, 256  ;;  %v1230_v32 = vmul.f32 %v5052_v53, %v190_v21  ;;  %v1375_v56 = vadd.f32 %v1374_v55, %v1373_v1  ;;  %v1233_v53 = vmul.f32 %v5079_v10, %v193_v11  ;;  %v2345_v21 = vrot.slane %v5132_v63, 3 }
  0xe5   :  { %v2342_v10 = vrot.slane %v5088_v17, 7  ;;  %v7249_v55 = vunpack.c.l.bf16 %v5074_v2  ;;  %v7250_v1 = vunpack.c.l.bf16 %v5076_v6  ;;  %v7253_v2 = vunpack.c.l.bf16 %v5082_v14 }
  0xe6   :  { %v5092_v25 = vpop.permute.xlu1 %367 }
  0xe7   :  { %v1234_v59 = vmul.f32 %v5092_v25, %v7251_v3 }
  0xe8   :  { %570 = vbcast.lane.b32.xlu1 %v568_v34, 256 }
  0xec   :  { %493 = vbcast.lane.b32.xlu1 %v491_v36, 256  ;;  %v617_v36 = vrot.slane %v4909_v8, %v4942_v22 }
  0xf0   :  { %542 = vbcast.lane.b32.xlu1 %v540_v40, 256  ;;  %v5105_v40 = vld [vmem:[#allocation2 + $0x1c] sm:$0x3] }
  0xf4   :  { %577 = vbcast.lane.b32.xlu1 %v575_v43, 256  ;;  %v2344_v43 = vrot.slane %v5132_v63, 2 }
  0xf5   :  { %535 = vbcast.lane.b32.xlu0 %v533_v45, 256  ;;  %v5151_v45 = vmax.f32 %v5018_v31, 1.0  ;;  %v1239_v31 = vmul.f32 %v5044_v49, %v199_v7  ;;  %v1359_v7 = vsel %vm1358_vm1, %v1230_v32, 0.0  ;;  %v1376_v32 = vrot.slane %v1375_v56, 2 }
  0xf8   :  { %626 = vbcast.lane.b32.xlu1 %v624_v46, 256 }
  0xf9   :  { %500 = vbcast.lane.b32.xlu0 %v498_v48, 256  ;;  %v5112_v48 = vld [vmem:[#allocation2 + $0x1e] sm:$0x3] }
  0xfc   :  { %549 = vbcast.lane.b32.xlu1 %v547_v50, 256  ;;  %v5115_v50 = vmax.f32 %v5012_v27, 1.0  ;;  %v1367_v27 = vrot.slane %v1366_v58, 4 }
  0xfd   :  { %563 = vbcast.lane.b32.xlu0 %v561_v51, 256 }
  0xfe   :  { %4439 = vrcp.f32 %v5115_v50  ;;  %v1368_v46 = vadd.f32 %v1367_v27, %v1366_v58  ;;  %v2347_v58 = vrot.slane %v5132_v63, 5 }
 0x100   :  { %584 = vbcast.lane.b32.xlu1 %v582_v54, 256  ;;  %v2339_v54 = vrot.slane %v5088_v17, 4  ;;  %v1369_v11 = vrot.slane %v1368_v46, 2 }
 0x101   :  { %633 = vbcast.lane.b32.xlu0 %v631_v0, 256  ;;  %v396_v0 = vpop.permute.xlu1 %395 }
 0x102   :  { %v1238_v27 = vmul.f32 %v396_v0, %v7249_v55  ;;  %v1370_v3 = vadd.f32 %v1369_v11, %v1368_v46  ;;  %v1387_v0 = vsel %vm1358_vm1, %v1234_v59, 0.0  ;;  %v7255_v46 = vunpack.c.l.bf16 %v5086_v16 }
 0x105   :  { %556 = vbcast.lane.b32.xlu0 %v554_v57, 256  ;;  %v2337_v57 = vrot.slane %v5088_v17, 2 }
 0x107   :  { %4441 = vrcp.f32 %v2337_v57  ;;  %v417_v57 = vpop.permute.xlu1 %416 }
 0x108   :  { %v5189_v23 = vpop.eup %4439 }
 0x109   :  { %591 = vbcast.lane.b32.xlu0 %v589_v4, 256  ;;  %v2336_v4 = vrot.slane %v5088_v17, 1  ;;  %7252 = vst [vmem:[#allocation23_spill] sm:$0xff] %v5189_v23  ;;  %v1388_v23 = vrot.slane %v1387_v0, 4 }
 0x10b   :  { %v5117_v51 = vpop.xlane.xlu0 %2281  ;;  %4443 = vrcp.f32 %v2336_v4  ;;  %v1389_v22 = vadd.f32 %v1388_v23, %v1387_v0 }
 0x10c   :  { %7247 = vst [vmem:[#allocation21_spill] sm:$0xff] %v5117_v51  ;;  %4445 = vrcp.f32 %v2338_v30 }
 0x10d   :  { %619 = vbcast.lane.b32.xlu0 %v617_v36, 256  ;;  %4447 = vrcp.f32 %v2339_v54  ;;  %v1422_v54 = vsel %vm1358_vm1, %v1239_v31, 0.0  ;;  %v1360_v31 = vrot.slane %v1359_v7, 4 }
 0x10e   :  { %4449 = vrcp.f32 %v2343_v41  ;;  %v1241_v41 = vmul.f32 %v417_v57, %v7250_v1  ;;  %v1423_v55 = vrot.slane %v1422_v54, 4 }
 0x10f   :  { %v375_v36 = vpop.permute.xlu0 %374  ;;  %4451 = vrcp.f32 %v2344_v43  ;;  %v1380_v43 = vsel %vm1358_vm1, %v1233_v53, 0.0  ;;  %v1429_v53 = vsel %vm1358_vm1, %v1240_v62, 0.0  ;;  %v1361_v15 = vadd.f32 %v1360_v31, %v1359_v7 }
 0x110   :  { %4453 = vrcp.f32 %v5132_v63  ;;  %v1235_v6 = vmul.f32 %v375_v36, %v7253_v2  ;;  %v1381_v49 = vrot.slane %v1380_v43, 4  ;;  %v1436_v14 = vsel %vm1358_vm1, %v1241_v41, 0.0 }
 0x111   :  { %640 = vbcast.lane.b32.xlu0 %v638_v42, 256  ;;  %4455 = vrcp.f32 %v2345_v21  ;;  %v5195_v57 = vpop.eup %4441  ;;  %v1415_v21 = vsel %vm1358_vm1, %v1238_v27, 0.0  ;;  %v1377_v2 = vadd.f32 %v1376_v32, %v1375_v56  ;;  %v2348_v42 = vrot.slane %v5132_v63, 6 }
 0x112   :  { %4457 = vrcp.f32 %v2347_v58  ;;  %v1394_v58 = vsel %vm1358_vm1, %v1235_v6, 0.0  ;;  %v1424_v27 = vadd.f32 %v1423_v55, %v1422_v54  ;;  %v1416_v41 = vrot.slane %v1415_v21, 4 }
 0x113   :  { %v5162_v4 = vpop.permute.xlu0 %458  ;;  %4459 = vrcp.f32 %v2346_v61  ;;  %v1437_v34 = vrot.slane %v1436_v14, 4  ;;  %v1371_v61 = vrot.slane %v1370_v3, 1  ;;  %v1382_v59 = vadd.f32 %v1381_v49, %v1380_v43 }
 0x114   :  { %7248 = vst [vmem:[#allocation22_spill] sm:$0xff] %v5162_v4  ;;  %v7258_v31 = vrot.slane %v5088_v17, 5  ;;  %v1378_v6 = vrot.slane %v1377_v2, 1  ;;  %v1395_v54 = vrot.slane %v1394_v58, 4  ;;  %v7259_v55 = vrot.slane %v5088_v17, 6 }
 0x115   :  { %v5200_v1 = vpop.eup %4443  ;;  %v1417_v4 = vadd.f32 %v1416_v41, %v1415_v21  ;;  %v1438_v38 = vadd.f32 %v1437_v34, %v1436_v14  ;;  %v1372_v52 = vadd.f32 %v1371_v61, %v1370_v3  ;;  %v1383_v24 = vrot.slane %v1382_v59, 2 }
 0x116   :  { %v5206_v62 = vpop.eup %4445  ;;  %4461 = vrcp.f32 %v7258_v31  ;;  %v1379_v34 = vadd.f32 %v1378_v6, %v1377_v2 }
 0x117   :  { %v382_v30 = vpop.permute.xlu0 %381  ;;  %4463 = vrcp.f32 %v7259_v55  ;;  %v1439_v41 = vrot.slane %v1438_v38, 2  ;;  %v1384_v61 = vadd.f32 %v1383_v24, %v1382_v59 }
 0x118   :  { %v1236_v25 = vmul.f32 %v382_v30, %v7254_v5  ;;  %v1430_v30 = vrot.slane %v1429_v53, 4  ;;  %v5211_v5 = vpop.eup %4447  ;;  %4465 = vrcp.f32 %v2342_v10 }
 0x119   :  { %v5214_v32 = vpop.eup %4449  ;;  %4467 = vrcp.f32 %v2348_v42  ;;  %v1418_v42 = vrot.slane %v1417_v4, 2 }
 0x11a   :  { %v1401_v56 = vsel %vm1358_vm1, %v1236_v25, 0.0  ;;  %v5222_v16 = vpop.eup %4451  ;;  %v2349_v25 = vrot.slane %v5132_v63, 7 }
 0x11b   :  { %v431_v36 = vpop.permute.xlu0 %430  ;;  %v1402_v49 = vrot.slane %v1401_v56, 4 }
 0x11c   :  { %v1243_v11 = vmul.f32 %v431_v36, %v7255_v46  ;;  %v1362_v36 = vrot.slane %v1361_v15, 2  ;;  %v1431_v46 = vadd.f32 %v1430_v30, %v1429_v53  ;;  %v1396_v53 = vadd.f32 %v1395_v54, %v1394_v58 }
 0x11d   :  { %v1403_v14 = vadd.f32 %v1402_v49, %v1401_v56  ;;  %v1390_v54 = vrot.slane %v1389_v22, 2  ;;  %4469 = vrcp.f32 %v2349_v25  ;;  %v1440_v49 = vadd.f32 %v1439_v41, %v1438_v38 }
 0x11e   :  { %v1450_v43 = vsel %vm1358_vm1, %v1243_v11, 0.0  ;;  %v7260_v11 = vunpack.c.l.bf16 %v5094_v26  ;;  %v1363_v10 = vadd.f32 %v1362_v36, %v1361_v15  ;;  %v1432_v3 = vrot.slane %v1431_v46, 2 }
 0x11f   :  { %v5216_v51 = vpop.permute.xlu0 %465  ;;  %v5218_v7 = vpop.xlane.xlu1 %2284  ;;  %v1451_v30 = vrot.slane %v1450_v43, 4  ;;  %v1397_v2 = vrot.slane %v1396_v53, 2  ;;  %v1404_v6 = vrot.slane %v1403_v14, 2  ;;  %v1419_v36 = vadd.f32 %v1418_v42, %v1417_v4 }
 0x120   :  { %7256 = vst [vmem:[#allocation24_spill] sm:$0xff] %v5216_v51  ;;  %7257 = vst [vmem:[#allocation25_spill] sm:$0xff] %v5218_v7  ;;  %v5228_v51 = vpop.eup %4453  ;;  %v1425_v7 = vrot.slane %v1424_v27, 2  ;;  %v1364_v56 = vrot.slane %v1363_v10, 1 }
 0x121   :  { %v5230_v31 = vpop.eup %4455  ;;  %v1452_v15 = vadd.f32 %v1451_v30, %v1450_v43  ;;  %v1405_v41 = vadd.f32 %v1404_v6, %v1403_v14 }
 0x122   :  { %v5232_v63 = vpop.eup %4457  ;;  %v1426_v0 = vadd.f32 %v1425_v7, %v1424_v27  ;;  %v1433_v7 = vadd.f32 %v1432_v3, %v1431_v46  ;;  %v1398_v3 = vadd.f32 %v1397_v2, %v1396_v53  ;;  %v1365_v38 = vadd.f32 %v1364_v56, %v1363_v10 }
 0x123   :  { %v389_v17 = vpop.permute.xlu0 %388  ;;  %v424_v55 = vpop.permute.xlu1 %423 }
 0x124   :  { %v1237_v33 = vmul.f32 %v389_v17, %v7260_v11  ;;  %v1242_v21 = vmul.f32 %v424_v55, %v7261_v44  ;;  %2293 = vadd.xlane.f32.xlu1 %v5128_v60  ;;  %v5239_v23 = vpop.eup %4459  ;;  %v5248_v60 = vmul.f32 %v5200_v1, %v1372_v52  ;;  %v1427_v52 = vrot.slane %v1426_v0, 1 }
 0x125   :  { %v5250_v27 = vpop.eup %4461  ;;  %v1385_v1 = vrot.slane %v1384_v61, 1  ;;  %v1391_v11 = vadd.f32 %v1390_v54, %v1389_v22  ;;  %v1434_v42 = vrot.slane %v1433_v7, 1  ;;  %v1420_v22 = vrot.slane %v1419_v36, 1 }
 0x126   :  { %v1443_v58 = vsel %vm1358_vm1, %v1242_v21, 0.0  ;;  %v1408_v26 = vsel %vm1358_vm1, %v1237_v33, 0.0  ;;  %v5252_v59 = vpop.eup %4463  ;;  %v5255_v33 = vmul.f32 %v5195_v57, %v1379_v34  ;;  %v2992_v46 = vrot.slane %v5248_v60, 7 }
 0x127   :  { %v1444_v17 = vrot.slane %v1443_v58, 4  ;;  %v5243_v29 = vpop.permute.xlu0 %451  ;;  %v5245_v44 = vpop.permute.xlu1 %514  ;;  %v1409_v55 = vrot.slane %v1408_v26, 4  ;;  %v7265_v57 = vunpack.c.l.bf16 %v5105_v40  ;;  %v1441_v54 = vrot.slane %v1440_v49, 1 }
 0x128   :  { %7262 = vst [vmem:[#allocation26_spill] sm:$0xff] %v5243_v29  ;;  %7263 = vst [vmem:[#allocation27_spill] sm:$0xff] %v5245_v44  ;;  %v5259_v21 = vpop.eup %4465  ;;  %v1428_v29 = vadd.f32 %v1427_v52, %v1426_v0  ;;  %v1392_v12 = vrot.slane %v1391_v11, 1  ;;  %v1386_v2 = vadd.f32 %v1385_v1, %v1384_v61  ;;  %v1399_v40 = vrot.slane %v1398_v3, 1 }
 0x129   :  { %v1445_v24 = vadd.f32 %v1444_v17, %v1443_v58  ;;  %v1453_v58 = vrot.slane %v1452_v15, 2  ;;  %v5264_v4 = vpop.eup %4467  ;;  %v1410_v44 = vadd.f32 %v1409_v55, %v1408_v26  ;;  %v2577_v14 = vmul.f32 %v5182_v37, %v1365_v38 }
 0x12a   :  { %v1435_v56 = vadd.f32 %v1434_v42, %v1433_v7  ;;  %v1406_v26 = vrot.slane %v1405_v41, 1  ;;  %v1421_v0 = vadd.f32 %v1420_v22, %v1419_v36  ;;  %v1442_v55 = vadd.f32 %v1441_v54, %v1440_v49 }
 0x12b   :  { %v1446_v43 = vrot.slane %v1445_v24, 2  ;;  %v5257_v25 = vpop.permute.xlu0 %521  ;;  %v438_v30 = vpop.permute.xlu1 %437  ;;  %v1411_v52 = vrot.slane %v1410_v44, 2  ;;  %v1393_v61 = vadd.f32 %v1392_v12, %v1391_v11  ;;  %v1400_v37 = vadd.f32 %v1399_v40, %v1398_v3 }
 0x12c   :  { %7264 = vst [vmem:[#allocation28_spill] sm:$0xff] %v5257_v25  ;;  %v1244_v34 = vmul.f32 %v438_v30, %v7265_v57  ;;  %v1454_v30 = vadd.f32 %v1453_v58, %v1452_v15  ;;  %v7266_v57 = vunpack.c.l.bf16 %v5112_v48  ;;  %v2595_v48 = vmul.f32 %v5214_v32, %v1428_v29 }
 0x12d   :  { %v1447_v17 = vadd.f32 %v1446_v43, %v1445_v24  ;;  %v5271_v24 = vpop.eup %4469  ;;  %v7267_v36 = vrot.slane %v4914_v9, %v4969_v35  ;;  %v2994_v12 = vsel %vm2993_vm2, %v2992_v46, %v2577_v14  ;;  %v2593_v49 = vmul.f32 %v5228_v51, %v1421_v0 }
 0x12e   :  { %v1457_v25 = vsel %vm1358_vm1, %v1244_v34, 0.0  ;;  %v1455_v7 = vrot.slane %v1454_v30, 1  ;;  %v2599_v32 = vmul.f32 %v5230_v31, %v1442_v55  ;;  %v2585_v29 = vmul.f32 %v5211_v5, %v1393_v61 }
 0x12f   :  { %v1448_v28 = vrot.slane %v1447_v17, 1  ;;  %v1458_v60 = vrot.slane %v1457_v25, 4  ;;  %v445_v53 = vpop.permute.xlu0 %444  ;;  %v2587_v22 = vmul.f32 %v5250_v27, %v1400_v37  ;;  %v5302_v55 = vmax.f32 %v5040_v47, 1.0 }
 0x130   :  { %v1245_v10 = vmul.f32 %v445_v53, %v7266_v57  ;;  %2296 = vadd.xlane.f32.xlu0 %v5139_v19  ;;  %v2583_v19 = vmul.f32 %v5206_v62, %v1386_v2  ;;  %v1412_v62 = vadd.f32 %v1411_v52, %v1410_v44  ;;  %v1456_v46 = vadd.f32 %v1455_v7, %v1454_v30 }
 0x131   :  { %v1459_v6 = vadd.f32 %v1458_v60, %v1457_v25  ;;  %v1449_v1 = vadd.f32 %v1448_v28, %v1447_v17  ;;  %v1407_v25 = vadd.f32 %v1406_v26, %v1405_v41  ;;  %v2597_v28 = vmul.f32 %v5222_v16, %v1435_v56 }
 0x132   :  { %v1464_v43 = vsel %vm1358_vm1, %v1245_v10, 0.0  ;;  %v2995_v41 = vrot.slane %v5255_v33, 6  ;;  %v3013_v17 = vrot.slane %v2595_v48, 7  ;;  %v2998_v16 = vrot.slane %v2583_v19, 5 }
 0x133   :  { %v1460_v15 = vrot.slane %v1459_v6, 2  ;;  %v1465_v58 = vrot.slane %v1464_v43, 4  ;;  %v2601_v11 = vmul.f32 %v5239_v23, %v1449_v1  ;;  %v2589_v31 = vmul.f32 %v5252_v59, %v1407_v25 }
 0x134   :  { %v7268_v44 = vrot.slane %v4928_v13, %v4938_v20  ;;  %v3017_v5 = vrot.slane %v2599_v32, 5  ;;  %v1413_v23 = vrot.slane %v1412_v62, 1  ;;  %v2997_v60 = vsel %vm2996_vm3, %v2995_v41, %v2994_v12 }
 0x135   :  { %v1461_v34 = vadd.f32 %v1460_v15, %v1459_v6  ;;  %v1466_v38 = vadd.f32 %v1465_v58, %v1464_v43  ;;  %598 = vbcast.lane.b32.xlu1 %v7267_v36, 256  ;;  %v3014_v53 = vsel %vm2993_vm2, %v3013_v17, %v2593_v49  ;;  %v3015_v33 = vrot.slane %v2597_v28, 6  ;;  %v7272_v36 = vld [vmem:[#allocation16_spill] sm:$0xff]  ;;  %v7277_v17 = vld [vmem:[#allocation17_spill] sm:$0xff] }
 0x136   :  { %v3019_v2 = vrot.slane %v2601_v11, 4  ;;  %v3001_v30 = vrot.slane %v2585_v29, 4  ;;  %v2603_v27 = vmul.f32 %v5232_v63, %v1456_v46  ;;  %v1414_v57 = vadd.f32 %v1413_v23, %v1412_v62  ;;  %v7275_v11 = vld [vmem:[#allocation12_spill] sm:$0xff] }
 0x137   :  { %v1462_v3 = vrot.slane %v1461_v34, 1  ;;  %v1467_v42 = vrot.slane %v1466_v38, 2  ;;  %v3004_v10 = vrot.slane %v2587_v22, 3  ;;  %v3007_v14 = vrot.slane %v2589_v31, 2 }
 0x138   :  { %v7269_v56 = vrot.slane %v4914_v9, %v4976_v39  ;;  %v652_v26 = vrot.slane %v4909_v8, %v4969_v35  ;;  %v3016_v0 = vsel %vm2996_vm3, %v3015_v33, %v3014_v53  ;;  %v2591_v63 = vmul.f32 %v5259_v21, %v1414_v57 }
 0x139   :  { %v1463_v54 = vadd.f32 %v1462_v3, %v1461_v34  ;;  %v1468_v51 = vadd.f32 %v1467_v42, %v1466_v38  ;;  %682 = vbcast.lane.b32.xlu1 %v7268_v44, 256  ;;  %v3000_v52 = vsel %vm2999_vm4, %v2998_v16, %v2997_v60  ;;  %v2358_v43 = vrot.slane %v5151_v45, 2  ;;  %v7278_v16 = vld [vmem:[#allocation18_spill] sm:$0xff] }
 0x13a   :  { %v3003_v61 = vsel %vm3002_vm5, %v3001_v30, %v3000_v52  ;;  %v3010_v48 = vrot.slane %v2591_v63, 1  ;;  %v3021_v19 = vrot.slane %v2603_v27, 3  ;;  %v7270_v37 = vrot.slane %v5115_v50, 1  ;;  %v7281_v52 = vld [vmem:[#allocation20_spill] sm:$0xff] }
 0x13b   :  { %v1469_v40 = vrot.slane %v1468_v51, 1  ;;  %v2605_v59 = vmul.f32 %v5264_v4, %v1463_v54  ;;  %v3018_v4 = vsel %vm2999_vm4, %v3017_v5, %v3016_v0  ;;  %v3006_v58 = vsel %vm3005_vm6, %v3004_v10, %v3003_v61 }
 0x13c   :  { %v3020_v15 = vsel %vm3002_vm5, %v3019_v2, %v3018_v4  ;;  %4471 = vrcp.f32 %v7270_v37  ;;  %v3009_v21 = vsel %vm3008_vm7, %v3007_v14, %v3006_v58  ;;  %v687_v25 = vrot.slane %v4928_v13, %v4934_v18 }
 0x13d   :  { %605 = vbcast.lane.b32.xlu1 %v7269_v56, 256  ;;  %v1470_v6 = vadd.f32 %v1469_v40, %v1468_v51  ;;  %v3023_v47 = vrot.slane %v2605_v59, 2  ;;  %v7271_v34 = vrot.slane %v5115_v50, 2  ;;  %v3022_v38 = vsel %vm3005_vm6, %v3021_v19, %v3020_v15 }
 0x13e   :  { %v645_v12 = vrot.slane %v4909_v8, %v7272_v36  ;;  %v7273_v28 = vrot.slane %v5151_v45, 1  ;;  %v2359_v32 = vrot.slane %v5151_v45, 3  ;;  %v7274_v29 = vrot.slane %v5115_v50, 3 }
 0x13f   :  { %v2607_v1 = vmul.f32 %v5271_v24, %v1470_v6  ;;  %4473 = vrcp.f32 %v7271_v34  ;;  %v3012_v24 = vsel %vm3011_vm8, %v3010_v48, %v3009_v21  ;;  %v3024_v49 = vsel %vm3008_vm7, %v3023_v47, %v3022_v38  ;;  %v7284_v38 = vld [vmem:[#allocation19_spill] sm:$0xff] }
 0x140   :  { %4475 = vrcp.f32 %v7273_v28  ;;  %4109 = vmatprep.mubr.f32.mxu0 %v3012_v24  ;;  %v736_v3 = vrot.slane %v7275_v11, %v4938_v20  ;;  %v2354_v42 = vrot.slane %v5115_v50, 5  ;;  %v7276_v41 = vrot.slane %v5115_v50, 4  ;;  %v7285_v28 = vld [vmem:[#allocation22_spill] sm:$0xff] }
 0x141   :  { %654 = vbcast.lane.b32.xlu1 %v652_v26, 256  ;;  %v3025_v7 = vrot.slane %v2607_v1, 1  ;;  %4477 = vrcp.f32 %v2358_v43  ;;  %v610_v46 = vrot.slane %v4914_v9, %v7277_v17  ;;  %v2364_v22 = vrot.slane %v5302_v55, 1  ;;  %v7279_v9 = vld [vmem:[#allocation14_spill] sm:$0xff]  ;;  %v79_v26 = vld [vmem:[#allocation2 + $0x22] sm:$0x3] }
 0x142   :  { %4479 = vrcp.f32 %v7274_v29  ;;  %v5339_v54 = vmax.f32 %v7278_v16, 1.0  ;;  %v2360_v51 = vrot.slane %v5151_v45, 4  ;;  %v2361_v31 = vrot.slane %v5151_v45, 5  ;;  %v4693_v43 = vld [vmem:[%s7194_s1 + $0x28] sm:$0xff] }
 0x143   :  { %v3026_v62 = vsel %vm3011_vm8, %v3025_v7, %v3024_v49  ;;  %4481 = vrcp.f32 %v7276_v41  ;;  %v659_v44 = vrot.slane %v4909_v8, %v4976_v39  ;;  %v2365_v5 = vrot.slane %v5302_v55, 2  ;;  %v7280_v8 = vld [vmem:[#allocation15_spill] sm:$0xff]  ;;  %v80_v7 = vld [vmem:[#allocation2 + $0x24] sm:$0x3] }
 0x144   :  { %4110 = vmatmul.mubr.f32.vlgmr.msra.gmra.mrb[0].mxu0 %v3026_v62  ;;  %4483 = vrcp.f32 %v5151_v45  ;;  %v673_v23 = vrot.slane %v4928_v13, %v7279_v9  ;;  %v2371_v53 = vrot.slane %v5339_v54, 1  ;;  %v2372_v2 = vrot.slane %v5339_v54, 2 }
 0x145   :  { %689 = vbcast.lane.b32.xlu1 %v687_v25, 256  ;;  %4485 = vrcp.f32 %v2359_v32  ;;  %v694_v30 = vrot.slane %v4928_v13, %v7280_v8  ;;  %v2366_v27 = vrot.slane %v5302_v55, 3  ;;  %v743_v10 = vrot.slane %v7275_v11, %v4934_v18  ;;  %v5399_v25 = vld [vmem:[%s7194_s1 + $0x30] sm:$0xff]  ;;  %v5410_v32 = vld [vmem:[#allocation2 + $0x20] sm:$0x3] }
 0x146   :  { %647 = vbcast.lane.b32.xlu0 %v645_v12, 256  ;;  %4487 = vrcp.f32 %v2354_v42  ;;  %v5349_v60 = vpop.eup %4471  ;;  %v2367_v59 = vrot.slane %v5302_v55, 4  ;;  %v2355_v13 = vrot.slane %v5115_v50, 6  ;;  %v2356_v0 = vrot.slane %v5115_v50, 7  ;;  %v5415_v11 = vld [vmem:[#allocation2 + $0x32] sm:$0x3] }
 0x147   :  { %4489 = vrcp.f32 %v2364_v22  ;;  %v5377_v4 = vmax.f32 %v7281_v52, 1.0  ;;  %v666_v61 = vrot.slane %v4693_v43, %v7277_v17  ;;  %v2373_v1 = vrot.slane %v5339_v54, 3  ;;  %v5422_v22 = vld [vmem:[#allocation2 + $0x26] sm:$0x3]  ;;  %v5450_v43 = vld [vmem:[#allocation2 + $0x36] sm:$0x3] }
 0x148   :  { %4491 = vrcp.f32 %v2360_v51  ;;  %v207_v58 = vunpack.c.l.bf16 %v79_v26  ;;  %v2362_v50 = vrot.slane %v5151_v45, 6  ;;  %v2363_v19 = vrot.slane %v5151_v45, 7 }
 0x149   :  { %738 = vbcast.lane.b32.xlu1 %v736_v3, 256  ;;  %v5352_v33 = vpop.eup %4473  ;;  %4493 = vrcp.f32 %v2361_v31  ;;  %v2368_v37 = vrot.slane %v5302_v55, 5  ;;  %v701_v34 = vrot.slane %v5399_v25, %v7272_v36  ;;  %v2378_v45 = vrot.slane %v5377_v4, 1 }
 0x14a   :  { %612 = vbcast.lane.b32.xlu0 %v610_v46, 256  ;;  %v5355_v40 = vpop.eup %4475  ;;  %4495 = vrcp.f32 %v2365_v5  ;;  %v5407_v12 = vmax.f32 %v7284_v38, 1.0  ;;  %v1247_v49 = vmul.f32 %v7285_v28, %v207_v58  ;;  %v2374_v62 = vrot.slane %v5339_v54, 4  ;;  %v5420_v46 = vld [vmem:[#allocation2 + $0x34] sm:$0x3]  ;;  %v5433_v5 = vld [vmem:[%s7194_s1 + $0x38] sm:$0xff] }
 0x14b   :  { %v5360_v57 = vpop.eup %4477  ;;  %4497 = vrcp.f32 %v5302_v55  ;;  %v2375_v3 = vrot.slane %v5339_v54, 5  ;;  %v208_v41 = vunpack.c.l.bf16 %v80_v7  ;;  %v2379_v16 = vrot.slane %v5377_v4, 2  ;;  %v5459_v7 = vld [vmem:[#allocation2 + $0x2c] sm:$0x3] }
 0x14c   :  { %v5366_v14 = vpop.eup %4479  ;;  %4499 = vrcp.f32 %v2371_v53  ;;  %v206_v31 = vunpack.c.l.bf16 %v5410_v32  ;;  %v209_v52 = vunpack.c.l.bf16 %v5422_v22  ;;  %v2381_v32 = vrot.slane %v5377_v4, 4 }
 0x14d   :  { %661 = vbcast.lane.b32.xlu1 %v659_v44, 256  ;;  %v5368_v56 = vpop.eup %4481  ;;  %4501 = vrcp.f32 %v2372_v2  ;;  %v5428_v44 = vld [vmem:[#allocation2 + $0x28] sm:$0x3]  ;;  %v1478_v2 = vsel %vm1358_vm1, %v1247_v49, 0.0  ;;  %v750_v49 = vrot.slane %v5433_v5, %v7280_v8 }
 0x14e   :  { %675 = vbcast.lane.b32.xlu0 %v673_v23, 256  ;;  %v5371_v6 = vpop.eup %4483  ;;  %4503 = vrcp.f32 %v2366_v27  ;;  %v729_v23 = vrot.slane %v5433_v5, %v7279_v9  ;;  %v5441_v27 = vpop.permute.xlu0 %479  ;;  %v1479_v28 = vrot.slane %v1478_v2, 4 }
 0x14f   :  { %v5374_v63 = vpop.eup %4485  ;;  %4505 = vrcp.f32 %v2367_v59  ;;  %v2385_v59 = vrot.slane %v5407_v12, 1 }
 0x150   :  { %v5384_v15 = vpop.eup %4487  ;;  %4507 = vrcp.f32 %v5339_v54 }
 0x151   :  { %696 = vbcast.lane.b32.xlu1 %v694_v30, 256  ;;  %v5388_v48 = vpop.eup %4489  ;;  %4509 = vrcp.f32 %v2355_v13  ;;  %v2369_v13 = vrot.slane %v5302_v55, 6 }
 0x152   :  { %745 = vbcast.lane.b32.xlu0 %v743_v10, 256  ;;  %7282 = vst [vmem:[#allocation12_spill] sm:$0xff] %v5388_v48  ;;  %v5391_v47 = vpop.eup %4491  ;;  %4511 = vrcp.f32 %v2356_v0  ;;  %v5443_v10 = vld [vmem:[#allocation2 + $0x30] sm:$0x3]  ;;  %v473_v0 = vpop.permute.xlu1 %472 }
 0x153   :  { %v5394_v21 = vpop.eup %4493  ;;  %4513 = vrcp.f32 %v2373_v1  ;;  %v2386_v1 = vrot.slane %v5407_v12, 2 }
 0x154   :  { %v5404_v24 = vpop.eup %4495  ;;  %4515 = vrcp.f32 %v2362_v50  ;;  %v7292_v50 = vld [vmem:[#allocation24_spill] sm:$0xff] }
 0x155   :  { %7283 = vst [vmem:[#allocation18_spill] sm:$0xff] %v5404_v24  ;;  %v5413_v29 = vpop.eup %4497  ;;  %4517 = vrcp.f32 %v2363_v19  ;;  %v1248_v19 = vmul.f32 %v7292_v50, %v208_v41  ;;  %v2376_v50 = vrot.slane %v5339_v54, 6 }
 0x156   :  { %668 = vbcast.lane.b32.xlu0 %v666_v61, 256  ;;  %7286 = vst [vmem:[#allocation20_spill] sm:$0xff] %v5413_v29  ;;  %v5418_v42 = vpop.eup %4499  ;;  %4519 = vrcp.f32 %v2368_v37  ;;  %v5452_v61 = vld [vmem:[#allocation2 + $0x2a] sm:$0x3]  ;;  %v210_v37 = vunpack.c.l.bf16 %v5428_v44 }
 0x157   :  { %7287 = vst [vmem:[#allocation19_spill] sm:$0xff] %v5418_v42  ;;  %v5425_v51 = vpop.eup %4501  ;;  %4521 = vrcp.f32 %v2378_v45  ;;  %v2380_v45 = vrot.slane %v5377_v4, 3  ;;  %v211_v22 = vunpack.c.l.bf16 %v5452_v61  ;;  %v2370_v61 = vrot.slane %v5302_v55, 7 }
 0x158   :  { %7288 = vst [vmem:[#allocation22_spill] sm:$0xff] %v5425_v51  ;;  %v5437_v53 = vpop.eup %4503  ;;  %4523 = vrcp.f32 %v2374_v62  ;;  %v2382_v55 = vrot.slane %v5377_v4, 5  ;;  %v1250_v24 = vmul.f32 %v5441_v27, %v210_v37 }
 0x159   :  { %7289 = vst [vmem:[#allocation29_spill] sm:$0xff] %v5437_v53  ;;  %v5446_v26 = vpop.eup %4505  ;;  %4525 = vrcp.f32 %v2375_v3  ;;  %v214_v3 = vunpack.c.l.bf16 %v5443_v10  ;;  %v1485_v10 = vsel %vm1358_vm1, %v1248_v19, 0.0  ;;  %v5494_v19 = vld [vmem:[#allocation2 + $0x3a] sm:$0x3] }
 0x15a   :  { %703 = vbcast.lane.b32.xlu0 %v701_v34, 256  ;;  %7290 = vst [vmem:[#allocation30_spill] sm:$0xff] %v5446_v26  ;;  %v5455_v58 = vpop.eup %4507  ;;  %v5461_v34 = vld [vmem:[#allocation2 + $0x38] sm:$0x3]  ;;  %4527 = vrcp.f32 %v2379_v16  ;;  %v7296_v26 = vld [vmem:[#allocation26_spill] sm:$0xff] }
 0x15b   :  { %7291 = vst [vmem:[#allocation31_spill] sm:$0xff] %v5455_v58  ;;  %v5464_v38 = vpop.eup %4509  ;;  %4529 = vrcp.f32 %v5377_v4  ;;  %v508_v58 = vpop.permute.xlu0 %507  ;;  %v1246_v53 = vmul.f32 %v7296_v26, %v206_v31  ;;  %v7299_v31 = vunpack.c.l.bf16 %v5415_v11  ;;  %v7300_v26 = vld [vmem:[#allocation27_spill] sm:$0xff]  ;;  %v7303_v11 = vunpack.c.l.bf16 %v5420_v46 }
 0x15c   :  { %v5470_v62 = vpop.eup %4511  ;;  %4531 = vrcp.f32 %v2385_v59  ;;  %v2387_v59 = vrot.slane %v5407_v12, 3 }
 0x15d   :  { %v5475_v16 = vpop.eup %4513  ;;  %4533 = vrcp.f32 %v2386_v1  ;;  %v2377_v1 = vrot.slane %v5339_v54, 7  ;;  %v2389_v54 = vrot.slane %v5407_v12, 5  ;;  %v1255_v42 = vmul.f32 %v7300_v26, %v7299_v31  ;;  %v7304_v31 = vld [vmem:[#allocation28_spill] sm:$0xff] }
 0x15e   :  { %731 = vbcast.lane.b32.xlu0 %v729_v23, 256  ;;  %7293 = vst [vmem:[#allocation24_spill] sm:$0xff] %v5475_v16  ;;  %v5482_v30 = vpop.eup %4515  ;;  %4535 = vrcp.f32 %v2380_v45  ;;  %v1480_v16 = vadd.f32 %v1479_v28, %v1478_v2  ;;  %v2388_v45 = vrot.slane %v5407_v12, 4  ;;  %v1486_v2 = vrot.slane %v1485_v10, 4 }
 0x15f   :  { %v5487_v41 = vpop.eup %4517  ;;  %4537 = vrcp.f32 %v2381_v32  ;;  %v1249_v28 = vmul.f32 %v473_v0, %v209_v52  ;;  %v5501_v32 = vld [vmem:[#allocation2 + $0x2e] sm:$0x3]  ;;  %v1256_v26 = vmul.f32 %v7304_v31, %v7303_v11  ;;  %v529_v27 = vpop.permute.xlu0 %528  ;;  %v1534_v11 = vsel %vm1358_vm1, %v1255_v42, 0.0 }
 0x160   :  { %v5477_v44 = vpop.xlane.xlu1 %2287  ;;  %v5491_v23 = vpop.eup %4519  ;;  %4539 = vrcp.f32 %v5407_v12  ;;  %v1481_v0 = vrot.slane %v1480_v16, 2  ;;  %v1487_v29 = vadd.f32 %v1486_v2, %v1485_v10  ;;  %v1499_v31 = vsel %vm1358_vm1, %v1250_v24, 0.0  ;;  %v5544_v24 = vld [vmem:[#allocation2 + $0x3e] sm:$0x3] }
 0x161   :  { %7294 = vst [vmem:[#allocation32_spill] sm:$0xff] %v5477_v44  ;;  %7295 = vst [vmem:[#allocation33_spill] sm:$0xff] %v5491_v23  ;;  %v5499_v51 = vpop.eup %4521  ;;  %4541 = vrcp.f32 %v2369_v13  ;;  %v1492_v52 = vsel %vm1358_vm1, %v1249_v28, 0.0 }
 0x162   :  { %752 = vbcast.lane.b32.xlu0 %v750_v49, 256  ;;  %7297 = vst [vmem:[#allocation26_spill] sm:$0xff] %v5499_v51  ;;  %v5504_v23 = vpop.eup %4523  ;;  %4543 = vrcp.f32 %v2370_v61  ;;  %v1482_v10 = vadd.f32 %v1481_v0, %v1480_v16  ;;  %v1535_v16 = vrot.slane %v1534_v11, 4 }
 0x163   :  { %7298 = vst [vmem:[#allocation34_spill] sm:$0xff] %v5504_v23  ;;  %v5511_v51 = vpop.eup %4525  ;;  %4545 = vrcp.f32 %v2387_v59  ;;  %v1471_v23 = vsel %vm1358_vm1, %v1246_v53, 0.0  ;;  %v332_v53 = vld [vmem:[%s7194_s1 + $0x70] sm:$0xff] }
 0x164   :  { %v487_v49 = vpop.permute.xlu1 %486  ;;  %7301 = vst [vmem:[#allocation27_spill] sm:$0xff] %v5511_v51  ;;  %v5515_v48 = vpop.eup %4527  ;;  %4547 = vrcp.f32 %v2376_v50  ;;  %v1254_v50 = vmul.f32 %v508_v58, %v214_v3  ;;  %v1472_v2 = vrot.slane %v1471_v23, 4  ;;  %v2298_v42 = vsel %vm2255_vm0, %v332_v53, 0.0  ;;  %v7314_v53 = vld [vmem:[#allocation21_spill] sm:$0xff] }
 0x165   :  { %7302 = vst [vmem:[#allocation35_spill] sm:$0xff] %v5515_v48  ;;  %v5522_v61 = vpop.eup %4529  ;;  %v1251_v59 = vmul.f32 %v487_v49, %v211_v22  ;;  %4549 = vrcp.f32 %v2377_v1  ;;  %v7309_v22 = vunpack.c.l.bf16 %v5450_v43  ;;  %v5538_v49 = vld [vmem:[#allocation2 + $0x3c] sm:$0x3]  ;;  %v1541_v1 = vsel %vm1358_vm1, %v1256_v26, 0.0 }
 0x166   :  { %7305 = vst [vmem:[#allocation28_spill] sm:$0xff] %v5522_v61  ;;  %v5530_v46 = vpop.eup %4531  ;;  %4551 = vrcp.f32 %v2382_v55  ;;  %v1488_v3 = vrot.slane %v1487_v29, 2  ;;  %v1500_v55 = vrot.slane %v1499_v31, 4  ;;  %v333_v26 = vld [vmem:[%s7194_s1 + $0x78] sm:$0xff]  ;;  %v1473_v48 = vadd.f32 %v1472_v2, %v1471_v23 }
 0x167   :  { %7307 = vst [vmem:[#allocation37_spill] sm:$0xff] %v5530_v46  ;;  %v5534_v13 = vpop.eup %4533  ;;  %v1257_v28 = vmul.f32 %v529_v27, %v7309_v22  ;;  %4553 = vrcp.f32 %v2388_v45  ;;  %v1493_v46 = vrot.slane %v1492_v52, 4  ;;  %v1506_v43 = vsel %vm1358_vm1, %v1251_v59, 0.0 }
 0x168   :  { %v5525_v51 = vpop.permute.xlu1 %570  ;;  %7308 = vst [vmem:[#allocation38_spill] sm:$0xff] %v5534_v13  ;;  %v5540_v37 = vpop.eup %4535  ;;  %4555 = vrcp.f32 %v2389_v54  ;;  %v5557_v22 = vmax.f32 %v7314_v53, 1.0  ;;  %v1527_v54 = vsel %vm1358_vm1, %v1254_v50, 0.0  ;;  %v1542_v61 = vrot.slane %v1541_v1, 4 }
 0x169   :  { %7306 = vst [vmem:[#allocation36_spill] sm:$0xff] %v5525_v51  ;;  %7310 = vst [vmem:[#allocation39_spill] sm:$0xff] %v5540_v37  ;;  %v5546_v58 = vpop.eup %4537  ;;  %v1548_v44 = vsel %vm1358_vm1, %v1257_v28, 0.0  ;;  %v1507_v9 = vrot.slane %v1506_v43, 4  ;;  %v5570_v50 = vsel %vm2255_vm0, %v333_v26, 0.0  ;;  %v1501_v13 = vadd.f32 %v1500_v55, %v1499_v31 }
 0x16a   :  { %7311 = vst [vmem:[#allocation40_spill] sm:$0xff] %v5546_v58  ;;  %v5554_v27 = vpop.eup %4539  ;;  %7315 = vst [vmem:[#allocation21_spill] sm:$0xff] %v5557_v22  ;;  %v7316_v58 = vunpack.c.l.bf16 %v5459_v7  ;;  %v1549_v28 = vrot.slane %v1548_v44, 4  ;;  %v7322_v53 = vunpack.c.l.bf16 %v5494_v19 }
 0x16b   :  { %7313 = vst [vmem:[#allocation42_spill] sm:$0xff] %v5554_v27  ;;  %v5563_v59 = vpop.eup %4541  ;;  %v1494_v27 = vadd.f32 %v1493_v46, %v1492_v52  ;;  %v7321_v52 = vunpack.c.l.bf16 %v5461_v34  ;;  %v1508_v55 = vadd.f32 %v1507_v9, %v1506_v43  ;;  %v7328_v9 = vunpack.c.l.bf16 %v5501_v32 }
 0x16c   :  { %v5549_v0 = vpop.xlane.xlu0 %2290  ;;  %v494_v45 = vpop.permute.xlu1 %493  ;;  %7317 = vst [vmem:[#allocation43_spill] sm:$0xff] %v5563_v59  ;;  %v1528_v59 = vrot.slane %v1527_v54, 4 }
 0x16d   :  { %7312 = vst [vmem:[#allocation41_spill] sm:$0xff] %v5549_v0  ;;  %v1252_v37 = vmul.f32 %v494_v45, %v7316_v58  ;;  %v1483_v0 = vrot.slane %v1482_v10, 1  ;;  %v5566_v8 = vpop.eup %4543  ;;  %v1489_v58 = vadd.f32 %v1488_v3, %v1487_v29  ;;  %v1536_v45 = vadd.f32 %v1535_v16, %v1534_v11 }
 0x16e   :  { %7318 = vst [vmem:[#allocation44_spill] sm:$0xff] %v5566_v8  ;;  %v5572_v7 = vpop.eup %4545  ;;  %v1474_v29 = vrot.slane %v1473_v48, 2  ;;  %v1543_v11 = vadd.f32 %v1542_v61, %v1541_v1  ;;  %v1495_v16 = vrot.slane %v1494_v27, 2  ;;  %v1529_v31 = vadd.f32 %v1528_v59, %v1527_v54 }
 0x16f   :  { %7319 = vst [vmem:[#allocation45_spill] sm:$0xff] %v5572_v7  ;;  %v5574_v2 = vpop.eup %4547  ;;  %v1513_v8 = vsel %vm1358_vm1, %v1252_v37, 0.0  ;;  %v1484_v7 = vadd.f32 %v1483_v0, %v1482_v10  ;;  %v1490_v19 = vrot.slane %v1489_v58, 1  ;;  %v1537_v1 = vrot.slane %v1536_v45, 2 }
 0x170   :  { %v536_v51 = vpop.permute.xlu0 %535  ;;  %v543_v23 = vpop.permute.xlu1 %542  ;;  %7320 = vst [vmem:[#allocation46_spill] sm:$0xff] %v5574_v2  ;;  %v1509_v36 = vrot.slane %v1508_v55, 2 }
 0x171   :  { %v1258_v46 = vmul.f32 %v536_v51, %v7321_v52  ;;  %v1259_v26 = vmul.f32 %v543_v23, %v7322_v53  ;;  %v5581_v17 = vpop.eup %4549  ;;  %v1502_v53 = vrot.slane %v1501_v13, 2  ;;  %v1514_v23 = vrot.slane %v1513_v8, 4 }
 0x172   :  { %7323 = vst [vmem:[#allocation47_spill] sm:$0xff] %v5581_v17  ;;  %v5585_v3 = vpop.eup %4551  ;;  %v1491_v54 = vadd.f32 %v1490_v19, %v1489_v58  ;;  %v1510_v58 = vadd.f32 %v1509_v36, %v1508_v55 }
 0x173   :  { %7324 = vst [vmem:[#allocation48_spill] sm:$0xff] %v5585_v3  ;;  %v1555_v37 = vsel %vm1358_vm1, %v1258_v46, 0.0  ;;  %v1562_v34 = vsel %vm1358_vm1, %v1259_v26, 0.0  ;;  %v5589_v51 = vpop.eup %4553  ;;  %v1550_v3 = vadd.f32 %v1549_v28, %v1548_v44  ;;  %v1544_v46 = vrot.slane %v1543_v11, 2 }
 0x174   :  { %7325 = vst [vmem:[#allocation49_spill] sm:$0xff] %v5589_v51  ;;  %v1556_v52 = vrot.slane %v1555_v37, 4  ;;  %v501_v10 = vpop.permute.xlu0 %500  ;;  %v5591_v0 = vpop.permute.xlu1 %577  ;;  %v1563_v17 = vrot.slane %v1562_v34, 4  ;;  %v5600_v51 = vld [vmem:[%s7194_s1 + $0x40] sm:$0xff]  ;;  %v1503_v32 = vadd.f32 %v1502_v53, %v1501_v13  ;;  %v1515_v59 = vadd.f32 %v1514_v23, %v1513_v8 }
 0x175   :  { %7326 = vst [vmem:[#allocation50_spill] sm:$0xff] %v5591_v0  ;;  %v5593_v61 = vpop.eup %4555  ;;  %v1253_v43 = vmul.f32 %v501_v10, %v7328_v9  ;;  %2299 = vadd.xlane.f32.xlu1 %v2298_v42  ;;  %v1475_v0 = vadd.f32 %v1474_v29, %v1473_v48  ;;  %v1538_v10 = vadd.f32 %v1537_v1, %v1536_v45  ;;  %v1530_v9 = vrot.slane %v1529_v31, 2 }
 0x176   :  { %7327 = vst [vmem:[#allocation51_spill] sm:$0xff] %v5593_v61  ;;  %v1557_v26 = vadd.f32 %v1556_v52, %v1555_v37  ;;  %v1496_v61 = vadd.f32 %v1495_v16, %v1494_v27  ;;  %v5610_v52 = vmul.f32 %v5349_v60, %v1484_v7  ;;  %v1551_v18 = vrot.slane %v1550_v3, 2 }
 0x177   :  { %v1520_v44 = vsel %vm1358_vm1, %v1253_v43, 0.0  ;;  %v1545_v2 = vadd.f32 %v1544_v46, %v1543_v11  ;;  %v1564_v27 = vadd.f32 %v1563_v17, %v1562_v34  ;;  %v1476_v16 = vrot.slane %v1475_v0, 1 }
 0x178   :  { %v1521_v42 = vrot.slane %v1520_v44, 4  ;;  %v5605_v28 = vpop.permute.xlu0 %563  ;;  %v5607_v37 = vpop.permute.xlu1 %626  ;;  %v1558_v48 = vrot.slane %v1557_v26, 2  ;;  %v1497_v43 = vrot.slane %v1496_v61, 1  ;;  %v5615_v13 = vmul.f32 %v5352_v33, %v1491_v54 }
 0x179   :  { %7329 = vst [vmem:[#allocation52_spill] sm:$0xff] %v5605_v28  ;;  %7330 = vst [vmem:[#allocation53_spill] sm:$0xff] %v5607_v37  ;;  %v1504_v19 = vrot.slane %v1503_v32, 1  ;;  %v1516_v53 = vrot.slane %v1515_v59, 2  ;;  %v1539_v23 = vrot.slane %v1538_v10, 1  ;;  %v1531_v11 = vadd.f32 %v1530_v9, %v1529_v31 }
 0x17a   :  { %v1522_v29 = vadd.f32 %v1521_v42, %v1520_v44  ;;  %v1552_v1 = vadd.f32 %v1551_v18, %v1550_v3  ;;  %v7332_v17 = vunpack.c.l.bf16 %v5538_v49  ;;  %v3027_v36 = vrot.slane %v5610_v52, 7 }
 0x17b   :  { %v1546_v55 = vrot.slane %v1545_v2, 1  ;;  %v1559_v46 = vadd.f32 %v1558_v48, %v1557_v26  ;;  %v1565_v44 = vrot.slane %v1564_v27, 2  ;;  %v1477_v42 = vadd.f32 %v1476_v16, %v1475_v0  ;;  %v7334_v16 = vld [vmem:[#allocation23_spill] sm:$0xff] }
 0x17c   :  { %v1523_v60 = vrot.slane %v1522_v29, 2  ;;  %v5617_v7 = vpop.permute.xlu0 %633  ;;  %v550_v45 = vpop.permute.xlu1 %549  ;;  %v1498_v33 = vadd.f32 %v1497_v43, %v1496_v61  ;;  %v1511_v54 = vrot.slane %v1510_v58, 1  ;;  %v3029_v37 = vrot.slane %v5615_v13, 6 }
 0x17d   :  { %7331 = vst [vmem:[#allocation54_spill] sm:$0xff] %v5617_v7  ;;  %v1260_v34 = vmul.f32 %v550_v45, %v7332_v17  ;;  %v1505_v7 = vadd.f32 %v1504_v19, %v1503_v32  ;;  %v1517_v28 = vadd.f32 %v1516_v53, %v1515_v59  ;;  %v1540_v18 = vadd.f32 %v1539_v23, %v1538_v10 }
 0x17e   :  { %v1524_v22 = vadd.f32 %v1523_v60, %v1522_v29  ;;  %v1532_v3 = vrot.slane %v1531_v11, 1  ;;  %v1553_v49 = vrot.slane %v1552_v1, 1  ;;  %v1547_v52 = vadd.f32 %v1546_v55, %v1545_v2 }
 0x17f   :  { %v1569_v8 = vsel %vm1358_vm1, %v1260_v34, 0.0  ;;  %v1560_v26 = vrot.slane %v1559_v46, 1  ;;  %v1566_v48 = vadd.f32 %v1565_v44, %v1564_v27  ;;  %v7333_v0 = vunpack.c.l.bf16 %v5544_v24 }
 0x180   :  { %v557_v31 = vpop.permute.xlu0 %556  ;;  %v1570_v9 = vrot.slane %v1569_v8, 4  ;;  %v2609_v43 = vmul.f32 %v7334_v16, %v1477_v42  ;;  %v2615_v13 = vmul.f32 %v5366_v14, %v1498_v33  ;;  %v1512_v32 = vadd.f32 %v1511_v54, %v1510_v58 }
 0x181   :  { %2302 = vadd.xlane.f32.xlu0 %v5570_v50  ;;  %v1261_v61 = vmul.f32 %v557_v31, %v7333_v0  ;;  %v2617_v29 = vmul.f32 %v5368_v56, %v1505_v7  ;;  %v1518_v10 = vrot.slane %v1517_v28, 1  ;;  %v1525_v19 = vrot.slane %v1524_v22, 1 }
 0x182   :  { %v1571_v59 = vadd.f32 %v1570_v9, %v1569_v8  ;;  %v1533_v60 = vadd.f32 %v1532_v3, %v1531_v11  ;;  %v1554_v50 = vadd.f32 %v1553_v49, %v1552_v1  ;;  %v2627_v27 = vmul.f32 %v5355_v40, %v1540_v18 }
 0x183   :  { %v1576_v53 = vsel %vm1358_vm1, %v1261_v61, 0.0  ;;  %v2629_v24 = vmul.f32 %v5360_v57, %v1547_v52  ;;  %v1561_v23 = vadd.f32 %v1560_v26, %v1559_v46  ;;  %v1567_v17 = vrot.slane %v1566_v48, 1 }
 0x184   :  { %v1572_v2 = vrot.slane %v1571_v59, 2  ;;  %v1577_v45 = vrot.slane %v1576_v53, 4  ;;  %v7335_v14 = vrot.slane %v5399_v25, %v4969_v35  ;;  %v3031_v58 = vrot.slane %v2615_v13, 5 }
 0x185   :  { %v2619_v56 = vmul.f32 %v5384_v15, %v1512_v32  ;;  %v3033_v34 = vrot.slane %v2617_v29, 4  ;;  %v1519_v11 = vadd.f32 %v1518_v10, %v1517_v28  ;;  %v1526_v1 = vadd.f32 %v1525_v19, %v1524_v22 }
 0x186   :  { %710 = vbcast.lane.b32.xlu1 %v7335_v14, 256  ;;  %v1573_v8 = vadd.f32 %v1572_v2, %v1571_v59  ;;  %v1578_v7 = vadd.f32 %v1577_v45, %v1576_v53  ;;  %v3028_v55 = vsel %vm2993_vm2, %v3027_v36, %v2609_v43  ;;  %v2625_v40 = vmul.f32 %v5371_v6, %v1533_v60  ;;  %v7340_v60 = vld [vmem:[#allocation21_spill] sm:$0xff]  ;;  %v95_v2 = vld [vmem:[#allocation2 + $0x42] sm:$0x3] }
 0x187   :  { %v2631_v57 = vmul.f32 %v5374_v63, %v1554_v50  ;;  %v3041_v42 = vrot.slane %v2627_v27, 7  ;;  %v2633_v33 = vmul.f32 %v5391_v47, %v1561_v23  ;;  %v1568_v54 = vadd.f32 %v1567_v17, %v1566_v48  ;;  %v7342_v17 = vld [vmem:[#allocation16_spill] sm:$0xff] }
 0x188   :  { %v1574_v46 = vrot.slane %v1573_v8, 1  ;;  %v1579_v44 = vrot.slane %v1578_v7, 2  ;;  %v7336_v15 = vrot.slane %v5600_v51, %v4938_v20  ;;  %v764_v28 = vrot.slane %v5433_v5, %v4969_v35 }
 0x189   :  { %v3043_v22 = vrot.slane %v2629_v24, 6  ;;  %v3030_v36 = vsel %vm2996_vm3, %v3029_v37, %v3028_v55  ;;  %v3035_v6 = vrot.slane %v2619_v56, 3  ;;  %v2621_v63 = vmul.f32 %v5464_v38, %v1519_v11  ;;  %v96_v11 = vld [vmem:[#allocation2 + $0x44] sm:$0x3] }
 0x18a   :  { %794 = vbcast.lane.b32.xlu1 %v7336_v15, 256  ;;  %v1580_v31 = vadd.f32 %v1579_v44, %v1578_v7  ;;  %v1575_v18 = vadd.f32 %v1574_v46, %v1573_v8  ;;  %v2623_v3 = vmul.f32 %v5470_v62, %v1526_v1  ;;  %v3032_v47 = vsel %vm2999_vm4, %v3031_v58, %v3030_v36  ;;  %v94_v58 = vld [vmem:[#allocation2 + $0x40] sm:$0x3]  ;;  %v103_v1 = vld [vmem:[#allocation2 + $0x52] sm:$0x3] }
 0x18b   :  { %v3045_v49 = vrot.slane %v2631_v57, 5  ;;  %v3034_v52 = vsel %vm3002_vm5, %v3033_v34, %v3032_v47  ;;  %v3042_v26 = vsel %vm2993_vm2, %v3041_v42, %v2625_v40  ;;  %v3047_v48 = vrot.slane %v2633_v33, 4  ;;  %v104_v57 = vld [vmem:[#allocation2 + $0x54] sm:$0x3]  ;;  %v5681_v46 = vld [vmem:[#allocation2 + $0x46] sm:$0x3] }
 0x18c   :  { %v1581_v9 = vrot.slane %v1580_v31, 1  ;;  %v2635_v0 = vmul.f32 %v5394_v21, %v1568_v54  ;;  %v3037_v61 = vrot.slane %v2621_v63, 2  ;;  %v3039_v16 = vrot.slane %v2623_v3, 1  ;;  %v5687_v42 = vld [vmem:[%s7194_s1 + $0x48] sm:$0xff] }
 0x18d   :  { %v7337_v37 = vrot.slane %v5399_v25, %v4976_v39  ;;  %v3036_v62 = vsel %vm3005_vm6, %v3035_v6, %v3034_v52  ;;  %v7338_v43 = vrot.slane %v5377_v4, 6  ;;  %v2390_v13 = vrot.slane %v5407_v12, 6 }
 0x18e   :  { %v1582_v38 = vadd.f32 %v1581_v9, %v1580_v31  ;;  %v3038_v32 = vsel %vm3008_vm7, %v3037_v61, %v3036_v62  ;;  %v2637_v59 = vmul.f32 %v5482_v30, %v1575_v18  ;;  %v3044_v21 = vsel %vm2996_vm3, %v3043_v22, %v3042_v26  ;;  %v7341_v30 = vld [vmem:[#allocation13_spill] sm:$0xff]  ;;  %v5692_v22 = vld [vmem:[#allocation2 + $0x50] sm:$0x3]  ;;  %v5702_v26 = vld [vmem:[#allocation2 + $0x56] sm:$0x3] }
 0x18f   :  { %717 = vbcast.lane.b32.xlu1 %v7337_v37, 256  ;;  %4557 = vrcp.f32 %v7338_v43  ;;  %v7339_v29 = vrot.slane %v5377_v4, 7  ;;  %v3040_v10 = vsel %vm3011_vm8, %v3039_v16, %v3038_v32  ;;  %v3046_v53 = vsel %vm2999_vm4, %v3045_v49, %v3044_v21  ;;  %v7343_v31 = vld [vmem:[#allocation17_spill] sm:$0xff]  ;;  %v7347_v43 = vld [vmem:[#allocation14_spill] sm:$0xff] }
 0x190   :  { %v2639_v19 = vmul.f32 %v5487_v41, %v1582_v38  ;;  %v2392_v50 = vrot.slane %v7340_v60, 1  ;;  %4112 = vmatprep.mubr.f32.mxu0 %v3040_v10  ;;  %v3048_v45 = vsel %vm3002_vm5, %v3047_v48, %v3046_v53  ;;  %v3049_v27 = vrot.slane %v2635_v0, 3  ;;  %v7345_v16 = vld [vmem:[#allocation25_spill] sm:$0xff]  ;;  %v7346_v38 = vld [vmem:[#allocation52_spill] sm:$0xff] }
 0x191   :  { %4559 = vrcp.f32 %v7339_v29  ;;  %v799_v24 = vrot.slane %v5600_v51, %v7341_v30  ;;  %v2393_v4 = vrot.slane %v7340_v60, 2  ;;  %v3051_v23 = vrot.slane %v2637_v59, 2  ;;  %v5715_v32 = vld [vmem:[#allocation2 + $0x4a] sm:$0x3]  ;;  %v7348_v59 = vld [vmem:[#allocation50_spill] sm:$0xff] }
 0x192   :  { %v757_v14 = vrot.slane %v5433_v5, %v7342_v17  ;;  %4561 = vrcp.f32 %v7340_v60  ;;  %v2395_v41 = vrot.slane %v7340_v60, 4  ;;  %v3050_v56 = vsel %vm3005_vm6, %v3049_v27, %v3048_v45 }
 0x193   :  { %766 = vbcast.lane.b32.xlu1 %v764_v28, 256  ;;  %v3053_v8 = vrot.slane %v2639_v19, 1  ;;  %v2394_v7 = vrot.slane %v7340_v60, 3  ;;  %4563 = vrcp.f32 %v2390_v13  ;;  %v223_v34 = vunpack.c.l.bf16 %v95_v2  ;;  %v98_v28 = vld [vmem:[#allocation2 + $0x48] sm:$0x3]  ;;  %v7350_v2 = vld [vmem:[#allocation15_spill] sm:$0xff] }
 0x194   :  { %v3052_v55 = vsel %vm3008_vm7, %v3051_v23, %v3050_v56  ;;  %4565 = vrcp.f32 %v2392_v50  ;;  %v2396_v40 = vrot.slane %v7340_v60, 5  ;;  %v848_v33 = vrot.slane %v5687_v42, %v4938_v20 }
 0x195   :  { %v3054_v44 = vsel %vm3011_vm8, %v3053_v8, %v3052_v55  ;;  %4567 = vrcp.f32 %v2393_v4  ;;  %v2391_v54 = vrot.slane %v5407_v12, 7  ;;  %v222_v15 = vunpack.c.l.bf16 %v94_v58  ;;  %v7344_v12 = vld [vmem:[#allocation36_spill] sm:$0xff]  ;;  %v7352_v4 = vld [vmem:[#allocation53_spill] sm:$0xff]  ;;  %v592_v58 = vpop.permute.xlu0 %591 }
 0x196   :  { %4113 = vmatmul.mubr.f32.gmra.mrb[2].mxu0 %v3054_v44  ;;  %v722_v36 = vrot.slane %v5399_v25, %v7343_v31  ;;  %4569 = vrcp.f32 %v2395_v41  ;;  %v2397_v6 = vrot.slane %v7340_v60, 6  ;;  %v224_v18 = vunpack.c.l.bf16 %v96_v11 }
 0x197   :  { %801 = vbcast.lane.b32.xlu1 %v799_v24, 256  ;;  %759 = vbcast.lane.b32.xlu0 %v757_v14, 256  ;;  %v231_v63 = vunpack.c.l.bf16 %v103_v1  ;;  %4571 = vrcp.f32 %v2394_v7  ;;  %v2398_v3 = vrot.slane %v7340_v60, 7  ;;  %v1263_v49 = vmul.f32 %v7344_v12, %v223_v34  ;;  %v585_v60 = vpop.permute.xlu1 %584  ;;  %v7353_v14 = vld [vmem:[#allocation54_spill] sm:$0xff]  ;;  %v5737_v7 = vld [vmem:[#allocation2 + $0x62] sm:$0x3] }
 0x198   :  { %v232_v9 = vunpack.c.l.bf16 %v104_v57  ;;  %v225_v52 = vunpack.c.l.bf16 %v5681_v46  ;;  %4573 = vrcp.f32 %v2396_v40  ;;  %v226_v25 = vunpack.c.l.bf16 %v98_v28 }
 0x199   :  { %v5698_v47 = vpop.eup %4557  ;;  %v230_v0 = vunpack.c.l.bf16 %v5692_v22  ;;  %v771_v61 = vrot.slane %v5433_v5, %v4976_v39  ;;  %4575 = vrcp.f32 %v2391_v54  ;;  %v5710_v37 = vmax.f32 %v7345_v16, 1.0 }
 0x19a   :  { %v1262_v62 = vmul.f32 %v7346_v38, %v222_v15  ;;  %v785_v13 = vrot.slane %v5600_v51, %v7347_v43  ;;  %4577 = vrcp.f32 %v2397_v6  ;;  %v1264_v21 = vmul.f32 %v7348_v59, %v224_v18 }
 0x19b   :  { %v5704_v48 = vpop.eup %4559  ;;  %850 = vbcast.lane.b32.xlu1 %v848_v33, 256  ;;  %724 = vbcast.lane.b32.xlu0 %v722_v36, 256  ;;  %v855_v10 = vrot.slane %v5687_v42, %v7341_v30  ;;  %4579 = vrcp.f32 %v2398_v3  ;;  %v1590_v53 = vsel %vm1358_vm1, %v1263_v49, 0.0  ;;  %v813_v50 = vrot.slane %v5600_v51, %v7342_v17 }
 0x19c   :  { %v5721_v19 = vpop.eup %4561  ;;  %v806_v45 = vrot.slane %v5600_v51, %v7350_v2  ;;  %v862_v27 = vrot.slane %v5687_v42, %v7350_v2  ;;  %v1271_v23 = vmul.f32 %v7352_v4, %v231_v63  ;;  %v1272_v41 = vmul.f32 %v7353_v14, %v232_v9  ;;  %v620_v14 = vpop.permute.xlu0 %619 }
 0x19d   :  { %7349 = vst [vmem:[#allocation23_spill] sm:$0xff] %v5721_v19  ;;  %v5730_v24 = vpop.eup %4563  ;;  %v778_v56 = vrot.slane %v5433_v5, %v7343_v31  ;;  %v1583_v11 = vsel %vm1358_vm1, %v1262_v62, 0.0  ;;  %v869_v1 = vrot.slane %v5687_v42, %v7342_v17  ;;  %v841_v55 = vrot.slane %v5687_v42, %v7347_v43  ;;  %v5770_v62 = vld [vmem:[#allocation2 + $0x4c] sm:$0x3] }
 0x19e   :  { %7351 = vst [vmem:[#allocation21_spill] sm:$0xff] %v5730_v24  ;;  %v5739_v34 = vpop.eup %4565  ;;  %v2399_v40 = vrot.slane %v5710_v37, 1  ;;  %v1591_v5 = vrot.slane %v1590_v53, 4  ;;  %v1597_v46 = vsel %vm1358_vm1, %v1264_v21, 0.0  ;;  %v1265_v44 = vmul.f32 %v585_v60, %v225_v52 }
 0x19f   :  { %773 = vbcast.lane.b32.xlu1 %v771_v61, 256  ;;  %787 = vbcast.lane.b32.xlu0 %v785_v13, 256  ;;  %v5747_v57 = vpop.eup %4567  ;;  %v2400_v33 = vrot.slane %v5710_v37, 2  ;;  %v1266_v15 = vmul.f32 %v592_v58, %v226_v25  ;;  %v2401_v36 = vrot.slane %v5710_v37, 3  ;;  %v2402_v6 = vrot.slane %v5710_v37, 4 }
 0x1a0   :  { %v5751_v54 = vpop.eup %4569  ;;  %v1584_v63 = vrot.slane %v1583_v11, 4  ;;  %v1646_v3 = vsel %vm1358_vm1, %v1271_v23, 0.0  ;;  %v1653_v12 = vsel %vm1358_vm1, %v1272_v41, 0.0  ;;  %4581 = vrcp.f32 %v5710_v37 }
 0x1a1   :  { %7354 = vst [vmem:[#allocation13_spill] sm:$0xff] %v5751_v54  ;;  %v5756_v18 = vpop.eup %4571  ;;  %v1598_v9 = vrot.slane %v1597_v46, 4  ;;  %v820_v25 = vrot.slane %v5600_v51, %v4969_v35  ;;  %4583 = vrcp.f32 %v2399_v40  ;;  %v1592_v16 = vadd.f32 %v1591_v5, %v1590_v53  ;;  %v5782_v53 = vld [vmem:[%s7194_s1 + $0x50] sm:$0xff] }
 0x1a2   :  { %7355 = vst [vmem:[#allocation16_spill] sm:$0xff] %v5756_v18  ;;  %v5761_v49 = vpop.eup %4573  ;;  %v1604_v38 = vsel %vm1358_vm1, %v1265_v44, 0.0  ;;  %4585 = vrcp.f32 %v2400_v33  ;;  %v2403_v13 = vrot.slane %v5710_v37, 5  ;;  %v1647_v21 = vrot.slane %v1646_v3, 4  ;;  %v5788_v33 = vld [vmem:[#allocation2 + $0x58] sm:$0x3] }
 0x1a3   :  { %808 = vbcast.lane.b32.xlu1 %v806_v45, 256  ;;  %7356 = vst [vmem:[#allocation17_spill] sm:$0xff] %v5761_v49  ;;  %857 = vbcast.lane.b32.xlu0 %v855_v10, 256  ;;  %v5767_v61 = vpop.eup %4575  ;;  %v1654_v10 = vrot.slane %v1653_v12, 4  ;;  %v1611_v60 = vsel %vm1358_vm1, %v1266_v15, 0.0  ;;  %v2404_v45 = vrot.slane %v5710_v37, 6  ;;  %v1585_v23 = vadd.f32 %v1584_v63, %v1583_v11 }
 0x1a4   :  { %7357 = vst [vmem:[#allocation36_spill] sm:$0xff] %v5767_v61  ;;  %v5773_v59 = vpop.eup %4577  ;;  %4587 = vrcp.f32 %v2401_v36  ;;  %v2405_v58 = vrot.slane %v5710_v37, 7  ;;  %v1599_v40 = vadd.f32 %v1598_v9, %v1597_v46  ;;  %v1605_v5 = vrot.slane %v1604_v38, 4  ;;  %v5790_v11 = vld [vmem:[#allocation2 + $0x5a] sm:$0x3] }
 0x1a5   :  { %7358 = vst [vmem:[#allocation25_spill] sm:$0xff] %v5773_v59  ;;  %v5777_v4 = vpop.eup %4579  ;;  %4589 = vrcp.f32 %v2402_v6  ;;  %v1612_v15 = vrot.slane %v1611_v60, 4  ;;  %v904_v63 = vrot.slane %v5782_v53, %v4938_v20  ;;  %v1648_v28 = vadd.f32 %v1647_v21, %v1646_v3  ;;  %v5796_v46 = vld [vmem:[#allocation2 + $0x4e] sm:$0x3]  ;;  %v5809_v3 = vld [vmem:[#allocation2 + $0x60] sm:$0x3] }
 0x1a6   :  { %7359 = vst [vmem:[#allocation52_spill] sm:$0xff] %v5777_v4  ;;  %4591 = vrcp.f32 %v2403_v13  ;;  %v1655_v36 = vadd.f32 %v1654_v10, %v1653_v12  ;;  %v1270_v37 = vmul.f32 %v620_v14, %v230_v0  ;;  %v1586_v9 = vrot.slane %v1585_v23, 2  ;;  %v7363_v21 = vld [vmem:[#allocation32_spill] sm:$0xff] }
 0x1a7   :  { %780 = vbcast.lane.b32.xlu1 %v778_v56, 256  ;;  %815 = vbcast.lane.b32.xlu0 %v813_v50, 256  ;;  %v1593_v56 = vrot.slane %v1592_v16, 2  ;;  %v5798_v50 = vld [vmem:[#allocation2 + $0x64] sm:$0x3]  ;;  %4593 = vrcp.f32 %v2404_v45  ;;  %v1600_v41 = vrot.slane %v1599_v40, 2  ;;  %v1606_v8 = vadd.f32 %v1605_v5, %v1604_v38 }
 0x1a8   :  { %4595 = vrcp.f32 %v2405_v58  ;;  %v1613_v13 = vadd.f32 %v1612_v15, %v1611_v60  ;;  %v1649_v45 = vrot.slane %v1648_v28, 2  ;;  %v1639_v14 = vsel %vm1358_vm1, %v1270_v37, 0.0  ;;  %v5820_v5 = vld [vmem:[#allocation2 + $0x72] sm:$0x3]  ;;  %v5834_v37 = vld [vmem:[#allocation2 + $0x74] sm:$0x3] }
 0x1a9   :  { %v1594_v12 = vadd.f32 %v1593_v56, %v1592_v16  ;;  %v1587_v6 = vadd.f32 %v1586_v9, %v1585_v23  ;;  %v5827_v16 = vld [vmem:[%s7194_s1 + $0x58] sm:$0xff]  ;;  %v5839_v23 = vmax.f32 %v7363_v21, 1.0  ;;  %v1607_v9 = vrot.slane %v1606_v8, 2  ;;  %v5851_v21 = vld [vmem:[#allocation2 + $0x66] sm:$0x3] }
 0x1aa   :  { %v5836_v38 = vld [vmem:[#allocation2 + $0x5c] sm:$0x3]  ;;  %v5846_v56 = vld [vmem:[#allocation2 + $0x5e] sm:$0x3]  ;;  %v1614_v60 = vrot.slane %v1613_v13, 2  ;;  %v1640_v0 = vrot.slane %v1639_v14, 4  ;;  %v7370_v58 = vunpack.c.l.bf16 %v5702_v26  ;;  %v7373_v26 = vrot.slane %v5782_v53, %v7341_v30 }
 0x1ab   :  { %843 = vbcast.lane.b32.xlu1 %v841_v55, 256  ;;  %864 = vbcast.lane.b32.xlu0 %v862_v27, 256  ;;  %v5811_v55 = vpop.eup %4581  ;;  %v1656_v27 = vrot.slane %v1655_v36, 2  ;;  %v1595_v15 = vrot.slane %v1594_v12, 1  ;;  %v1588_v49 = vrot.slane %v1587_v6, 1  ;;  %4597 = vrcp.f32 %v5839_v23 }
 0x1ac   :  { %7360 = vst [vmem:[#allocation14_spill] sm:$0xff] %v5811_v55  ;;  %v5815_v10 = vpop.eup %4583  ;;  %v1641_v61 = vadd.f32 %v1640_v0, %v1639_v14 }
 0x1ad   :  { %7361 = vst [vmem:[#allocation50_spill] sm:$0xff] %v5815_v10  ;;  %v5822_v44 = vpop.eup %4585  ;;  %v1657_v52 = vadd.f32 %v1656_v27, %v1655_v36  ;;  %v641_v27 = vpop.permute.xlu0 %640  ;;  %v1596_v29 = vadd.f32 %v1595_v15, %v1594_v12  ;;  %v7372_v15 = vunpack.c.l.bf16 %v5715_v32 }
 0x1ae   :  { %7362 = vst [vmem:[#allocation15_spill] sm:$0xff] %v5822_v44  ;;  %v5848_v22 = vpop.eup %4587  ;;  %v1273_v18 = vmul.f32 %v641_v27, %v7370_v58 }
 0x1af   :  { %822 = vbcast.lane.b32.xlu1 %v820_v25, 256  ;;  %v1601_v25 = vadd.f32 %v1600_v41, %v1599_v40  ;;  %871 = vbcast.lane.b32.xlu0 %v869_v1, 256  ;;  %7364 = vst [vmem:[#allocation53_spill] sm:$0xff] %v5848_v22  ;;  %v5853_v41 = vpop.eup %4589  ;;  %v1650_v40 = vadd.f32 %v1649_v45, %v1648_v28 }
 0x1b0   :  { %7365 = vst [vmem:[#allocation54_spill] sm:$0xff] %v5853_v41  ;;  %v5860_v59 = vpop.eup %4591  ;;  %v1608_v45 = vadd.f32 %v1607_v9, %v1606_v8  ;;  %v7368_v1 = vrot.slane %v5600_v51, %v4976_v39  ;;  %v1615_v41 = vadd.f32 %v1614_v60, %v1613_v13  ;;  %v1658_v8 = vrot.slane %v1657_v52, 1  ;;  %v5889_v13 = vld [vmem:[#allocation2 + $0x70] sm:$0x3] }
 0x1b1   :  { %v5855_v4 = vpop.xlane.xlu1 %2293  ;;  %7366 = vst [vmem:[#allocation32_spill] sm:$0xff] %v5860_v59  ;;  %v5866_v28 = vpop.eup %4593  ;;  %v1602_v36 = vrot.slane %v1601_v25, 1  ;;  %v5872_v59 = vld [vmem:[#allocation2 + $0x68] sm:$0x3]  ;;  %v1651_v22 = vrot.slane %v1650_v40, 1  ;;  %v1660_v0 = vsel %vm1358_vm1, %v1273_v18, 0.0 }
 0x1b2   :  { %7367 = vst [vmem:[#allocation55_spill] sm:$0xff] %v5866_v28  ;;  %v5875_v55 = vpop.eup %4595  ;;  %v1609_v60 = vrot.slane %v1608_v45, 1  ;;  %v1616_v27 = vrot.slane %v1615_v41, 1 }
 0x1b3   :  { %906 = vbcast.lane.b32.xlu1 %v904_v63, 256  ;;  %829 = vbcast.lane.b32.xlu0 %v7368_v1, 256  ;;  %7369 = vst [vmem:[#allocation56_spill] sm:$0xff] %v5875_v55  ;;  %v1589_v1 = vadd.f32 %v1588_v49, %v1587_v6  ;;  %v7371_v63 = vrot.slane %v5687_v42, %v4969_v35  ;;  %v7374_v6 = vld [vmem:[#allocation12_spill] sm:$0xff]  ;;  %v7376_v49 = vunpack.c.l.bf16 %v5737_v7 }
 0x1b4   :  { %v1603_v14 = vadd.f32 %v1602_v36, %v1601_v25  ;;  %v2643_v58 = vmul.f32 %v7374_v6, %v1596_v29  ;;  %v1652_v24 = vadd.f32 %v1651_v22, %v1650_v40  ;;  %v1659_v25 = vadd.f32 %v1658_v8, %v1657_v52  ;;  %v7378_v22 = vld [vmem:[#allocation18_spill] sm:$0xff]  ;;  %v5921_v7 = vld [vmem:[%s7194_s1 + $0x60] sm:$0xff] }
 0x1b5   :  { %v599_v9 = vpop.permute.xlu1 %598  ;;  %v7377_v6 = vrot.slane %v5827_v16, %v4938_v20  ;;  %v1610_v8 = vadd.f32 %v1609_v60, %v1608_v45  ;;  %v7380_v45 = vld [vmem:[#allocation19_spill] sm:$0xff] }
 0x1b6   :  { %v1267_v28 = vmul.f32 %v599_v9, %v7372_v15  ;;  %v7375_v15 = vld [vmem:[#allocation20_spill] sm:$0xff]  ;;  %v2645_v40 = vmul.f32 %v7378_v22, %v1603_v14  ;;  %v5927_v60 = vmul.f32 %v7380_v45, %v1652_v24 }
 0x1b7   :  { %878 = vbcast.lane.b32.xlu1 %v7371_v63, 256  ;;  %913 = vbcast.lane.b32.xlu0 %v7373_v26, 256  ;;  %v1642_v63 = vrot.slane %v1641_v61, 2  ;;  %v2641_v26 = vmul.f32 %v7375_v15, %v1589_v1  ;;  %v7379_v1 = vrot.slane %v5600_v51, %v7343_v31  ;;  %v1661_v51 = vrot.slane %v1660_v0, 4 }
 0x1b8   :  { %v1618_v32 = vsel %vm1358_vm1, %v1267_v28, 0.0  ;;  %v7381_v28 = vld [vmem:[#allocation22_spill] sm:$0xff] }
 0x1b9   :  { %v683_v36 = vpop.permute.xlu1 %682  ;;  %v1643_v15 = vadd.f32 %v1642_v63, %v1641_v61  ;;  %v1619_v12 = vrot.slane %v1618_v32, 4  ;;  %v7383_v61 = vrot.slane %v5687_v42, %v4976_v39  ;;  %v3057_v63 = vrot.slane %v2645_v40, 6 }
 0x1ba   :  { %v1279_v29 = vmul.f32 %v683_v36, %v7376_v49  ;;  %v3055_v49 = vrot.slane %v2643_v58, 7  ;;  %v1617_v36 = vadd.f32 %v1616_v27, %v1615_v41  ;;  %v7382_v58 = vunpack.c.l.bf16 %v5770_v62  ;;  %v5942_v27 = vpop.eup %4597 }
 0x1bb   :  { %962 = vbcast.lane.b32.xlu1 %v7377_v6, 256  ;;  %836 = vbcast.lane.b32.xlu0 %v7379_v1, 256  ;;  %v5930_v6 = vmul.f32 %v7381_v28, %v1659_v25  ;;  %7384 = vst [vmem:[#allocation12_spill] sm:$0xff] %v5942_v27  ;;  %v7385_v25 = vld [vmem:[#allocation29_spill] sm:$0xff]  ;;  %v1644_v28 = vrot.slane %v1643_v15, 1  ;;  %v1620_v18 = vadd.f32 %v1619_v12, %v1618_v32 }
 0x1bc   :  { %v1702_v14 = vsel %vm1358_vm1, %v1279_v29, 0.0  ;;  %v3056_v52 = vsel %vm2993_vm2, %v3055_v49, %v2641_v26  ;;  %v2647_v29 = vmul.f32 %v7385_v25, %v1610_v8  ;;  %v7386_v26 = vrot.slane %v5782_v53, %v7347_v43  ;;  %v5972_v12 = vld [vmem:[%s7194_s1 + $0x68] sm:$0xff] }
 0x1bd   :  { %v1703_v22 = vrot.slane %v1702_v14, 4  ;;  %v5932_v1 = vpop.xlane.xlu0 %2296  ;;  %v606_v9 = vpop.permute.xlu1 %605 }
 0x1be   :  { %v1268_v41 = vmul.f32 %v606_v9, %v7382_v58  ;;  %v7387_v9 = vld [vmem:[#allocation30_spill] sm:$0xff]  ;;  %v7389_v58 = vunpack.c.l.bf16 %v5790_v11  ;;  %v3059_v40 = vrot.slane %v2647_v29, 5  ;;  %v7395_v11 = vrot.slane %v5782_v53, %v7342_v17 }
 0x1bf   :  { %885 = vbcast.lane.b32.xlu1 %v7383_v61, 256  ;;  %v1704_v45 = vadd.f32 %v1703_v22, %v1702_v14  ;;  %899 = vbcast.lane.b32.xlu0 %v7386_v26, 256  ;;  %v2649_v49 = vmul.f32 %v7387_v9, %v1617_v36  ;;  %v1662_v14 = vadd.f32 %v1661_v51, %v1660_v0  ;;  %v7388_v36 = vunpack.c.l.bf16 %v5788_v33 }
 0x1c0   :  { %v3058_v26 = vsel %vm2996_vm3, %v3057_v63, %v3056_v52  ;;  %v1625_v62 = vsel %vm1358_vm1, %v1268_v41, 0.0  ;;  %v7390_v61 = vrot.slane %v5782_v53, %v7350_v2  ;;  %v7391_v0 = vrot.slane %v5827_v16, %v7341_v30 }
 0x1c1   :  { %v648_v22 = vpop.permute.xlu0 %647  ;;  %v655_v25 = vpop.permute.xlu1 %654  ;;  %v1705_v8 = vrot.slane %v1704_v45, 2  ;;  %v3061_v32 = vrot.slane %v2649_v49, 4  ;;  %v1645_v52 = vadd.f32 %v1644_v28, %v1643_v15  ;;  %v1663_v63 = vrot.slane %v1662_v14, 2 }
 0x1c2   :  { %v1274_v9 = vmul.f32 %v648_v22, %v7388_v36  ;;  %v1275_v24 = vmul.f32 %v655_v25, %v7389_v58  ;;  %v1626_v29 = vrot.slane %v1625_v62, 4  ;;  %v1621_v36 = vrot.slane %v1620_v18, 2 }
 0x1c3   :  { %920 = vbcast.lane.b32.xlu1 %v7390_v61, 256  ;;  %969 = vbcast.lane.b32.xlu0 %v7391_v0, 256  ;;  %v7392_v33 = vunpack.c.l.bf16 %v5796_v46  ;;  %v7393_v49 = vunpack.c.l.bf16 %v5798_v50  ;;  %v7394_v28 = vrot.slane %v5687_v42, %v7343_v31  ;;  %v3060_v25 = vsel %vm2999_vm4, %v3059_v40, %v3058_v26 }
 0x1c4   :  { %v1667_v51 = vsel %vm1358_vm1, %v1274_v9, 0.0  ;;  %v1674_v41 = vsel %vm1358_vm1, %v1275_v24, 0.0  ;;  %v1706_v24 = vadd.f32 %v1705_v8, %v1704_v45  ;;  %v1664_v8 = vadd.f32 %v1663_v63, %v1662_v14 }
 0x1c5   :  { %v1668_v58 = vrot.slane %v1667_v51, 4  ;;  %v613_v61 = vpop.permute.xlu0 %612  ;;  %v690_v22 = vpop.permute.xlu1 %689  ;;  %v1675_v0 = vrot.slane %v1674_v41, 4  ;;  %v7397_v26 = vunpack.c.l.bf16 %v5809_v3 }
 0x1c6   :  { %v1269_v55 = vmul.f32 %v613_v61, %v7392_v33  ;;  %v1280_v15 = vmul.f32 %v690_v22, %v7393_v49  ;;  %v7396_v61 = vld [vmem:[#allocation31_spill] sm:$0xff]  ;;  %v1622_v49 = vadd.f32 %v1621_v36, %v1620_v18  ;;  %v6011_v18 = vsel %vm3002_vm5, %v3061_v32, %v3060_v25 }
 0x1c7   :  { %892 = vbcast.lane.b32.xlu1 %v7394_v28, 256  ;;  %v1669_v9 = vadd.f32 %v1668_v58, %v1667_v51  ;;  %927 = vbcast.lane.b32.xlu0 %v7395_v11, 256  ;;  %v1676_v46 = vadd.f32 %v1675_v0, %v1674_v41  ;;  %v2657_v45 = vmul.f32 %v7396_v61, %v1645_v52  ;;  %v7398_v41 = vunpack.c.l.bf16 %v5820_v5 }
 0x1c8   :  { %v1632_v33 = vsel %vm1358_vm1, %v1269_v55, 0.0  ;;  %v1709_v50 = vsel %vm1358_vm1, %v1280_v15, 0.0  ;;  %v1627_v51 = vadd.f32 %v1626_v29, %v1625_v62  ;;  %v7399_v0 = vrot.slane %v5827_v16, %v7347_v43 }
 0x1c9   :  { %v1633_v58 = vrot.slane %v1632_v33, 4  ;;  %v676_v22 = vpop.permute.xlu0 %675  ;;  %v739_v11 = vpop.permute.xlu1 %738  ;;  %v1710_v40 = vrot.slane %v1709_v50, 4  ;;  %v1707_v15 = vrot.slane %v1706_v24, 1  ;;  %v1670_v27 = vrot.slane %v1669_v9, 2 }
 0x1ca   :  { %v1278_v28 = vmul.f32 %v676_v22, %v7397_v26  ;;  %v1287_v55 = vmul.f32 %v739_v11, %v7398_v41  ;;  %v7400_v62 = vrot.slane %v5827_v16, %v7350_v2  ;;  %v1677_v14 = vrot.slane %v1676_v46, 2 }
 0x1cb   :  { %955 = vbcast.lane.b32.xlu1 %v7399_v0, 256  ;;  %v1634_v52 = vadd.f32 %v1633_v58, %v1632_v33  ;;  %v1711_v3 = vadd.f32 %v1710_v40, %v1709_v50  ;;  %v1665_v29 = vrot.slane %v1664_v8, 1  ;;  %v1628_v36 = vrot.slane %v1627_v51, 2 }
 0x1cc   :  { %976 = vbcast.lane.b32.xlu0 %v7400_v62, 256  ;;  %v1695_v63 = vsel %vm1358_vm1, %v1278_v28, 0.0  ;;  %v1758_v5 = vsel %vm1358_vm1, %v1287_v55, 0.0  ;;  %v1623_v33 = vrot.slane %v1622_v49, 1  ;;  %v7401_v41 = vunpack.c.l.bf16 %v5834_v37 }
 0x1cd   :  { %v1635_v61 = vrot.slane %v1634_v52, 2  ;;  %v1696_v22 = vrot.slane %v1695_v63, 4  ;;  %v746_v11 = vpop.permute.xlu0 %745  ;;  %v662_v26 = vpop.permute.xlu1 %661  ;;  %v1759_v58 = vrot.slane %v1758_v5, 4  ;;  %v7402_v32 = vunpack.c.l.bf16 %v5836_v38 }
 0x1ce   :  { %v1288_v0 = vmul.f32 %v746_v11, %v7401_v41  ;;  %v7403_v50 = vrot.slane %v5782_v53, %v4969_v35  ;;  %v1708_v40 = vadd.f32 %v1707_v15, %v1706_v24  ;;  %v1712_v28 = vrot.slane %v1711_v3, 2 }
 0x1cf   :  { %v1276_v25 = vmul.f32 %v662_v26, %v7402_v32  ;;  %v1697_v55 = vadd.f32 %v1696_v22, %v1695_v63  ;;  %v7404_v62 = vrot.slane %v5827_v16, %v7342_v17  ;;  %v1671_v54 = vadd.f32 %v1670_v27, %v1669_v9 }
 0x1d0   :  { %934 = vbcast.lane.b32.xlu1 %v7403_v50, 256  ;;  %v1678_v37 = vadd.f32 %v1677_v14, %v1676_v46  ;;  %v1765_v11 = vsel %vm1358_vm1, %v1288_v0, 0.0  ;;  %v1666_v26 = vadd.f32 %v1665_v29, %v1664_v8  ;;  %v1629_v41 = vadd.f32 %v1628_v36, %v1627_v51  ;;  %v7407_v46 = vld [vmem:[#allocation26_spill] sm:$0xff] }
 0x1d1   :  { %983 = vbcast.lane.b32.xlu0 %v7404_v62, 256  ;;  %v1681_v38 = vsel %vm1358_vm1, %v1276_v25, 0.0  ;;  %v1636_v32 = vadd.f32 %v1635_v61, %v1634_v52  ;;  %v1698_v50 = vrot.slane %v1697_v55, 2  ;;  %v669_v24 = vpop.permute.xlu0 %668  ;;  %v1624_v15 = vadd.f32 %v1623_v33, %v1622_v49 }
 0x1d2   :  { %v1760_v63 = vadd.f32 %v1759_v58, %v1758_v5  ;;  %v1766_v22 = vrot.slane %v1765_v11, 4  ;;  %v1682_v44 = vrot.slane %v1681_v38, 4  ;;  %v7405_v62 = vrot.slane %v5921_v7, %v4938_v20 }
 0x1d3   :  { %v7406_v27 = vrot.slane %v5927_v60, 7  ;;  %v2675_v14 = vmul.f32 %v7407_v46, %v1708_v40  ;;  %v1713_v0 = vadd.f32 %v1712_v28, %v1711_v3  ;;  %v1699_v8 = vadd.f32 %v1698_v50, %v1697_v55  ;;  %v7411_v3 = vld [vmem:[#allocation33_spill] sm:$0xff] }
 0x1d4   :  { %1018 = vbcast.lane.b32.xlu1 %v7405_v62, 256  ;;  %v7408_v51 = vrot.slane %v5782_v53, %v4976_v39  ;;  %v1672_v49 = vrot.slane %v1671_v54, 1  ;;  %v1679_v52 = vrot.slane %v1678_v37, 1  ;;  %v1767_v5 = vadd.f32 %v1766_v22, %v1765_v11 }
 0x1d5   :  { %v3070_v9 = vsel %vm2993_vm2, %v7406_v27, %v2657_v45  ;;  %v1683_v29 = vadd.f32 %v1682_v44, %v1681_v38  ;;  %v1630_v36 = vrot.slane %v1629_v41, 1  ;;  %v1637_v61 = vrot.slane %v1636_v32, 1  ;;  %v6041_v25 = vpop.permute.xlu0 %703  ;;  %v7410_v45 = vld [vmem:[#allocation24_spill] sm:$0xff] }
 0x1d6   :  { %941 = vbcast.lane.b32.xlu0 %v7408_v51, 256  ;;  %v1700_v33 = vrot.slane %v1699_v8, 1  ;;  %v7409_v58 = vunpack.c.l.bf16 %v5846_v56  ;;  %v2663_v40 = vmul.f32 %v7410_v45, %v1666_v26  ;;  %v2651_v28 = vmul.f32 %v7411_v3, %v1624_v15  ;;  %v7414_v45 = vld [vmem:[#allocation28_spill] sm:$0xff] }
 0x1d7   :  { %v1761_v55 = vrot.slane %v1760_v63, 2  ;;  %v1684_v50 = vrot.slane %v1683_v29, 2  ;;  %v7412_v62 = vrot.slane %v5827_v16, %v4969_v35  ;;  %v1714_v11 = vrot.slane %v1713_v0, 1 }
 0x1d8   :  { %v1277_v60 = vmul.f32 %v669_v24, %v7409_v58  ;;  %v1701_v44 = vadd.f32 %v1700_v33, %v1699_v8  ;;  %v1768_v38 = vrot.slane %v1767_v5, 2  ;;  %v7413_v56 = vrot.slane %v5921_v7, %v7341_v30 }
 0x1d9   :  { %990 = vbcast.lane.b32.xlu1 %v7412_v62, 256  ;;  %v1673_v24 = vadd.f32 %v1672_v49, %v1671_v54  ;;  %v1680_v27 = vadd.f32 %v1679_v52, %v1678_v37  ;;  %v1685_v26 = vadd.f32 %v1684_v50, %v1683_v29  ;;  %v3083_v15 = vrot.slane %v2675_v14, 7  ;;  %v732_v42 = vpop.permute.xlu0 %731  ;;  %v7418_v52 = vld [vmem:[#allocation34_spill] sm:$0xff]  ;;  %v7419_v29 = vld [vmem:[#allocation27_spill] sm:$0xff] }
 0x1da   :  { %v1688_v22 = vsel %vm1358_vm1, %v1277_v60, 0.0  ;;  %1025 = vbcast.lane.b32.xlu0 %v7413_v56, 256  ;;  %v1631_v51 = vadd.f32 %v1630_v36, %v1629_v41  ;;  %v1638_v58 = vadd.f32 %v1637_v61, %v1636_v32  ;;  %v2673_v3 = vmul.f32 %v7414_v45, %v1701_v44 }
 0x1db   :  { %v1689_v46 = vrot.slane %v1688_v22, 4  ;;  %v3073_v62 = vrot.slane %v2663_v40, 5  ;;  %v1762_v10 = vadd.f32 %v1761_v55, %v1760_v63  ;;  %v1686_v8 = vrot.slane %v1685_v26, 1 }
 0x1dc   :  { %v7415_v60 = vrot.slane %v5972_v12, %v4938_v20  ;;  %v1715_v19 = vadd.f32 %v1714_v11, %v1713_v0  ;;  %v3084_v54 = vsel %vm2993_vm2, %v3083_v15, %v2673_v3  ;;  %v1769_v37 = vadd.f32 %v1768_v38, %v1767_v5  ;;  %v7420_v0 = vld [vmem:[#allocation43_spill] sm:$0xff]  ;;  %v7421_v11 = vld [vmem:[#allocation44_spill] sm:$0xff] }
 0x1dd   :  { %v1690_v33 = vadd.f32 %v1689_v46, %v1688_v22  ;;  %v7416_v49 = vunpack.c.l.bf16 %v5889_v13  ;;  %v7417_v41 = vrot.slane %v5782_v53, %v7343_v31  ;;  %v3063_v32 = vrot.slane %v2651_v28, 3  ;;  %v7424_v22 = vld [vmem:[#allocation35_spill] sm:$0xff] }
 0x1de   :  { %1074 = vbcast.lane.b32.xlu1 %v7415_v60, 256  ;;  %v2665_v63 = vmul.f32 %v7418_v52, %v1673_v24  ;;  %v2667_v36 = vmul.f32 %v7419_v29, %v1680_v27  ;;  %v1687_v40 = vadd.f32 %v1686_v8, %v1685_v26  ;;  %v2653_v50 = vmul.f32 %v7420_v0, %v1631_v51  ;;  %v7426_v8 = vld [vmem:[#allocation46_spill] sm:$0xff] }
 0x1df   :  { %v1286_v14 = vmul.f32 %v732_v42, %v7416_v49  ;;  %948 = vbcast.lane.b32.xlu0 %v7417_v41, 256  ;;  %v1691_v61 = vrot.slane %v1690_v33, 2  ;;  %v2655_v5 = vmul.f32 %v7421_v11, %v1638_v58  ;;  %v1763_v44 = vrot.slane %v1762_v10, 1  ;;  %v697_v58 = vpop.permute.xlu1 %696  ;;  %v121_v52 = vld [vmem:[#allocation2 + $0x76] sm:$0x3] }
 0x1e0   :  { %v7422_v38 = vrot.slane %v5930_v6, 6  ;;  %v7423_v28 = vrot.slane %v5827_v16, %v4976_v39  ;;  %v2677_v56 = vmul.f32 %v7424_v22, %v1715_v19  ;;  %v1770_v24 = vrot.slane %v1769_v37, 1 }
 0x1e1   :  { %v1751_v55 = vsel %vm1358_vm1, %v1286_v14, 0.0  ;;  %v1692_v13 = vadd.f32 %v1691_v61, %v1690_v33  ;;  %v3065_v27 = vrot.slane %v2653_v50, 2  ;;  %v3067_v26 = vrot.slane %v2655_v5, 1 }
 0x1e2   :  { %v1752_v42 = vrot.slane %v1751_v55, 4  ;;  %v3072_v53 = vsel %vm2996_vm3, %v7422_v38, %v3070_v9  ;;  %997 = vbcast.lane.b32.xlu1 %v7423_v28, 256  ;;  %v7425_v46 = vrot.slane %v5921_v7, %v7347_v43  ;;  %v3075_v15 = vrot.slane %v2665_v63, 4  ;;  %v7434_v28 = vld [vmem:[#allocation38_spill] sm:$0xff] }
 0x1e3   :  { %v1693_v51 = vrot.slane %v1692_v13, 1  ;;  %v3064_v6 = vsel %vm3005_vm6, %v3063_v32, %v6011_v18  ;;  %v3077_v9 = vrot.slane %v2667_v36, 3  ;;  %v2669_v33 = vmul.f32 %v7426_v8, %v1687_v40 }
 0x1e4   :  { %1011 = vbcast.lane.b32.xlu0 %v7425_v46, 256  ;;  %v1753_v45 = vadd.f32 %v1752_v42, %v1751_v55  ;;  %v3066_v3 = vsel %vm3008_vm7, %v3065_v27, %v3064_v6  ;;  %v3074_v19 = vsel %vm2999_vm4, %v3073_v62, %v3072_v53  ;;  %v1764_v60 = vadd.f32 %v1763_v44, %v1762_v10  ;;  %v7431_v55 = vld [vmem:[#allocation47_spill] sm:$0xff] }
 0x1e5   :  { %v1694_v49 = vadd.f32 %v1693_v51, %v1692_v13  ;;  %v3068_v41 = vsel %vm3011_vm8, %v3067_v26, %v3066_v3  ;;  %v7427_v63 = vrot.slane %v5921_v7, %v7350_v2  ;;  %v3085_v29 = vrot.slane %v2677_v56, 6  ;;  %v753_v56 = vpop.permute.xlu0 %752 }
 0x1e6   :  { %v1754_v14 = vrot.slane %v1753_v45, 2  ;;  %v1771_v61 = vadd.f32 %v1770_v24, %v1769_v37  ;;  %v7428_v18 = vunpack.c.l.bf16 %v5851_v21  ;;  %v7429_v36 = vunpack.c.l.bf16 %v5872_v59  ;;  %4115 = vmatprep.mubr.f32.mxu0 %v3068_v41 }
 0x1e7   :  { %1032 = vbcast.lane.b32.xlu1 %v7427_v63, 256  ;;  %v7430_v10 = vrot.slane %v5972_v12, %v7341_v30  ;;  %v2671_v0 = vmul.f32 %v7431_v55, %v1694_v49  ;;  %v3076_v50 = vsel %vm3002_vm5, %v3075_v15, %v3074_v19  ;;  %v3079_v11 = vrot.slane %v2669_v33, 2  ;;  %v7438_v19 = vld [vmem:[#allocation42_spill] sm:$0xff] }
 0x1e8   :  { %v1281_v32 = vmul.f32 %v697_v58, %v7428_v18  ;;  %v1282_v40 = vmul.f32 %v6041_v25, %v7429_v36  ;;  %v1755_v62 = vadd.f32 %v1754_v14, %v1753_v45  ;;  %v249_v5 = vunpack.c.l.bf16 %v121_v52  ;;  %v7432_v25 = vld [vmem:[#allocation37_spill] sm:$0xff] }
 0x1e9   :  { %1081 = vbcast.lane.b32.xlu0 %v7430_v10, 256  ;;  %v6097_v37 = vsel %vm2996_vm3, %v3085_v29, %v3084_v54  ;;  %v2409_v21 = vrot.slane %v5839_v23, 4  ;;  %v2408_v59 = vrot.slane %v5839_v23, 3  ;;  %v2691_v44 = vmul.f32 %v7432_v25, %v1764_v60  ;;  %v7436_v58 = vld [vmem:[#allocation41_spill] sm:$0xff]  ;;  %v6141_v10 = vld [vmem:[%s7194_s1 + $0x70] sm:$0xff] }
 0x1ea   :  { %v1756_v13 = vrot.slane %v1755_v62, 1  ;;  %v1086_v42 = vrot.slane %v5972_v12, %v7350_v2  ;;  %v7433_v38 = vrot.slane %v5827_v16, %v7343_v31  ;;  %v1065_v53 = vrot.slane %v5972_v12, %v7347_v43 }
 0x1eb   :  { %v2693_v54 = vmul.f32 %v7434_v28, %v1771_v61  ;;  %v1716_v22 = vsel %vm1358_vm1, %v1281_v32, 0.0  ;;  %v3078_v24 = vsel %vm3005_vm6, %v3077_v9, %v3076_v50  ;;  %v3081_v27 = vrot.slane %v2671_v0, 1 }
 0x1ec   :  { %1004 = vbcast.lane.b32.xlu1 %v7433_v38, 256  ;;  %v7435_v26 = vrot.slane %v5921_v7, %v7342_v17  ;;  %v1723_v46 = vsel %vm1358_vm1, %v1282_v40, 0.0  ;;  %v1757_v15 = vadd.f32 %v1756_v13, %v1755_v62  ;;  %v3080_v16 = vsel %vm3008_vm7, %v3079_v11, %v3078_v24  ;;  %v6170_v24 = vld [vmem:[%s7194_s1 + $0x78] sm:$0xff] }
 0x1ed   :  { %v2410_v51 = vrot.slane %v5839_v23, 5  ;;  %v6119_v45 = vmax.f32 %v7436_v58, 1.0  ;;  %v3082_v6 = vsel %vm3011_vm8, %v3081_v27, %v3080_v16  ;;  %v1044_v9 = vrot.slane %v5921_v7, %v4969_v35 }
 0x1ee   :  { %1039 = vbcast.lane.b32.xlu0 %v7435_v26, 256  ;;  %v7437_v3 = vrot.slane %v5839_v23, 2  ;;  %v3097_v8 = vrot.slane %v2691_v44, 7  ;;  %v1717_v33 = vrot.slane %v1716_v22, 4  ;;  %v2689_v60 = vmul.f32 %v7438_v19, %v1757_v15  ;;  %4116 = vmatmul.mubr.f32.gmra.mrb[4].mxu0 %v3082_v6  ;;  %v6154_v44 = vld [vmem:[#allocation2 + $0x82] sm:$0x3] }
 0x1ef   :  { %v1289_v49 = vmul.f32 %v753_v56, %v249_v5  ;;  %v3099_v14 = vrot.slane %v2693_v54, 6  ;;  %v1724_v41 = vrot.slane %v1723_v46, 4  ;;  %v1093_v52 = vrot.slane %v5972_v12, %v7342_v17  ;;  %v6149_v5 = vld [vmem:[#allocation2 + $0x6a] sm:$0x3]  ;;  %v6177_v15 = vld [vmem:[#allocation2 + $0x6c] sm:$0x3] }
 0x1f0   :  { %4599 = vrcp.f32 %v7437_v3  ;;  %1067 = vbcast.lane.b32.xlu1 %v1065_v53, 256  ;;  %v7439_v63 = vrot.slane %v5839_v23, 1  ;;  %v3098_v29 = vsel %vm2993_vm2, %v3097_v8, %v2689_v60  ;;  %v2411_v61 = vrot.slane %v5839_v23, 6 }
 0x1f1   :  { %v6134_v18 = vsel %vm2996_vm3, %v3099_v14, %v3098_v29  ;;  %v2412_v32 = vrot.slane %v5839_v23, 7  ;;  %v1718_v36 = vadd.f32 %v1717_v33, %v1716_v22  ;;  %v1772_v40 = vsel %vm1358_vm1, %v1289_v49, 0.0  ;;  %v6268_v49 = vld [vmem:[#allocation2 + $0x86] sm:$0x3] }
 0x1f2   :  { %1088 = vbcast.lane.b32.xlu0 %v1086_v42, 256  ;;  %4601 = vrcp.f32 %v7439_v63  ;;  %v1128_v62 = vrot.slane %v6141_v10, %v4938_v20  ;;  %v2413_v55 = vrot.slane %v6119_v45, 1  ;;  %v1725_v0 = vadd.f32 %v1724_v41, %v1723_v46  ;;  %v6204_v63 = vld [vmem:[#allocation2 + $0x84] sm:$0x3] }
 0x1f3   :  { %4603 = vrcp.f32 %v2409_v21  ;;  %v1051_v50 = vrot.slane %v5921_v7, %v4976_v39  ;;  %v2414_v23 = vrot.slane %v6119_v45, 2  ;;  %v1773_v11 = vrot.slane %v1772_v40, 4  ;;  %v7455_v22 = vld [vmem:[#allocation40_spill] sm:$0xff] }
 0x1f4   :  { %4605 = vrcp.f32 %v2408_v59  ;;  %1046 = vbcast.lane.b32.xlu1 %v1044_v9, 256  ;;  %v2415_v21 = vrot.slane %v6119_v45, 3  ;;  %v1719_v59 = vrot.slane %v1718_v36, 2  ;;  %v1100_v25 = vrot.slane %v5972_v12, %v4969_v35  ;;  %v6184_v9 = vld [vmem:[#allocation2 + $0x78] sm:$0x3] }
 0x1f5   :  { %4607 = vrcp.f32 %v2410_v51  ;;  %v2416_v13 = vrot.slane %v6119_v45, 4  ;;  %v1726_v38 = vrot.slane %v1725_v0, 2  ;;  %v1135_v53 = vrot.slane %v6141_v10, %v7341_v30 }
 0x1f6   :  { %1095 = vbcast.lane.b32.xlu0 %v1093_v52, 256  ;;  %4609 = vrcp.f32 %v2411_v61  ;;  %v1058_v28 = vrot.slane %v5921_v7, %v7343_v31  ;;  %v2417_v54 = vrot.slane %v6119_v45, 5  ;;  %v1121_v56 = vrot.slane %v6141_v10, %v7347_v43  ;;  %v6202_v52 = vld [vmem:[#allocation2 + $0x6e] sm:$0x3]  ;;  %v7453_v7 = vld [vmem:[#allocation39_spill] sm:$0xff] }
 0x1f7   :  { %4611 = vrcp.f32 %v2412_v32  ;;  %v1184_v27 = vrot.slane %v6170_v24, %v4938_v20  ;;  %v1774_v46 = vadd.f32 %v1773_v11, %v1772_v40  ;;  %v2418_v16 = vrot.slane %v6119_v45, 6  ;;  %v6186_v20 = vld [vmem:[#allocation2 + $0x7a] sm:$0x3]  ;;  %v6210_v32 = vld [vmem:[#allocation2 + $0x80] sm:$0x3] }
 0x1f8   :  { %1130 = vbcast.lane.b32.xlu1 %v1128_v62, 256  ;;  %4613 = vrcp.f32 %v2413_v55  ;;  %v1720_v58 = vadd.f32 %v1719_v59, %v1718_v36  ;;  %v1191_v6 = vrot.slane %v6170_v24, %v7341_v30  ;;  %v2419_v3 = vrot.slane %v6119_v45, 7  ;;  %v6303_v55 = vld [vmem:[#allocation2 + $0x8c] sm:$0x3] }
 0x1f9   :  { %4615 = vrcp.f32 %v2414_v23  ;;  %v6192_v33 = vmax.f32 %v5855_v4, 1.0  ;;  %v1727_v19 = vadd.f32 %v1726_v38, %v1725_v0  ;;  %v1107_v60 = vrot.slane %v5972_v12, %v4976_v39  ;;  %v6218_v0 = vld [vmem:[#allocation2 + $0x92] sm:$0x3]  ;;  %v6277_v38 = vld [vmem:[#allocation2 + $0x96] sm:$0x3] }
 0x1fa   :  { %v6157_v42 = vpop.eup %4599  ;;  %1053 = vbcast.lane.b32.xlu0 %v1051_v50, 256  ;;  %4617 = vrcp.f32 %v2415_v21  ;;  %v1142_v41 = vrot.slane %v6141_v10, %v7350_v2  ;;  %v1775_v29 = vrot.slane %v1774_v46, 2  ;;  %v1721_v40 = vrot.slane %v1720_v58, 1 }
 0x1fb   :  { %7440 = vst [vmem:[#allocation20_spill] sm:$0xff] %v6157_v42  ;;  %4619 = vrcp.f32 %v2416_v13  ;;  %v1728_v23 = vrot.slane %v1727_v19, 1  ;;  %v2421_v59 = vrot.slane %v6192_v33, 2  ;;  %v2423_v21 = vrot.slane %v6192_v33, 4 }
 0x1fc   :  { %v6174_v26 = vpop.eup %4601  ;;  %1102 = vbcast.lane.b32.xlu1 %v1100_v25, 256  ;;  %4621 = vrcp.f32 %v6119_v45  ;;  %v6242_v45 = vmax.f32 %v5932_v1, 1.0  ;;  %v1722_v61 = vadd.f32 %v1721_v40, %v1720_v58  ;;  %v2424_v1 = vrot.slane %v6192_v33, 5 }
 0x1fd   :  { %7441 = vst [vmem:[#allocation18_spill] sm:$0xff] %v6174_v26  ;;  %v6180_v51 = vpop.eup %4603  ;;  %4623 = vrcp.f32 %v2417_v54  ;;  %v2420_v54 = vrot.slane %v6192_v33, 1  ;;  %v7480_v42 = vrot.slane %v6170_v24, %v7342_v17 }
 0x1fe   :  { %7442 = vst [vmem:[#allocation19_spill] sm:$0xff] %v6180_v51  ;;  %v6189_v8 = vpop.eup %4605  ;;  %1137 = vbcast.lane.b32.xlu0 %v1135_v53, 256  ;;  %4625 = vrcp.f32 %v2418_v16  ;;  %v6253_v16 = vld [vmem:[#allocation2 + $0x7c] sm:$0x3]  ;;  %v2426_v53 = vrot.slane %v6192_v33, 7  ;;  %v2679_v40 = vmul.f32 %v7453_v7, %v1722_v61  ;;  %v2427_v14 = vrot.slane %v6242_v45, 1 }
 0x1ff   :  { %7443 = vst [vmem:[#allocation22_spill] sm:$0xff] %v6189_v8  ;;  %v6206_v4 = vpop.eup %4607  ;;  %4627 = vrcp.f32 %v2419_v3  ;;  %v6236_v3 = vld [vmem:[#allocation2 + $0x94] sm:$0x3]  ;;  %v2429_v30 = vrot.slane %v6242_v45, 3 }
 0x200   :  { %7444 = vst [vmem:[#allocation29_spill] sm:$0xff] %v6206_v4  ;;  %v6212_v36 = vpop.eup %4609  ;;  %1186 = vbcast.lane.b32.xlu1 %v1184_v27, 256  ;;  %v1776_v27 = vadd.f32 %v1775_v29, %v1774_v46  ;;  %4629 = vrcp.f32 %v6192_v33  ;;  %v2422_v46 = vrot.slane %v6192_v33, 3 }
 0x201   :  { %7445 = vst [vmem:[#allocation30_spill] sm:$0xff] %v6212_v36  ;;  %v6220_v50 = vpop.eup %4611  ;;  %4631 = vrcp.f32 %v2421_v59  ;;  %v7459_v36 = vrot.slane %v6141_v10, %v7342_v17 }
 0x202   :  { %7446 = vst [vmem:[#allocation31_spill] sm:$0xff] %v6220_v50  ;;  %1060 = vbcast.lane.b32.xlu0 %v1058_v28, 256  ;;  %v6225_v25 = vpop.eup %4613  ;;  %v1729_v28 = vadd.f32 %v1728_v23, %v1727_v19  ;;  %v6261_v19 = vld [vmem:[#allocation2 + $0x88] sm:$0x3]  ;;  %4633 = vrcp.f32 %v2420_v54  ;;  %v1777_v13 = vrot.slane %v1776_v27, 1  ;;  %v6274_v62 = vpop.xlane.xlu1 %2299  ;;  %v7457_v54 = vrot.slane %v5972_v12, %v7343_v31 }
 0x203   :  { %7447 = vst [vmem:[#allocation26_spill] sm:$0xff] %v6225_v25  ;;  %v6239_v11 = vpop.eup %4615  ;;  %4635 = vrcp.f32 %v2423_v21  ;;  %v6327_v50 = vld [vmem:[#allocation2 + $0x9a] sm:$0x3] }
 0x204   :  { %7448 = vst [vmem:[#allocation24_spill] sm:$0xff] %v6239_v11  ;;  %1109 = vbcast.lane.b32.xlu1 %v1107_v60, 256  ;;  %v6246_v29 = vpop.eup %4617  ;;  %4637 = vrcp.f32 %v2422_v46  ;;  %v6283_v21 = vmul.f32 %v7455_v22, %v1729_v28  ;;  %v6297_v22 = vld [vmem:[#allocation2 + $0x98] sm:$0x3]  ;;  %v6299_v28 = vld [vmem:[#allocation2 + $0x90] sm:$0x3] }
 0x205   :  { %7449 = vst [vmem:[#allocation33_spill] sm:$0xff] %v6246_v29  ;;  %v6256_v58 = vpop.eup %4619  ;;  %4639 = vrcp.f32 %v2424_v1  ;;  %v6305_v1 = vld [vmem:[#allocation2 + $0x8a] sm:$0x3]  ;;  %v3087_v46 = vrot.slane %v2679_v40, 5  ;;  %v6401_v11 = vmax.f32 %v6274_v62, 1.0  ;;  %v7479_v62 = vunpack.c.l.bf16 %v6177_v15 }
 0x206   :  { %1123 = vbcast.lane.b32.xlu0 %v1121_v56, 256  ;;  %7450 = vst [vmem:[#allocation28_spill] sm:$0xff] %v6256_v58  ;;  %v2425_v56 = vrot.slane %v6192_v33, 6  ;;  %v6264_v23 = vpop.eup %4621  ;;  %v6289_v33 = vld [vmem:[#allocation2 + $0x7e] sm:$0x3]  ;;  %v3089_v7 = vrot.slane %v6283_v21, 4 }
 0x207   :  { %7451 = vst [vmem:[#allocation34_spill] sm:$0xff] %v6264_v23  ;;  %v6271_v60 = vpop.eup %4623  ;;  %v6349_v21 = vld [vmem:[#allocation2 + $0xa8] sm:$0x3]  ;;  %v6363_v58 = vld [vmem:[#allocation2 + $0xb6] sm:$0x3]  ;;  %7475 = vst [vmem:[#allocation58_spill] sm:$0xff] %v6401_v11 }
 0x208   :  { %7452 = vst [vmem:[#allocation27_spill] sm:$0xff] %v6271_v60  ;;  %1144 = vbcast.lane.b32.xlu1 %v1142_v41, 256  ;;  %v6280_v59 = vpop.eup %4625  ;;  %v2428_v41 = vrot.slane %v6242_v45, 2  ;;  %4641 = vrcp.f32 %v2425_v56  ;;  %v6316_v56 = vld [vmem:[#allocation2 + $0xa2] sm:$0x3]  ;;  %v7462_v60 = vld [vmem:[#allocation45_spill] sm:$0xff] }
 0x209   :  { %7454 = vst [vmem:[#allocation43_spill] sm:$0xff] %v6280_v59  ;;  %v6292_v61 = vpop.eup %4627  ;;  %4643 = vrcp.f32 %v2426_v53  ;;  %v711_v59 = vpop.permute.xlu1 %710  ;;  %v7458_v53 = vunpack.c.l.bf16 %v6149_v5  ;;  %7465 = vst [vmem:[#allocation37_spill] sm:$0xff] %v6363_v58  ;;  %v6396_v29 = vld [vmem:[#allocation2 + $0xaa] sm:$0x3]  ;;  %v6421_v58 = vld [vmem:[#allocation2 + $0xc2] sm:$0x3] }
 0x20a   :  { %1193 = vbcast.lane.b32.xlu0 %v1191_v6, 256  ;;  %7456 = vst [vmem:[#allocation44_spill] sm:$0xff] %v6292_v61  ;;  %v1778_v6 = vadd.f32 %v1777_v13, %v1776_v27  ;;  %v2430_v61 = vrot.slane %v6242_v45, 4  ;;  %v6314_v27 = vld [vmem:[#allocation2 + $0xa4] sm:$0x3]  ;;  %4645 = vrcp.f32 %v2427_v14  ;;  %v6329_v13 = vpop.eup %4629  ;;  %7473 = vst [vmem:[#allocation45_spill] sm:$0xff] %v6396_v29 }
 0x20b   :  { %v1283_v40 = vmul.f32 %v711_v59, %v7458_v53  ;;  %4647 = vrcp.f32 %v2428_v41  ;;  %7460 = vst [vmem:[#allocation35_spill] sm:$0xff] %v6329_v13  ;;  %v6334_v59 = vld [vmem:[#allocation2 + $0xa0] sm:$0x3]  ;;  %v6336_v53 = vld [vmem:[#allocation2 + $0xb2] sm:$0x3]  ;;  %v6340_v12 = vpop.eup %4631  ;;  %7481 = vst [vmem:[#allocation61_spill] sm:$0xff] %v6421_v58 }
 0x20c   :  { %1116 = vbcast.lane.b32.xlu1 %v7457_v54, 256  ;;  %v6325_v54 = vld [vmem:[#allocation2 + $0x8e] sm:$0x3]  ;;  %4649 = vrcp.f32 %v2429_v30  ;;  %7461 = vst [vmem:[#allocation46_spill] sm:$0xff] %v6340_v12  ;;  %v6343_v4 = vmul.f32 %v7462_v60, %v1778_v6  ;;  %v6347_v13 = vld [vmem:[#allocation2 + $0x9c] sm:$0x3]  ;;  %v6351_v5 = vpop.eup %4633  ;;  %v7464_v30 = vrot.slane %v6170_v24, %v7347_v43  ;;  %v3088_v60 = vsel %vm2999_vm4, %v3087_v46, %v6097_v37 }
 0x20d   :  { %v1730_v41 = vsel %vm1358_vm1, %v1283_v40, 0.0  ;;  %4651 = vrcp.f32 %v2430_v61  ;;  %7463 = vst [vmem:[#allocation47_spill] sm:$0xff] %v6351_v5  ;;  %v795_v23 = vpop.permute.xlu1 %794  ;;  %v6361_v12 = vld [vmem:[#allocation2 + $0xa6] sm:$0x3]  ;;  %v6365_v61 = vpop.eup %4635  ;;  %v7467_v43 = vrot.slane %v6170_v24, %v7350_v2  ;;  %v6375_v40 = vld [vmem:[#allocation2 + $0x9e] sm:$0x3]  ;;  %v7471_v37 = vunpack.c.l.bf16 %v6154_v44 }
 0x20e   :  { %1151 = vbcast.lane.b32.xlu0 %v7459_v36, 256  ;;  %v6338_v36 = vld [vmem:[#allocation2 + $0xb4] sm:$0x3]  ;;  %7466 = vst [vmem:[#allocation38_spill] sm:$0xff] %v6365_v61  ;;  %v1731_v5 = vrot.slane %v1730_v41, 4  ;;  %v6379_v6 = vpop.eup %4637  ;;  %v3101_v46 = vrot.slane %v6343_v4, 5  ;;  %v6403_v25 = vpop.xlane.xlu0 %2302  ;;  %v7476_v44 = vrot.slane %v6141_v10, %v4969_v35  ;;  %4653 = vrcp.f32 %v6242_v45 }
 0x20f   :  { %v6377_v14 = vld [vmem:[#allocation2 + $0xb8] sm:$0x3]  ;;  %7468 = vst [vmem:[#allocation41_spill] sm:$0xff] %v6379_v6  ;;  %v1295_v8 = vmul.f32 %v795_v23, %v7471_v37  ;;  %v6394_v61 = vld [vmem:[#allocation2 + $0xac] sm:$0x3]  ;;  %v2432_v6 = vrot.slane %v6242_v45, 6 }
 0x210   :  { %1179 = vbcast.lane.b32.xlu1 %v7464_v30, 256  ;;  %v6371_v30 = vsel %vm3002_vm5, %v3089_v7, %v3088_v60  ;;  %v2431_v7 = vrot.slane %v6242_v45, 5  ;;  %v6387_v60 = vpop.eup %4639  ;;  %7472 = vst [vmem:[#allocation40_spill] sm:$0xff] %v6394_v61  ;;  %v6410_v37 = vld [vmem:[#allocation2 + $0xc4] sm:$0x3]  ;;  %v2433_v15 = vrot.slane %v6242_v45, 7 }
 0x211   :  { %7470 = vst [vmem:[#allocation39_spill] sm:$0xff] %v6387_v60  ;;  %v718_v60 = vpop.permute.xlu1 %717  ;;  %7477 = vst [vmem:[#allocation59_spill] sm:$0xff] %v6410_v37  ;;  %v6423_v4 = vld [vmem:[#allocation2 + $0xae] sm:$0x3]  ;;  %v1814_v17 = vsel %vm1358_vm1, %v1295_v8, 0.0  ;;  %v2434_v8 = vrot.slane %v6401_v11, 1 }
 0x212   :  { %1200 = vbcast.lane.b32.xlu0 %v7467_v43, 256  ;;  %v6384_v43 = vld [vmem:[#allocation2 + $0xb0] sm:$0x3]  ;;  %v6398_v2 = vpop.eup %4641  ;;  %v1284_v26 = vmul.f32 %v718_v60, %v7479_v62  ;;  %7482 = vst [vmem:[#allocation62_spill] sm:$0xff] %v6423_v4  ;;  %4655 = vrcp.f32 %v2431_v7  ;;  %v6437_v60 = vsel %vm2999_vm4, %v3101_v46, %v6134_v18  ;;  %v7486_v7 = vrot.slane %v6141_v10, %v4976_v39  ;;  %v6459_v45 = vld [vmem:[#allocation2 + $0xc0] sm:$0x3] }
 0x213   :  { %7469 = vst [vmem:[#allocation42_spill] sm:$0xff] %v6384_v43  ;;  %7474 = vst [vmem:[#allocation57_spill] sm:$0xff] %v6398_v2  ;;  %v6413_v51 = vpop.eup %4643  ;;  %v1732_v2 = vadd.f32 %v1731_v5, %v1730_v41  ;;  %v6447_v5 = vld [vmem:[#allocation2 + $0xba] sm:$0x3]  ;;  %4657 = vrcp.f32 %v2432_v6  ;;  %v7489_v62 = vunpack.c.l.bf16 %v6184_v9  ;;  %v1815_v4 = vrot.slane %v1814_v17, 4 }
 0x214   :  { %1158 = vbcast.lane.b32.xlu1 %v7476_v44, 256  ;;  %7478 = vst [vmem:[#allocation60_spill] sm:$0xff] %v6413_v51  ;;  %v6426_v23 = vpop.eup %4645  ;;  %v760_v51 = vpop.permute.xlu0 %759  ;;  %7487 = vst [vmem:[#allocation66_spill] sm:$0xff] %v6447_v5  ;;  %v2437_v6 = vrot.slane %v6401_v11, 4  ;;  %4659 = vrcp.f32 %v2433_v15  ;;  %v6465_v9 = vld [vmem:[#allocation2 + $0xd2] sm:$0x3]  ;;  %v7496_v5 = vunpack.c.l.bf16 %v6202_v52 }
 0x215   :  { %7483 = vst [vmem:[#allocation63_spill] sm:$0xff] %v6426_v23  ;;  %v6431_v41 = vpop.eup %4647  ;;  %v767_v23 = vpop.permute.xlu1 %766  ;;  %v1733_v46 = vrot.slane %v1732_v2, 2  ;;  %7492 = vst [vmem:[#allocation68_spill] sm:$0xff] %v6459_v45  ;;  %4661 = vrcp.f32 %v6401_v11  ;;  %v1816_v43 = vadd.f32 %v1815_v4, %v1814_v17  ;;  %v6484_v45 = vld [vmem:[#allocation2 + $0xbc] sm:$0x3]  ;;  %v6497_v4 = vmax.f32 %v6403_v25, 1.0 }
 0x216   :  { %1207 = vbcast.lane.b32.xlu0 %v7480_v42, 256  ;;  %7484 = vst [vmem:[#allocation64_spill] sm:$0xff] %v6431_v41  ;;  %v1737_v42 = vsel %vm1358_vm1, %v1284_v26, 0.0  ;;  %v6440_v44 = vpop.eup %4649  ;;  %v2435_v26 = vrot.slane %v6401_v11, 2  ;;  %v7490_v41 = vunpack.c.l.bf16 %v6186_v20  ;;  %7493 = vst [vmem:[#allocation69_spill] sm:$0xff] %v6465_v9 }
 0x217   :  { %7485 = vst [vmem:[#allocation65_spill] sm:$0xff] %v6440_v44  ;;  %v6450_v18 = vpop.eup %4651  ;;  %v1290_v44 = vmul.f32 %v760_v51, %v7489_v62  ;;  %v1738_v58 = vrot.slane %v1737_v42, 4  ;;  %v1734_v51 = vadd.f32 %v1733_v46, %v1732_v2  ;;  %7499 = vst [vmem:[#allocation71_spill] sm:$0xff] %v6484_v45  ;;  %v6506_v15 = vld [vmem:[#allocation2 + $0xd6] sm:$0x3] }
 0x218   :  { %1165 = vbcast.lane.b32.xlu1 %v7486_v7, 256  ;;  %7488 = vst [vmem:[#allocation67_spill] sm:$0xff] %v6450_v18  ;;  %v1291_v37 = vmul.f32 %v767_v23, %v7490_v41  ;;  %v7491_v7 = vrot.slane %v6170_v24, %v4969_v35  ;;  %v2436_v35 = vrot.slane %v6401_v11, 3  ;;  %v725_v41 = vpop.permute.xlu0 %724  ;;  %4663 = vrcp.f32 %v2435_v26  ;;  %v6486_v26 = vld [vmem:[#allocation2 + $0xc8] sm:$0x3]  ;;  %v6488_v52 = vpop.eup %4653  ;;  %7504 = vst [vmem:[#allocation76_spill] sm:$0xff] %v6497_v4 }
 0x219   :  { %v1779_v18 = vsel %vm1358_vm1, %v1290_v44, 0.0  ;;  %v802_v62 = vpop.permute.xlu1 %801  ;;  %v6474_v44 = vld [vmem:[#allocation2 + $0xd4] sm:$0x3]  ;;  %v1285_v29 = vmul.f32 %v725_v41, %v7496_v5  ;;  %v7497_v11 = vunpack.c.l.bf16 %v6204_v63  ;;  %4665 = vrcp.f32 %v2434_v8  ;;  %7500 = vst [vmem:[#allocation72_spill] sm:$0xff] %v6486_v26  ;;  %7501 = vst [vmem:[#allocation73_spill] sm:$0xff] %v6488_v52 }
 0x21a   :  { %1214 = vbcast.lane.b32.xlu0 %v7491_v7, 256  ;;  %v1780_v20 = vrot.slane %v1779_v18, 4  ;;  %v1786_v23 = vsel %vm1358_vm1, %v1291_v37, 0.0  ;;  %v7494_v7 = vrot.slane %v6141_v10, %v7343_v31  ;;  %7495 = vst [vmem:[#allocation70_spill] sm:$0xff] %v6474_v44  ;;  %v7498_v37 = vrot.slane %v6170_v24, %v4976_v39  ;;  %v6492_v5 = vld [vmem:[#allocation2 + $0xc6] sm:$0x3] }
 0x21b   :  { %v1296_v61 = vmul.f32 %v802_v62, %v7497_v11  ;;  %v1739_v10 = vadd.f32 %v1738_v58, %v1737_v42  ;;  %4667 = vrcp.f32 %v2437_v6  ;;  %v1787_v2 = vrot.slane %v1786_v23, 4  ;;  %7502 = vst [vmem:[#allocation74_spill] sm:$0xff] %v6492_v5  ;;  %7507 = vst [vmem:[#allocation77_spill] sm:$0xff] %v6506_v15  ;;  %v6512_v52 = vld [vmem:[#allocation2 + $0xbe] sm:$0x3] }
 0x21c   :  { %1172 = vbcast.lane.b32.xlu1 %v7494_v7, 256  ;;  %v4111_v7 = vpop.f32.mrb[0].mxu0  ;;  %v1744_v63 = vsel %vm1358_vm1, %v1285_v29, 0.0  ;;  %4669 = vrcp.f32 %v2436_v35  ;;  %v6494_v58 = vpop.eup %4655  ;;  %v1781_v17 = vadd.f32 %v1780_v20, %v1779_v18  ;;  %v7505_v29 = vrot.slane %v6170_v24, %v7343_v31  ;;  %7509 = vst [vmem:[#allocation79_spill] sm:$0xff] %v6512_v52  ;;  %v6532_v15 = vld [vmem:[#allocation2 + $0xd0] sm:$0x3] }
 0x21d   :  { %v3305_v11 = vpop.f32.mrb[1].mxu0  ;;  %7503 = vst [vmem:[#allocation75_spill] sm:$0xff] %v6494_v58  ;;  %v1745_v42 = vrot.slane %v1744_v63, 4  ;;  %v1821_v8 = vsel %vm1358_vm1, %v1296_v61, 0.0  ;;  %v788_v46 = vpop.permute.xlu0 %787  ;;  %v1735_v41 = vrot.slane %v1734_v51, 1  ;;  %v1817_v18 = vrot.slane %v1816_v43, 2 }
 0x21e   :  { %1221 = vbcast.lane.b32.xlu0 %v7498_v37, 256  ;;  %v851_v6 = vpop.permute.xlu1 %850  ;;  %v4333_v62 = vpack.c.bf16 %v4111_v7, %v3305_v11  ;;  %v7506_v37 = vunpack.c.l.bf16 %v6210_v32  ;;  %v6508_v25 = vpop.eup %4657  ;;  %v1740_v20 = vrot.slane %v1739_v10, 2  ;;  %v1788_v31 = vadd.f32 %v1787_v2, %v1786_v23  ;;  %v6520_v58 = vld [vmem:[#allocation2 + $0xd8] sm:$0x3]  ;;  %7516 = vst [vmem:[#allocation84_spill] sm:$0xff] %v6532_v15 }
 0x21f   :  { %7508 = vst [vmem:[#allocation78_spill] sm:$0xff] %v6508_v25  ;;  %v1822_v24 = vrot.slane %v1821_v8, 4  ;;  %v7510_v32 = vunpack.c.l.bf16 %v6218_v0  ;;  %7512 = vst [vmem:[#allocation81_spill] sm:$0xff] %v6520_v58  ;;  %v2441_v23 = vrot.slane %v6497_v4, 1  ;;  %v7515_v61 = vunpack.c.l.bf16 %v6236_v3 }
 0x220   :  { %1228 = vbcast.lane.b32.xlu1 %v7505_v29, 256  ;;  %v1294_v35 = vmul.f32 %v788_v46, %v7506_v37  ;;  %4334 = vmatprep.subr.bf16.mxu1 %v4333_v62  ;;  %v6517_v46 = vpop.eup %4659  ;;  %v1782_v29 = vrot.slane %v1781_v17, 2  ;;  %v1746_v37 = vadd.f32 %v1745_v42, %v1744_v63  ;;  %v1818_v63 = vadd.f32 %v1817_v18, %v1816_v43 }
 0x221   :  { %v1303_v11 = vmul.f32 %v851_v6, %v7510_v32  ;;  %7511 = vst [vmem:[#allocation80_spill] sm:$0xff] %v6517_v46  ;;  %4336 = vmatpush3.bf16.msra.mxu1 %v4333_v62  ;;  %v858_v39 = vpop.permute.xlu0 %857  ;;  %v6523_v2 = vpop.eup %4661  ;;  %v2442_v6 = vrot.slane %v6497_v4, 2  ;;  %v1741_v42 = vadd.f32 %v1740_v20, %v1739_v10  ;;  %4671 = vrcp.f32 %v6497_v4  ;;  %v6540_v20 = vld [vmem:[#allocation2 + $0xcc] sm:$0x3] }
 0x222   :  { %v1807_v7 = vsel %vm1358_vm1, %v1294_v35, 0.0  ;;  %v774_v25 = vpop.permute.xlu1 %773  ;;  %7513 = vst [vmem:[#allocation82_spill] sm:$0xff] %v6523_v2  ;;  %v1736_v35 = vadd.f32 %v1735_v41, %v1734_v51  ;;  %v6527_v32 = vpop.eup %4663  ;;  %v1304_v46 = vmul.f32 %v858_v39, %v7515_v61  ;;  %v1789_v2 = vrot.slane %v1788_v31, 2 }
 0x223   :  { %v1808_v45 = vrot.slane %v1807_v7, 4  ;;  %7514 = vst [vmem:[#allocation83_spill] sm:$0xff] %v6527_v32  ;;  %v1870_v62 = vsel %vm1358_vm1, %v1303_v11, 0.0  ;;  %v6534_v5 = vpop.eup %4665  ;;  %v1823_v51 = vadd.f32 %v1822_v24, %v1821_v8  ;;  %v1783_v32 = vadd.f32 %v1782_v29, %v1781_v17  ;;  %v7520_v24 = vld [vmem:[#allocation48_spill] sm:$0xff] }
 0x224   :  { %7517 = vst [vmem:[#allocation85_spill] sm:$0xff] %v6534_v5  ;;  %v1747_v43 = vrot.slane %v1746_v37, 2  ;;  %4673 = vrcp.f32 %v2441_v23  ;;  %v2443_v3 = vrot.slane %v6497_v4, 3  ;;  %v1871_v11 = vrot.slane %v1870_v62, 4 }
 0x225   :  { %v6538_v0 = vpop.eup %4667  ;;  %v816_v10 = vpop.permute.xlu0 %815  ;;  %v1809_v61 = vadd.f32 %v1808_v45, %v1807_v7  ;;  %4675 = vrcp.f32 %v2442_v6  ;;  %v6547_v41 = vmul.f32 %v7520_v24, %v1736_v35  ;;  %v1742_v17 = vrot.slane %v1741_v42, 1 }
 0x226   :  { %7518 = vst [vmem:[#allocation86_spill] sm:$0xff] %v6538_v0  ;;  %v809_v18 = vpop.permute.xlu1 %808  ;;  %v6543_v39 = vpop.eup %4669  ;;  %v1819_v0 = vrot.slane %v1818_v63, 1  ;;  %v1877_v29 = vsel %vm1358_vm1, %v1304_v46, 0.0  ;;  %v1790_v5 = vadd.f32 %v1789_v2, %v1788_v31  ;;  %v1824_v52 = vrot.slane %v1823_v51, 2 }
 0x227   :  { %7519 = vst [vmem:[#allocation87_spill] sm:$0xff] %v6543_v39  ;;  %v2444_v58 = vrot.slane %v6497_v4, 4  ;;  %v1784_v26 = vrot.slane %v1783_v32, 1  ;;  %v1748_v39 = vadd.f32 %v1747_v43, %v1746_v37  ;;  %v7521_v45 = vunpack.c.l.bf16 %v6261_v19 }
 0x228   :  { %v7522_v6 = vunpack.c.l.bf16 %v6268_v49  ;;  %v1810_v15 = vrot.slane %v1809_v61, 2  ;;  %v1872_v44 = vadd.f32 %v1871_v11, %v1870_v62  ;;  %v1878_v9 = vrot.slane %v1877_v29, 4 }
 0x229   :  { %v1298_v7 = vmul.f32 %v816_v10, %v7521_v45  ;;  %v865_v35 = vpop.permute.xlu0 %864  ;;  %v7523_v31 = vunpack.c.l.bf16 %v6253_v16  ;;  %v1820_v23 = vadd.f32 %v1819_v0, %v1818_v63  ;;  %v1743_v4 = vadd.f32 %v1742_v17, %v1741_v42 }
 0x22a   :  { %v1297_v8 = vmul.f32 %v809_v18, %v7522_v6  ;;  %v781_v24 = vpop.permute.xlu1 %780  ;;  %4677 = vrcp.f32 %v2443_v3  ;;  %v1791_v37 = vrot.slane %v1790_v5, 1  ;;  %v1825_v43 = vadd.f32 %v1824_v52, %v1823_v51 }
 0x22b   :  { %v1292_v46 = vmul.f32 %v774_v25, %v7523_v31  ;;  %v1835_v19 = vsel %vm1358_vm1, %v1298_v7, 0.0  ;;  %v7524_v49 = vunpack.c.l.bf16 %v6277_v38  ;;  %v1785_v18 = vadd.f32 %v1784_v26, %v1783_v32  ;;  %v6563_v16 = vpop.eup %4671 }
 0x22c   :  { %v1749_v45 = vrot.slane %v1748_v39, 1  ;;  %v1828_v62 = vsel %vm1358_vm1, %v1297_v8, 0.0  ;;  %4679 = vrcp.f32 %v2444_v58  ;;  %v1811_v25 = vadd.f32 %v1810_v15, %v1809_v61 }
 0x22d   :  { %v1305_v10 = vmul.f32 %v865_v35, %v7524_v49  ;;  %v872_v11 = vpop.permute.xlu0 %871  ;;  %v1873_v0 = vrot.slane %v1872_v44, 2  ;;  %v1879_v63 = vadd.f32 %v1878_v9, %v1877_v29  ;;  %v1793_v42 = vsel %vm1358_vm1, %v1292_v46, 0.0 }
 0x22e   :  { %v844_v6 = vpop.permute.xlu1 %843  ;;  %v6566_v52 = vpop.eup %4673  ;;  %v6569_v51 = vmul.f32 %v5739_v34, %v1820_v23  ;;  %v1836_v38 = vrot.slane %v1835_v19, 4  ;;  %v7525_v26 = vunpack.c.l.bf16 %v6289_v33  ;;  %v2685_v3 = vmul.f32 %v5698_v47, %v1743_v4  ;;  %v7527_v33 = vld [vmem:[#allocation49_spill] sm:$0xff] }
 0x22f   :  { %v6574_v8 = vpop.eup %4675  ;;  %v1792_v58 = vadd.f32 %v1791_v37, %v1790_v5  ;;  %v1826_v17 = vrot.slane %v1825_v43, 1  ;;  %v1829_v15 = vrot.slane %v1828_v62, 4  ;;  %v1884_v9 = vsel %vm1358_vm1, %v1305_v10, 0.0 }
 0x230   :  { %v1293_v32 = vmul.f32 %v781_v24, %v7525_v26  ;;  %v1750_v61 = vadd.f32 %v1749_v45, %v1748_v39  ;;  %v1794_v29 = vrot.slane %v1793_v42, 4  ;;  %v7526_v34 = vunpack.c.l.bf16 %v6297_v22 }
 0x231   :  { %v830_v35 = vpop.permute.xlu0 %829  ;;  %v6581_v24 = vmul.f32 %v7527_v33, %v1785_v18  ;;  %v1812_v47 = vrot.slane %v1811_v25, 1  ;;  %v1874_v4 = vadd.f32 %v1873_v0, %v1872_v44  ;;  %v1880_v46 = vrot.slane %v1879_v63, 2 }
 0x232   :  { %v1800_v7 = vsel %vm1358_vm1, %v1293_v32, 0.0  ;;  %v1306_v23 = vmul.f32 %v872_v11, %v7526_v34  ;;  %v823_v31 = vpop.permute.xlu1 %822  ;;  %v1837_v5 = vadd.f32 %v1836_v38, %v1835_v19  ;;  %v1885_v37 = vrot.slane %v1884_v9, 4  ;;  %v7529_v38 = vld [vmem:[#allocation51_spill] sm:$0xff] }
 0x233   :  { %v7528_v39 = vunpack.c.l.bf16 %v6299_v28  ;;  %v3111_v45 = vrot.slane %v6569_v51, 7  ;;  %v1830_v26 = vadd.f32 %v1829_v15, %v1828_v62  ;;  %v1801_v22 = vrot.slane %v1800_v7, 4 }
 0x234   :  { %v1891_v49 = vsel %vm1358_vm1, %v1306_v23, 0.0  ;;  %v6587_v32 = vpop.eup %4677  ;;  %v1827_v34 = vadd.f32 %v1826_v17, %v1825_v43  ;;  %v1795_v18 = vadd.f32 %v1794_v29, %v1793_v42  ;;  %v2687_v44 = vmul.f32 %v5704_v48, %v1750_v61 }
 0x235   :  { %v1302_v10 = vmul.f32 %v844_v6, %v7528_v39  ;;  %v1892_v11 = vrot.slane %v1891_v49, 4  ;;  %v914_v19 = vpop.permute.xlu0 %913  ;;  %v6592_v23 = vmul.f32 %v7529_v38, %v1792_v58  ;;  %v1813_v28 = vadd.f32 %v1812_v47, %v1811_v25  ;;  %v7532_v38 = vld [vmem:[#allocation23_spill] sm:$0xff] }
 0x236   :  { %v907_v0 = vpop.permute.xlu1 %906  ;;  %v1875_v6 = vrot.slane %v1874_v4, 1  ;;  %v1881_v39 = vadd.f32 %v1880_v46, %v1879_v63  ;;  %v6594_v51 = vpop.eup %4679  ;;  %v1838_v15 = vrot.slane %v1837_v5, 2  ;;  %v1886_v2 = vadd.f32 %v1885_v37, %v1884_v9 }
 0x237   :  { %v1863_v33 = vsel %vm1358_vm1, %v1302_v10, 0.0  ;;  %7530 = vst [vmem:[#allocation48_spill] sm:$0xff] %v6594_v51  ;;  %v3093_v43 = vrot.slane %v2685_v3, 2  ;;  %v1831_v42 = vrot.slane %v1830_v26, 2  ;;  %v1802_v17 = vadd.f32 %v1801_v22, %v1800_v7 }
 0x238   :  { %v1893_v29 = vadd.f32 %v1892_v11, %v1891_v49  ;;  %v1864_v10 = vrot.slane %v1863_v33, 4  ;;  %v6598_v48 = vmul.f32 %v5747_v57, %v1827_v34  ;;  %v1796_v61 = vrot.slane %v1795_v18, 2 }
 0x239   :  { %v7531_v25 = vrot.slane %v6547_v41, 3  ;;  %v3095_v58 = vrot.slane %v2687_v44, 1  ;;  %v837_v47 = vpop.permute.xlu0 %836  ;;  %v2705_v62 = vmul.f32 %v7532_v38, %v1813_v28  ;;  %v1876_v9 = vadd.f32 %v1875_v6, %v1874_v4 }
 0x23a   :  { %v879_v46 = vpop.permute.xlu1 %878  ;;  %v1882_v3 = vrot.slane %v1881_v39, 1  ;;  %v1839_v37 = vadd.f32 %v1838_v15, %v1837_v5  ;;  %v1887_v49 = vrot.slane %v1886_v2, 2  ;;  %v7533_v22 = vunpack.c.l.bf16 %v6303_v55 }
 0x23b   :  { %v3092_v63 = vsel %vm3005_vm6, %v7531_v25, %v6371_v30  ;;  %v1832_v34 = vadd.f32 %v1831_v42, %v1830_v26  ;;  %v1803_v41 = vrot.slane %v1802_v17, 2  ;;  %v1894_v51 = vrot.slane %v1893_v29, 2  ;;  %v7537_v26 = vld [vmem:[#allocation50_spill] sm:$0xff] }
 0x23c   :  { %v3094_v7 = vsel %vm3008_vm7, %v3093_v43, %v3092_v63  ;;  %v1300_v11 = vmul.f32 %v830_v35, %v7533_v22  ;;  %v1865_v30 = vadd.f32 %v1864_v10, %v1863_v33  ;;  %v7534_v28 = vunpack.c.l.bf16 %v6305_v1 }
 0x23d   :  { %v3096_v57 = vsel %vm3011_vm8, %v3095_v58, %v3094_v7  ;;  %v7535_v6 = vunpack.c.l.bf16 %v6314_v27  ;;  %v7536_v5 = vunpack.c.l.bf16 %v6316_v56  ;;  %v900_v25 = vpop.permute.xlu0 %899  ;;  %v6618_v35 = vsel %vm2993_vm2, %v3111_v45, %v2705_v62 }
 0x23e   :  { %4118 = vmatprep.mubr.f32.mxu0 %v3096_v57  ;;  %v1299_v4 = vmul.f32 %v823_v31, %v7534_v28  ;;  %v963_v63 = vpop.permute.xlu1 %962  ;;  %v6621_v33 = vmul.f32 %v7537_v26, %v1876_v9  ;;  %v1797_v42 = vadd.f32 %v1796_v61, %v1795_v18  ;;  %v1883_v10 = vadd.f32 %v1882_v3, %v1881_v39 }
 0x23f   :  { %v1312_v43 = vmul.f32 %v914_v19, %v7535_v6  ;;  %v1311_v15 = vmul.f32 %v907_v0, %v7536_v5  ;;  %v1840_v1 = vrot.slane %v1839_v37, 1  ;;  %v1888_v31 = vadd.f32 %v1887_v49, %v1886_v2 }
 0x240   :  { %v1849_v27 = vsel %vm1358_vm1, %v1300_v11, 0.0  ;;  %v1833_v19 = vrot.slane %v1832_v34, 1  ;;  %v1804_v58 = vadd.f32 %v1803_v41, %v1802_v17  ;;  %v1895_v56 = vadd.f32 %v1894_v51, %v1893_v29  ;;  %v7540_v29 = vld [vmem:[#allocation15_spill] sm:$0xff] }
 0x241   :  { %v1866_v0 = vrot.slane %v1865_v30, 2  ;;  %v1842_v38 = vsel %vm1358_vm1, %v1299_v4, 0.0  ;;  %v1933_v7 = vsel %vm1358_vm1, %v1312_v43, 0.0  ;;  %v1926_v45 = vsel %vm1358_vm1, %v1311_v15, 0.0  ;;  %v6629_v57 = vpop.permute.xlu0 %969 }
 0x242   :  { %v7538_v62 = vunpack.c.l.bf16 %v6327_v50  ;;  %v6631_v18 = vpop.permute.xlu1 %885  ;;  %v1798_v39 = vrot.slane %v1797_v42, 1  ;;  %v1850_v61 = vrot.slane %v1849_v27, 4  ;;  %v7539_v51 = vunpack.c.l.bf16 %v6325_v54 }
 0x243   :  { %v6637_v3 = vmul.f32 %v7540_v29, %v1883_v10  ;;  %v1841_v49 = vadd.f32 %v1840_v1, %v1839_v37  ;;  %v1889_v22 = vrot.slane %v1888_v31, 1  ;;  %v1834_v50 = vadd.f32 %v1833_v19, %v1832_v34  ;;  %v7543_v34 = vld [vmem:[#allocation13_spill] sm:$0xff] }
 0x244   :  { %v1307_v9 = vmul.f32 %v879_v46, %v7538_v62  ;;  %v1301_v17 = vmul.f32 %v837_v47, %v7539_v51  ;;  %v1843_v46 = vrot.slane %v1842_v38, 4  ;;  %v1934_v41 = vrot.slane %v1933_v7, 4 }
 0x245   :  { %v1927_v28 = vrot.slane %v1926_v45, 4  ;;  %v1805_v4 = vrot.slane %v1804_v58, 1  ;;  %v1896_v6 = vrot.slane %v1895_v56, 1  ;;  %v1867_v43 = vadd.f32 %v1866_v0, %v1865_v30  ;;  %v928_v26 = vpop.permute.xlu0 %927  ;;  %v7544_v30 = vld [vmem:[#allocation16_spill] sm:$0xff] }
 0x246   :  { %v1898_v11 = vsel %vm1358_vm1, %v1307_v9, 0.0  ;;  %v7541_v5 = vunpack.c.l.bf16 %v6334_v59  ;;  %v921_v54 = vpop.permute.xlu1 %920  ;;  %v1851_v47 = vadd.f32 %v1850_v61, %v1849_v27  ;;  %v1856_v10 = vsel %vm1358_vm1, %v1301_v17, 0.0 }
 0x247   :  { %v1899_v62 = vrot.slane %v1898_v11, 4  ;;  %v7542_v37 = vunpack.c.l.bf16 %v6336_v53  ;;  %v1799_v9 = vadd.f32 %v1798_v39, %v1797_v42  ;;  %v6646_v19 = vmul.f32 %v7543_v34, %v1841_v49 }
 0x248   :  { %v1310_v15 = vmul.f32 %v900_v25, %v7541_v5  ;;  %v1890_v51 = vadd.f32 %v1889_v22, %v1888_v31  ;;  %v6650_v0 = vmul.f32 %v7544_v30, %v1834_v50  ;;  %v1844_v59 = vadd.f32 %v1843_v46, %v1842_v38  ;;  %v7545_v38 = vld [vmem:[#allocation21_spill] sm:$0xff] }
 0x249   :  { %v1319_v1 = vmul.f32 %v963_v63, %v7542_v37  ;;  %v1935_v25 = vadd.f32 %v1934_v41, %v1933_v7  ;;  %v1928_v5 = vadd.f32 %v1927_v28, %v1926_v45  ;;  %v1806_v27 = vadd.f32 %v1805_v4, %v1804_v58  ;;  %v977_v31 = vpop.permute.xlu0 %976  ;;  %v7546_v45 = vld [vmem:[#allocation53_spill] sm:$0xff]  ;;  %v7547_v4 = vld [vmem:[#allocation54_spill] sm:$0xff] }
 0x24a   :  { %v1919_v29 = vsel %vm1358_vm1, %v1310_v15, 0.0  ;;  %v1897_v61 = vadd.f32 %v1896_v6, %v1895_v56  ;;  %v1857_v17 = vrot.slane %v1856_v10, 4  ;;  %v6653_v53 = vpop.permute.xlu1 %892  ;;  %v1868_v63 = vrot.slane %v1867_v43, 1 }
 0x24b   :  { %v1982_v55 = vsel %vm1358_vm1, %v1319_v1, 0.0  ;;  %v1852_v42 = vrot.slane %v1851_v47, 2  ;;  %v1900_v39 = vadd.f32 %v1899_v62, %v1898_v11  ;;  %v1920_v49 = vrot.slane %v1919_v29, 4  ;;  %v7548_v62 = vld [vmem:[#allocation36_spill] sm:$0xff] }
 0x24c   :  { %v1983_v15 = vrot.slane %v1982_v55, 4  ;;  %v2701_v7 = vmul.f32 %v7545_v38, %v1799_v9  ;;  %v6659_v58 = vmul.f32 %v7546_v45, %v1890_v51  ;;  %v1845_v56 = vrot.slane %v1844_v59, 2 }
 0x24d   :  { %v1936_v46 = vrot.slane %v1935_v25, 2  ;;  %v1929_v41 = vrot.slane %v1928_v5, 2  ;;  %v6663_v6 = vmul.f32 %v7547_v4, %v1897_v61  ;;  %v1858_v11 = vadd.f32 %v1857_v17, %v1856_v10 }
 0x24e   :  { %v2703_v37 = vmul.f32 %v7548_v62, %v1806_v27  ;;  %v1869_v1 = vadd.f32 %v1868_v63, %v1867_v43  ;;  %v1853_v34 = vadd.f32 %v1852_v42, %v1851_v47  ;;  %v1901_v30 = vrot.slane %v1900_v39, 2  ;;  %v956_v2 = vpop.permute.xlu1 %955  ;;  %v984_v43 = vpop.permute.xlu0 %983 }
 0x24f   :  { %v1921_v22 = vadd.f32 %v1920_v49, %v1919_v29  ;;  %v1984_v50 = vadd.f32 %v1983_v15, %v1982_v55  ;;  %v7549_v9 = vrot.slane %v6581_v24, 4  ;;  %v3107_v38 = vrot.slane %v2701_v7, 2 }
 0x250   :  { %v3109_v45 = vrot.slane %v2703_v37, 1  ;;  %v1846_v28 = vadd.f32 %v1845_v56, %v1844_v59  ;;  %v1937_v44 = vadd.f32 %v1936_v46, %v1935_v25  ;;  %v1930_v61 = vadd.f32 %v1929_v41, %v1928_v5  ;;  %v7555_v46 = vld [vmem:[#allocation14_spill] sm:$0xff] }
 0x251   :  { %v3104_v51 = vsel %vm3002_vm5, %v7549_v9, %v6437_v60  ;;  %v7550_v10 = vrot.slane %v6592_v23, 3  ;;  %v1859_v47 = vrot.slane %v1858_v11, 2  ;;  %v7551_v55 = vunpack.c.l.bf16 %v6338_v36 }
 0x252   :  { %v7552_v60 = vunpack.c.l.bf16 %v6347_v13  ;;  %v1902_v63 = vadd.f32 %v1901_v30, %v1900_v39  ;;  %v1922_v59 = vrot.slane %v1921_v22, 2  ;;  %v7553_v23 = vunpack.c.l.bf16 %v6349_v21  ;;  %v6690_v4 = vpop.permute.xlu1 %934 }
 0x253   :  { %v3106_v27 = vsel %vm3005_vm6, %v7550_v10, %v3104_v51  ;;  %v1320_v24 = vmul.f32 %v6629_v57, %v7551_v55  ;;  %v3129_v42 = vrot.slane %v6659_v58, 5  ;;  %v1985_v49 = vrot.slane %v1984_v50, 2 }
 0x254   :  { %v3108_v29 = vsel %vm3008_vm7, %v3107_v38, %v3106_v27  ;;  %v1308_v17 = vmul.f32 %v6631_v18, %v7552_v60  ;;  %v1314_v5 = vmul.f32 %v928_v26, %v7553_v23  ;;  %v7554_v36 = vunpack.c.l.bf16 %v6361_v12  ;;  %v6693_v12 = vpop.permute.xlu0 %941 }
 0x255   :  { %v3110_v25 = vsel %vm3011_vm8, %v3109_v45, %v3108_v29  ;;  %v1989_v15 = vsel %vm1358_vm1, %v1320_v24, 0.0  ;;  %v1847_v7 = vrot.slane %v1846_v28, 1  ;;  %v1938_v13 = vrot.slane %v1937_v44, 1  ;;  %v7556_v45 = vld [vmem:[#allocation37_spill] sm:$0xff] }
 0x256   :  { %4119 = vmatmul.mubr.f32.gmra.mrb[6].mxu0 %v3110_v25  ;;  %v1313_v57 = vmul.f32 %v921_v54, %v7554_v36  ;;  %v1931_v56 = vrot.slane %v1930_v61, 1  ;;  %v1905_v18 = vsel %vm1358_vm1, %v1308_v17, 0.0  ;;  %v3131_v39 = vrot.slane %v6663_v6, 4  ;;  %v7562_v36 = vld [vmem:[#allocation20_spill] sm:$0xff] }
 0x257   :  { %v2721_v41 = vmul.f32 %v7555_v46, %v1869_v1  ;;  %v1854_v21 = vrot.slane %v1853_v34, 1  ;;  %v1990_v26 = vrot.slane %v1989_v15, 4  ;;  %v1860_v62 = vadd.f32 %v1859_v47, %v1858_v11 }
 0x258   :  { %v1903_v37 = vrot.slane %v1902_v63, 1  ;;  %v1923_v30 = vadd.f32 %v1922_v59, %v1921_v22  ;;  %v1947_v9 = vsel %vm1358_vm1, %v1314_v5, 0.0  ;;  %v1986_v54 = vadd.f32 %v1985_v49, %v1984_v50  ;;  %v7561_v49 = vld [vmem:[#allocation17_spill] sm:$0xff] }
 0x259   :  { %v1906_v51 = vrot.slane %v1905_v18, 4  ;;  %v1940_v38 = vsel %vm1358_vm1, %v1313_v57, 0.0  ;;  %v7557_v10 = vunpack.c.l.bf16 %v7556_v45  ;;  %v1848_v29 = vadd.f32 %v1847_v7, %v1846_v28 }
 0x25a   :  { %v1939_v1 = vadd.f32 %v1938_v13, %v1937_v44  ;;  %v1932_v55 = vadd.f32 %v1931_v56, %v1930_v61  ;;  %v7558_v24 = vunpack.c.l.bf16 %v6375_v40  ;;  %v7559_v22 = vrot.slane %v6621_v33, 7  ;;  %v7564_v56 = vld [vmem:[#allocation42_spill] sm:$0xff] }
 0x25b   :  { %v1321_v27 = vmul.f32 %v977_v31, %v7557_v10  ;;  %v1991_v60 = vadd.f32 %v1990_v26, %v1989_v15  ;;  %v1948_v50 = vrot.slane %v1947_v9, 4  ;;  %v7560_v17 = vunpack.c.l.bf16 %v6377_v14  ;;  %v7563_v15 = vld [vmem:[#allocation18_spill] sm:$0xff] }
 0x25c   :  { %v1309_v11 = vmul.f32 %v6653_v53, %v7558_v24  ;;  %v6704_v47 = vsel %vm2993_vm2, %v7559_v22, %v2721_v41  ;;  %v1855_v25 = vadd.f32 %v1854_v21, %v1853_v34  ;;  %v1861_v23 = vrot.slane %v1860_v62, 1  ;;  %v1019_v53 = vpop.permute.xlu1 %1018  ;;  %v7566_v21 = vld [vmem:[#allocation32_spill] sm:$0xff] }
 0x25d   :  { %v1322_v59 = vmul.f32 %v984_v43, %v7560_v17  ;;  %v1904_v31 = vadd.f32 %v1903_v37, %v1902_v63  ;;  %v1941_v28 = vrot.slane %v1940_v38, 4  ;;  %v1924_v44 = vrot.slane %v1923_v30, 1  ;;  %v1026_v43 = vpop.permute.xlu0 %1025 }
 0x25e   :  { %v1987_v61 = vrot.slane %v1986_v54, 1  ;;  %v1907_v5 = vadd.f32 %v1906_v51, %v1905_v18  ;;  %v1996_v40 = vsel %vm1358_vm1, %v1321_v27, 0.0  ;;  %v2715_v33 = vmul.f32 %v7561_v49, %v1848_v29 }
 0x25f   :  { %v6711_v57 = vmul.f32 %v7562_v36, %v1939_v1  ;;  %v2739_v7 = vmul.f32 %v7563_v15, %v1932_v55  ;;  %v1912_v14 = vsel %vm1358_vm1, %v1309_v11, 0.0  ;;  %v1992_v34 = vrot.slane %v1991_v60, 2 }
 0x260   :  { %v1949_v13 = vadd.f32 %v1948_v50, %v1947_v9  ;;  %v2003_v63 = vsel %vm1358_vm1, %v1322_v59, 0.0  ;;  %v7565_v46 = vunpack.c.l.bf16 %v7564_v56  ;;  %v1862_v41 = vadd.f32 %v1861_v23, %v1860_v62  ;;  %v7567_v9 = vld [vmem:[#allocation25_spill] sm:$0xff]  ;;  %v991_v62 = vpop.permute.xlu1 %990 }
 0x261   :  { %v6719_v26 = vmul.f32 %v7566_v21, %v1904_v31  ;;  %v1942_v37 = vadd.f32 %v1941_v28, %v1940_v38  ;;  %v1997_v51 = vrot.slane %v1996_v40, 4  ;;  %v1925_v45 = vadd.f32 %v1924_v44, %v1923_v30  ;;  %v7568_v30 = vld [vmem:[#allocation52_spill] sm:$0xff]  ;;  %v949_v31 = vpop.permute.xlu0 %948 }
 0x262   :  { %v1318_v18 = vmul.f32 %v956_v2, %v7565_v46  ;;  %v1988_v10 = vadd.f32 %v1987_v61, %v1986_v54  ;;  %v1908_v27 = vrot.slane %v1907_v5, 2  ;;  %v1913_v29 = vrot.slane %v1912_v14, 4  ;;  %v7569_v28 = vld [vmem:[#allocation12_spill] sm:$0xff]  ;;  %v7570_v61 = vld [vmem:[#allocation26_spill] sm:$0xff] }
 0x263   :  { %v3119_v1 = vrot.slane %v2715_v33, 3  ;;  %v3141_v55 = vrot.slane %v6711_v57, 6  ;;  %v2004_v24 = vrot.slane %v2003_v63, 4  ;;  %v2717_v11 = vmul.f32 %v7567_v9, %v1855_v25 }
 0x264   :  { %v3139_v22 = vrot.slane %v2739_v7, 7  ;;  %v1993_v50 = vadd.f32 %v1992_v34, %v1991_v60  ;;  %v1950_v17 = vrot.slane %v1949_v13, 2  ;;  %v1975_v2 = vsel %vm1358_vm1, %v1318_v18, 0.0 }
 0x265   :  { %v3133_v59 = vrot.slane %v6719_v26, 3  ;;  %v1943_v38 = vrot.slane %v1942_v37, 2  ;;  %v1998_v23 = vadd.f32 %v1997_v51, %v1996_v40  ;;  %v2719_v54 = vmul.f32 %v7568_v30, %v1862_v41  ;;  %v1012_v30 = vpop.permute.xlu0 %1011  ;;  %v7601_v26 = vld [vmem:[#allocation72_spill] sm:$0xff] }
 0x266   :  { %v2737_v44 = vmul.f32 %v7569_v28, %v1925_v45  ;;  %v6728_v49 = vmul.f32 %v7570_v61, %v1988_v10  ;;  %v6730_v33 = vadd.f32 %v1908_v27, %v1907_v5  ;;  %v1914_v25 = vadd.f32 %v1913_v29, %v1912_v14  ;;  %v7576_v27 = vld [vmem:[#allocation45_spill] sm:$0xff]  ;;  %v7578_v29 = vld [vmem:[#allocation59_spill] sm:$0xff] }
 0x267   :  { %v2005_v60 = vadd.f32 %v2004_v24, %v2003_v63  ;;  %v1976_v36 = vrot.slane %v1975_v2, 4  ;;  %v7571_v15 = vrot.slane %v6598_v48, 6  ;;  %v3121_v34 = vrot.slane %v2717_v11, 2  ;;  %v7574_v63 = vld [vmem:[#allocation40_spill] sm:$0xff]  ;;  %v7580_v28 = vld [vmem:[#allocation61_spill] sm:$0xff] }
 0x268   :  { %v1994_v40 = vrot.slane %v1993_v50, 1  ;;  %v1951_v56 = vadd.f32 %v1950_v17, %v1949_v13  ;;  %v7572_v46 = vrot.slane %v6650_v0, 5  ;;  %v3123_v41 = vrot.slane %v2719_v54, 1 }
 0x269   :  { %v3114_v7 = vsel %vm2996_vm3, %v7571_v15, %v6618_v35  ;;  %v1944_v21 = vadd.f32 %v1943_v38, %v1942_v37  ;;  %v1999_v51 = vrot.slane %v1998_v23, 2  ;;  %v7573_v5 = vrot.slane %v6646_v19, 4  ;;  %v1075_v37 = vpop.permute.xlu1 %1074 }
 0x26a   :  { %v3116_v18 = vsel %vm2999_vm4, %v7572_v46, %v3114_v7  ;;  %v7575_v45 = vunpack.c.l.bf16 %v7574_v63  ;;  %v1915_v10 = vrot.slane %v1914_v25, 2  ;;  %v7577_v13 = vunpack.c.l.bf16 %v7576_v27  ;;  %v7584_v63 = vld [vmem:[#allocation68_spill] sm:$0xff] }
 0x26b   :  { %v3118_v14 = vsel %vm3002_vm5, %v7573_v5, %v3116_v18  ;;  %v7579_v24 = vunpack.c.l.bf16 %v7578_v29  ;;  %v6752_v11 = vsel %vm2993_vm2, %v3139_v22, %v2737_v44  ;;  %v2006_v19 = vrot.slane %v2005_v60, 2  ;;  %v7582_v5 = vld [vmem:[#allocation66_spill] sm:$0xff]  ;;  %v1082_v29 = vpop.permute.xlu0 %1081 }
 0x26c   :  { %v1316_v48 = vmul.f32 %v6693_v12, %v7575_v45  ;;  %v3120_v35 = vsel %vm3005_vm6, %v3119_v1, %v3118_v14  ;;  %v1315_v0 = vmul.f32 %v6690_v4, %v7577_v13  ;;  %v1977_v17 = vadd.f32 %v1976_v36, %v1975_v2 }
 0x26d   :  { %v1328_v9 = vmul.f32 %v1026_v43, %v7579_v24  ;;  %v3122_v38 = vsel %vm3008_vm7, %v3121_v34, %v3120_v35  ;;  %v3153_v12 = vrot.slane %v6728_v49, 7  ;;  %v1910_v1 = vrot.slane %v6730_v33, 1 }
 0x26e   :  { %v3124_v54 = vsel %vm3011_vm8, %v3123_v41, %v3122_v38  ;;  %v7581_v4 = vunpack.c.l.bf16 %v7580_v28  ;;  %v1995_v15 = vadd.f32 %v1994_v40, %v1993_v50  ;;  %v1952_v43 = vrot.slane %v1951_v56, 1 }
 0x26f   :  { %4121 = vmatprep.mubr.f32.mxu0 %v3124_v54  ;;  %v1961_v22 = vsel %vm1358_vm1, %v1316_v48, 0.0  ;;  %v1954_v44 = vsel %vm1358_vm1, %v1315_v0, 0.0  ;;  %v1945_v2 = vrot.slane %v1944_v21, 1  ;;  %v2000_v36 = vadd.f32 %v1999_v51, %v1998_v23  ;;  %v7586_v48 = vld [vmem:[#allocation62_spill] sm:$0xff]  ;;  %v6770_v0 = vpop.permute.xlu1 %997  ;;  %v6772_v23 = vpop.f32.mrb[2].mxu0 }
 0x270   :  { %v1327_v61 = vmul.f32 %v1019_v53, %v7581_v4  ;;  %v1916_v7 = vadd.f32 %v1915_v10, %v1914_v25  ;;  %v2045_v34 = vsel %vm1358_vm1, %v1328_v9, 0.0  ;;  %v2007_v46 = vadd.f32 %v2006_v19, %v2005_v60  ;;  %v7588_v25 = vld [vmem:[#allocation24_spill] sm:$0xff]  ;;  %v6778_v24 = vpop.f32.mrb[3].mxu0  ;;  %v7589_v4 = vld [vmem:[#allocation69_spill] sm:$0xff] }
 0x271   :  { %v1978_v18 = vrot.slane %v1977_v17, 2  ;;  %v7583_v14 = vunpack.c.l.bf16 %v7582_v5  ;;  %v7585_v45 = vunpack.c.l.bf16 %v7584_v63  ;;  %v1962_v50 = vrot.slane %v1961_v22, 4  ;;  %v7591_v63 = vld [vmem:[#allocation19_spill] sm:$0xff] }
 0x272   :  { %v1955_v40 = vrot.slane %v1954_v44, 4  ;;  %v2038_v35 = vsel %vm1358_vm1, %v1327_v61, 0.0  ;;  %v7587_v27 = vunpack.c.l.bf16 %v7586_v48  ;;  %v6775_v60 = vmul.f32 %v7588_v25, %v1995_v15  ;;  %v7592_v48 = vld [vmem:[#allocation22_spill] sm:$0xff] }
 0x273   :  { %v1323_v41 = vmul.f32 %v991_v62, %v7583_v14  ;;  %v1326_v53 = vmul.f32 %v1012_v30, %v7585_v45  ;;  %v1953_v51 = vadd.f32 %v1952_v43, %v1951_v56  ;;  %v2046_v10 = vrot.slane %v2045_v34, 4 }
 0x274   :  { %v1317_v13 = vmul.f32 %v949_v31, %v7587_v27  ;;  %v1946_v9 = vadd.f32 %v1945_v2, %v1944_v21  ;;  %v2001_v19 = vrot.slane %v2000_v36, 1  ;;  %v1917_v38 = vrot.slane %v1916_v7, 1 }
 0x275   :  { %v2010_v62 = vsel %vm1358_vm1, %v1323_v41, 0.0  ;;  %v2031_v30 = vsel %vm1358_vm1, %v1326_v53, 0.0  ;;  %v2008_v31 = vrot.slane %v2007_v46, 1  ;;  %v1979_v54 = vadd.f32 %v1978_v18, %v1977_v17 }
 0x276   :  { %v2039_v28 = vrot.slane %v2038_v35, 4  ;;  %v7590_v61 = vunpack.c.l.bf16 %v7589_v4  ;;  %v1963_v15 = vadd.f32 %v1962_v50, %v1961_v22  ;;  %v1956_v14 = vadd.f32 %v1955_v40, %v1954_v44 }
 0x277   :  { %v1968_v56 = vsel %vm1358_vm1, %v1317_v13, 0.0  ;;  %v2011_v43 = vrot.slane %v2010_v62, 4  ;;  %v1911_v41 = vadd.f32 %v1910_v1, %v6730_v33  ;;  %v6786_v45 = vmul.f32 %v7591_v63, %v1953_v51  ;;  %v1040_v13 = vpop.permute.xlu0 %1039 }
 0x278   :  { %v1335_v5 = vmul.f32 %v1075_v37, %v7590_v61  ;;  %v2047_v21 = vadd.f32 %v2046_v10, %v2045_v34  ;;  %v2032_v2 = vrot.slane %v2031_v30, 4  ;;  %v6789_v53 = vmul.f32 %v7592_v48, %v1946_v9  ;;  %v1033_v37 = vpop.permute.xlu1 %1032 }
 0x279   :  { %v2002_v17 = vadd.f32 %v2001_v19, %v2000_v36  ;;  %v1918_v18 = vadd.f32 %v1917_v38, %v1916_v7  ;;  %v2009_v22 = vadd.f32 %v2008_v31, %v2007_v46  ;;  %v1980_v44 = vrot.slane %v1979_v54, 1  ;;  %v7593_v7 = vld [vmem:[#allocation33_spill] sm:$0xff]  ;;  %v7594_v46 = vld [vmem:[#allocation55_spill] sm:$0xff] }
 0x27a   :  { %v2094_v27 = vsel %vm1358_vm1, %v1335_v5, 0.0  ;;  %v2040_v50 = vadd.f32 %v2039_v28, %v2038_v35  ;;  %v1969_v40 = vrot.slane %v1968_v56, 4  ;;  %v1964_v1 = vrot.slane %v1963_v15, 2  ;;  %v7595_v35 = vld [vmem:[#allocation56_spill] sm:$0xff] }
 0x27b   :  { %v1957_v25 = vrot.slane %v1956_v14, 2  ;;  %v2012_v51 = vadd.f32 %v2011_v43, %v2010_v62  ;;  %v2048_v10 = vrot.slane %v2047_v21, 2  ;;  %v2033_v9 = vadd.f32 %v2032_v2, %v2031_v30  ;;  %v7596_v28 = vld [vmem:[#allocation28_spill] sm:$0xff] }
 0x27c   :  { %v2095_v4 = vrot.slane %v2094_v27, 4  ;;  %v3143_v36 = vrot.slane %v6789_v53, 5  ;;  %v6796_v19 = vmul.f32 %v7593_v7, %v2002_v17  ;;  %v2733_v38 = vmul.f32 %v7594_v46, %v1911_v41  ;;  %v1005_v17 = vpop.permute.xlu1 %1004 }
 0x27d   :  { %v2735_v31 = vmul.f32 %v7595_v35, %v1918_v18  ;;  %v6801_v61 = vmul.f32 %v7596_v28, %v2009_v22  ;;  %v1981_v5 = vadd.f32 %v1980_v44, %v1979_v54  ;;  %v2041_v63 = vrot.slane %v2040_v50, 2  ;;  %v1089_v22 = vpop.permute.xlu0 %1088 }
 0x27e   :  { %v1970_v62 = vadd.f32 %v1969_v40, %v1968_v56  ;;  %v1965_v43 = vadd.f32 %v1964_v1, %v1963_v15  ;;  %v1958_v48 = vadd.f32 %v1957_v25, %v1956_v14  ;;  %v2013_v33 = vrot.slane %v2012_v51, 2  ;;  %v7598_v56 = vld [vmem:[#allocation70_spill] sm:$0xff] }
 0x27f   :  { %v7597_v30 = vrot.slane %v6637_v3, 6  ;;  %v2049_v7 = vadd.f32 %v2048_v10, %v2047_v21  ;;  %v2034_v34 = vrot.slane %v2033_v9, 2  ;;  %v2096_v41 = vadd.f32 %v2095_v4, %v2094_v27  ;;  %v7600_v40 = vld [vmem:[#allocation34_spill] sm:$0xff] }
 0x280   :  { %v3135_v15 = vrot.slane %v2733_v38, 2  ;;  %v3137_v14 = vrot.slane %v2735_v31, 1  ;;  %v7599_v44 = vunpack.c.l.bf16 %v7598_v56  ;;  %v2042_v1 = vadd.f32 %v2041_v63, %v2040_v50  ;;  %v1068_v31 = vpop.permute.xlu1 %1067 }
 0x281   :  { %v3128_v2 = vsel %vm2996_vm3, %v7597_v30, %v6704_v47  ;;  %v2753_v47 = vmul.f32 %v7600_v40, %v1981_v5  ;;  %v1971_v21 = vrot.slane %v1970_v62, 2  ;;  %v3159_v27 = vrot.slane %v6801_v61, 4  ;;  %v7603_v5 = vld [vmem:[#allocation74_spill] sm:$0xff]  ;;  %v1096_v63 = vpop.permute.xlu0 %1095 }
 0x282   :  { %v3130_v18 = vsel %vm2999_vm4, %v3129_v42, %v3128_v2  ;;  %v1336_v3 = vmul.f32 %v1082_v29, %v7599_v44  ;;  %v3157_v42 = vrot.slane %v6796_v19, 5  ;;  %v2014_v6 = vadd.f32 %v2013_v33, %v2012_v51  ;;  %v7605_v2 = vld [vmem:[#allocation71_spill] sm:$0xff]  ;;  %v177_v19 = vld [vmem:[#allocation2 + $0xe6] sm:$0x3] }
 0x283   :  { %v3132_v54 = vsel %vm3002_vm5, %v3131_v39, %v3130_v18  ;;  %v1966_v25 = vrot.slane %v1965_v43, 1  ;;  %v1959_v10 = vrot.slane %v1958_v48, 1  ;;  %v2035_v4 = vadd.f32 %v2034_v34, %v2033_v9 }
 0x284   :  { %v3134_v58 = vsel %vm3005_vm6, %v3133_v59, %v3132_v54  ;;  %v2050_v46 = vrot.slane %v2049_v7, 1  ;;  %v2097_v38 = vrot.slane %v2096_v41, 2  ;;  %v2101_v50 = vsel %vm1358_vm1, %v1336_v3, 0.0 }
 0x285   :  { %v3136_v39 = vsel %vm3008_vm7, %v3135_v15, %v3134_v58  ;;  %v7602_v35 = vunpack.c.l.bf16 %v7601_v26  ;;  %v6829_v33 = vsel %vm2993_vm2, %v3153_v12, %v2753_v47  ;;  %v2043_v51 = vrot.slane %v2042_v1, 1  ;;  %v7607_v15 = vld [vmem:[#allocation77_spill] sm:$0xff] }
 0x286   :  { %v3138_v29 = vsel %vm3011_vm8, %v3137_v14, %v3136_v39  ;;  %v1972_v28 = vadd.f32 %v1971_v21, %v1970_v62  ;;  %v7604_v34 = vunpack.c.l.bf16 %v7603_v5  ;;  %v2015_v30 = vrot.slane %v2014_v6, 1  ;;  %v7609_v47 = vld [vmem:[#allocation81_spill] sm:$0xff] }
 0x287   :  { %4122 = vmatmul.mubr.f32.gmra.mrb[8].mxu0 %v3138_v29  ;;  %v1330_v59 = vmul.f32 %v1040_v13, %v7602_v35  ;;  %v7606_v18 = vunpack.c.l.bf16 %v7605_v2  ;;  %v7608_v14 = vunpack.c.l.bf16 %v7607_v15  ;;  %v4337_v49 = vpack.c.bf16 %v6772_v23, %v6778_v24 }
 0x288   :  { %v1329_v9 = vmul.f32 %v1033_v37, %v7604_v34  ;;  %v1967_v56 = vadd.f32 %v1966_v25, %v1965_v43  ;;  %v1960_v12 = vadd.f32 %v1959_v10, %v1958_v48  ;;  %v2036_v44 = vrot.slane %v2035_v4, 1  ;;  %v7613_v48 = vld [vmem:[#allocation84_spill] sm:$0xff]  ;;  %v6850_v25 = vpop.permute.xlu1 %1046  ;;  %v7616_v34 = vld [vmem:[#allocation47_spill] sm:$0xff] }
 0x289   :  { %v1324_v54 = vmul.f32 %v6770_v0, %v7606_v18  ;;  %v1337_v13 = vmul.f32 %v1089_v22, %v7608_v14  ;;  %v2102_v3 = vrot.slane %v2101_v50, 4  ;;  %v2051_v62 = vadd.f32 %v2050_v46, %v2049_v7  ;;  %4338 = vmatprep.subr.bf16.mxu1 %v4337_v49  ;;  %v7611_v22 = vld [vmem:[#allocation79_spill] sm:$0xff]  ;;  %v7617_v18 = vld [vmem:[#allocation46_spill] sm:$0xff] }
 0x28a   :  { %v2098_v40 = vadd.f32 %v2097_v38, %v2096_v41  ;;  %v2059_v37 = vsel %vm1358_vm1, %v1330_v59, 0.0  ;;  %v7610_v21 = vunpack.c.l.bf16 %v7609_v47  ;;  %v2044_v39 = vadd.f32 %v2043_v51, %v2042_v1  ;;  %4340 = vmatpush3.bf16.msra.mxu1 %v4337_v49  ;;  %v7615_v59 = vld [vmem:[#allocation29_spill] sm:$0xff]  ;;  %v7619_v49 = vld [vmem:[#allocation35_spill] sm:$0xff] }
 0x28b   :  { %v1973_v0 = vrot.slane %v1972_v28, 1  ;;  %v2052_v29 = vsel %vm1358_vm1, %v1329_v9, 0.0  ;;  %v7612_v26 = vunpack.c.l.bf16 %v7611_v22  ;;  %v2016_v23 = vadd.f32 %v2015_v30, %v2014_v6 }
 0x28c   :  { %v1338_v58 = vmul.f32 %v1096_v63, %v7610_v21  ;;  %v2017_v24 = vsel %vm1358_vm1, %v1324_v54, 0.0  ;;  %v2108_v43 = vsel %vm1358_vm1, %v1337_v13, 0.0  ;;  %v7614_v7 = vunpack.c.l.bf16 %v7613_v48  ;;  %v1131_v22 = vpop.permute.xlu1 %1130 }
 0x28d   :  { %v1325_v35 = vmul.f32 %v1005_v17, %v7612_v26  ;;  %v2037_v10 = vadd.f32 %v2036_v44, %v2035_v4  ;;  %v2103_v46 = vadd.f32 %v2102_v3, %v2101_v50  ;;  %v2060_v1 = vrot.slane %v2059_v37, 4  ;;  %v7618_v4 = vld [vmem:[#allocation27_spill] sm:$0xff] }
 0x28e   :  { %v1334_v41 = vmul.f32 %v1068_v31, %v7614_v7  ;;  %v2115_v38 = vsel %vm1358_vm1, %v1338_v58, 0.0  ;;  %v2747_v51 = vmul.f32 %v7615_v59, %v1960_v12  ;;  %v2099_v5 = vrot.slane %v2098_v40, 1  ;;  %v1054_v31 = vpop.permute.xlu0 %1053 }
 0x28f   :  { %v2053_v17 = vrot.slane %v2052_v29, 4  ;;  %v2771_v9 = vmul.f32 %v7616_v34, %v2044_v39  ;;  %v2018_v63 = vrot.slane %v2017_v24, 4  ;;  %v2109_v30 = vrot.slane %v2108_v43, 4 }
 0x290   :  { %v2087_v6 = vsel %vm1358_vm1, %v1334_v41, 0.0  ;;  %v2024_v2 = vsel %vm1358_vm1, %v1325_v35, 0.0  ;;  %v6858_v54 = vmul.f32 %v7617_v18, %v2051_v62  ;;  %v6861_v50 = vmul.f32 %v7618_v4, %v2016_v23  ;;  %v7620_v62 = vld [vmem:[#allocation30_spill] sm:$0xff]  ;;  %v1103_v57 = vpop.permute.xlu1 %1102 }
 0x291   :  { %v2116_v15 = vrot.slane %v2115_v38, 4  ;;  %v2088_v14 = vrot.slane %v2087_v6, 4  ;;  %v1974_v13 = vadd.f32 %v1973_v0, %v1972_v28  ;;  %v2769_v12 = vmul.f32 %v7619_v49, %v2037_v10 }
 0x292   :  { %v2104_v44 = vrot.slane %v2103_v46, 2  ;;  %v2061_v3 = vadd.f32 %v2060_v1, %v2059_v37  ;;  %v3147_v47 = vrot.slane %v2747_v51, 3  ;;  %v2100_v21 = vadd.f32 %v2099_v5, %v2098_v40  ;;  %v7621_v40 = vld [vmem:[#allocation31_spill] sm:$0xff]  ;;  %v1138_v1 = vpop.permute.xlu0 %1137 }
 0x293   :  { %v2054_v58 = vadd.f32 %v2053_v17, %v2052_v29  ;;  %v2025_v39 = vrot.slane %v2024_v2, 4  ;;  %v3167_v26 = vrot.slane %v2771_v9, 7  ;;  %v2019_v35 = vadd.f32 %v2018_v63, %v2017_v24  ;;  %v7622_v51 = vld [vmem:[#allocation63_spill] sm:$0xff]  ;;  %v176_v9 = vld [vmem:[#allocation2 + $0xe4] sm:$0x3] }
 0x294   :  { %v2110_v48 = vadd.f32 %v2109_v30, %v2108_v43  ;;  %v2749_v7 = vmul.f32 %v7620_v62, %v1967_v56  ;;  %v3169_v23 = vrot.slane %v6858_v54, 6  ;;  %v3161_v41 = vrot.slane %v6861_v50, 3 }
 0x295   :  { %v2117_v59 = vadd.f32 %v2116_v15, %v2115_v38  ;;  %v2089_v28 = vadd.f32 %v2088_v14, %v2087_v6  ;;  %v6868_v0 = vsel %vm2993_vm2, %v3167_v26, %v2769_v12  ;;  %v2105_v37 = vadd.f32 %v2104_v44, %v2103_v46  ;;  %v163_v38 = vld [vmem:[#allocation2 + $0xca] sm:$0x3]  ;;  %v175_v15 = vld [vmem:[#allocation2 + $0xe2] sm:$0x3] }
 0x296   :  { %v2062_v10 = vrot.slane %v2061_v3, 2  ;;  %v2751_v29 = vmul.f32 %v7621_v40, %v1974_v13  ;;  %v6872_v5 = vmul.f32 %v7622_v51, %v2100_v21  ;;  %v2055_v24 = vrot.slane %v2054_v58, 2  ;;  %v171_v21 = vld [vmem:[#allocation2 + $0xda] sm:$0x3]  ;;  %v165_v40 = vld [vmem:[#allocation2 + $0xce] sm:$0x3] }
 0x297   :  { %v2026_v43 = vadd.f32 %v2025_v39, %v2024_v2  ;;  %v3142_v56 = vsel %vm2996_vm3, %v3141_v55, %v6752_v11  ;;  %v2020_v17 = vrot.slane %v2019_v35, 2  ;;  %v2111_v6 = vrot.slane %v2110_v48, 2 }
 0x298   :  { %v3144_v46 = vsel %vm2999_vm4, %v3143_v36, %v3142_v56  ;;  %v3149_v34 = vrot.slane %v2749_v7, 2  ;;  %v2118_v63 = vrot.slane %v2117_v59, 2  ;;  %v2090_v30 = vrot.slane %v2089_v28, 2  ;;  %v1061_v7 = vpop.permute.xlu0 %1060 }
 0x299   :  { %v7623_v18 = vrot.slane %v6786_v45, 4  ;;  %v3151_v4 = vrot.slane %v2751_v29, 1  ;;  %v2106_v14 = vrot.slane %v2105_v37, 1  ;;  %v2063_v55 = vadd.f32 %v2062_v10, %v2061_v3 }
 0x29a   :  { %v291_v13 = vunpack.c.l.bf16 %v163_v38  ;;  %v2056_v49 = vadd.f32 %v2055_v24, %v2054_v58  ;;  %v2027_v53 = vrot.slane %v2026_v43, 2  ;;  %v7624_v12 = vunpack.c.l.bf16 %v6540_v20 }
 0x29b   :  { %v3146_v2 = vsel %vm3002_vm5, %v7623_v18, %v3144_v46  ;;  %v2112_v39 = vadd.f32 %v2111_v6, %v2110_v48  ;;  %v304_v26 = vunpack.c.l.bf16 %v176_v9  ;;  %v303_v62 = vunpack.c.l.bf16 %v175_v15  ;;  %v1187_v46 = vpop.permute.xlu1 %1186  ;;  %v183_v15 = vld [vmem:[#allocation2 + $0xf2] sm:$0x3] }
 0x29c   :  { %v3148_v11 = vsel %vm3005_vm6, %v3147_v47, %v3146_v2  ;;  %v1332_v44 = vmul.f32 %v1054_v31, %v7624_v12  ;;  %v3181_v3 = vrot.slane %v6872_v5, 7  ;;  %v2119_v10 = vadd.f32 %v2118_v63, %v2117_v59  ;;  %v174_v31 = vld [vmem:[#allocation2 + $0xe0] sm:$0x3] }
 0x29d   :  { %v3150_v36 = vsel %vm3008_vm7, %v3149_v34, %v3148_v11  ;;  %v2091_v47 = vadd.f32 %v2090_v30, %v2089_v28  ;;  %v1331_v58 = vmul.f32 %v6850_v25, %v291_v13  ;;  %v2107_v29 = vadd.f32 %v2106_v14, %v2105_v37  ;;  %v7625_v37 = vld [vmem:[#allocation64_spill] sm:$0xff] }
 0x29e   :  { %v3152_v45 = vsel %vm3011_vm8, %v3151_v4, %v3150_v36  ;;  %v2021_v51 = vadd.f32 %v2020_v17, %v2019_v35  ;;  %v2064_v24 = vrot.slane %v2063_v55, 1  ;;  %v299_v20 = vunpack.c.l.bf16 %v171_v21  ;;  %v1124_v4 = vpop.permute.xlu0 %1123 }
 0x29f   :  { %4124 = vmatprep.mubr.f32.mxu0 %v3152_v45  ;;  %v2028_v56 = vadd.f32 %v2027_v53, %v2026_v43  ;;  %v2073_v48 = vsel %vm1358_vm1, %v1332_v44, 0.0  ;;  %v1343_v38 = vmul.f32 %v1131_v22, %v303_v62  ;;  %v293_v6 = vunpack.c.l.bf16 %v165_v40 }
 0x2a0   :  { %v2057_v34 = vrot.slane %v2056_v49, 1  ;;  %v2113_v9 = vrot.slane %v2112_v39, 1  ;;  %v1344_v18 = vmul.f32 %v1138_v1, %v304_v26  ;;  %v1339_v2 = vmul.f32 %v1103_v57, %v299_v20  ;;  %v6899_v26 = vpop.permute.xlu1 %1109 }
 0x2a1   :  { %v2120_v59 = vrot.slane %v2119_v10, 1  ;;  %v2092_v28 = vrot.slane %v2091_v47, 1  ;;  %v2066_v63 = vsel %vm1358_vm1, %v1331_v58, 0.0  ;;  %v302_v25 = vunpack.c.l.bf16 %v174_v31  ;;  %v7627_v31 = vld [vmem:[#allocation41_spill] sm:$0xff] }
 0x2a2   :  { %v6894_v35 = vmul.f32 %v7625_v37, %v2107_v29  ;;  %v2022_v17 = vrot.slane %v2021_v51, 1  ;;  %v2065_v30 = vadd.f32 %v2064_v24, %v2063_v55  ;;  %v2074_v43 = vrot.slane %v2073_v48, 4  ;;  %v7626_v29 = vld [vmem:[#allocation38_spill] sm:$0xff] }
 0x2a3   :  { %v2029_v22 = vrot.slane %v2028_v56, 1  ;;  %v2150_v14 = vsel %vm1358_vm1, %v1343_v38, 0.0  ;;  %v1333_v11 = vmul.f32 %v1061_v7, %v293_v6  ;;  %v2122_v1 = vsel %vm1358_vm1, %v1339_v2, 0.0  ;;  %v1194_v2 = vpop.permute.xlu0 %1193 }
 0x2a4   :  { %v2058_v57 = vadd.f32 %v2057_v34, %v2056_v49  ;;  %v2114_v13 = vadd.f32 %v2113_v9, %v2112_v39  ;;  %v2067_v53 = vrot.slane %v2066_v63, 4  ;;  %v2157_v36 = vsel %vm1358_vm1, %v1344_v18, 0.0  ;;  %v7630_v34 = vld [vmem:[#allocation73_spill] sm:$0xff] }
 0x2a5   :  { %v2121_v12 = vadd.f32 %v2120_v59, %v2119_v10  ;;  %v2093_v44 = vadd.f32 %v2092_v28, %v2091_v47  ;;  %v1342_v21 = vmul.f32 %v1124_v4, %v302_v25  ;;  %v311_v45 = vunpack.c.l.bf16 %v183_v15  ;;  %v7628_v47 = vld [vmem:[#allocation65_spill] sm:$0xff]  ;;  %v7632_v15 = vld [vmem:[#allocation44_spill] sm:$0xff] }
 0x2a6   :  { %v2023_v55 = vadd.f32 %v2022_v17, %v2021_v51  ;;  %v2075_v62 = vadd.f32 %v2074_v43, %v2073_v48  ;;  %v2151_v40 = vrot.slane %v2150_v14, 4  ;;  %v2123_v58 = vrot.slane %v2122_v1, 4  ;;  %v7629_v51 = vld [vmem:[#allocation67_spill] sm:$0xff] }
 0x2a7   :  { %v6902_v24 = vmul.f32 %v7626_v29, %v2065_v30  ;;  %v2030_v7 = vadd.f32 %v2029_v22, %v2028_v56  ;;  %v2158_v20 = vrot.slane %v2157_v36, 4  ;;  %v2080_v49 = vsel %vm1358_vm1, %v1333_v11, 0.0  ;;  %v7631_v43 = vld [vmem:[#allocation43_spill] sm:$0xff]  ;;  %v1145_v22 = vpop.permute.xlu1 %1144  ;;  %v178_v29 = vld [vmem:[#allocation2 + $0xe8] sm:$0x3] }
 0x2a8   :  { %v3183_v39 = vrot.slane %v6894_v35, 6  ;;  %v6907_v10 = vmul.f32 %v7627_v31, %v2058_v57  ;;  %v6910_v38 = vmul.f32 %v7628_v47, %v2114_v13  ;;  %v2068_v6 = vadd.f32 %v2067_v53, %v2066_v63  ;;  %v1152_v31 = vpop.permute.xlu0 %1151 }
 0x2a9   :  { %v6913_v48 = vmul.f32 %v7629_v51, %v2121_v12  ;;  %v2785_v9 = vmul.f32 %v7630_v34, %v2093_v44  ;;  %v2143_v18 = vsel %vm1358_vm1, %v1342_v21, 0.0  ;;  %v1351_v56 = vmul.f32 %v1187_v46, %v311_v45  ;;  %v184_v44 = vld [vmem:[#allocation2 + $0xf4] sm:$0x3] }
 0x2aa   :  { %v2076_v59 = vrot.slane %v2075_v62, 2  ;;  %v2152_v28 = vadd.f32 %v2151_v40, %v2150_v14  ;;  %v2081_v25 = vrot.slane %v2080_v49, 4  ;;  %v2124_v37 = vadd.f32 %v2123_v58, %v2122_v1  ;;  %v172_v58 = vld [vmem:[#allocation2 + $0xdc] sm:$0x3] }
 0x2ab   :  { %v3173_v17 = vrot.slane %v6902_v24, 4  ;;  %v2159_v30 = vadd.f32 %v2158_v20, %v2157_v36  ;;  %v2765_v4 = vmul.f32 %v7631_v43, %v2023_v55  ;;  %v2767_v63 = vmul.f32 %v7632_v15, %v2030_v7 }
 0x2ac   :  { %v3171_v11 = vrot.slane %v6907_v10, 5  ;;  %v3185_v57 = vrot.slane %v6910_v38, 5  ;;  %v2069_v13 = vrot.slane %v2068_v6, 2  ;;  %v2144_v53 = vrot.slane %v2143_v18, 4 }
 0x2ad   :  { %v3187_v46 = vrot.slane %v6913_v48, 4  ;;  %v6926_v14 = vsel %vm2993_vm2, %v3181_v3, %v2785_v9  ;;  %v2206_v1 = vsel %vm1358_vm1, %v1351_v56, 0.0  ;;  %v7633_v36 = vrot.slane %v6775_v60, 6  ;;  %v185_v56 = vld [vmem:[#allocation2 + $0xf6] sm:$0x3] }
 0x2ae   :  { %v6933_v21 = vadd.f32 %v2076_v59, %v2075_v62  ;;  %v2153_v45 = vrot.slane %v2152_v28, 2  ;;  %v2082_v55 = vadd.f32 %v2081_v25, %v2080_v49  ;;  %v2125_v40 = vrot.slane %v2124_v37, 2 }
 0x2af   :  { %v3156_v12 = vsel %vm2996_vm3, %v7633_v36, %v6829_v33  ;;  %v2160_v7 = vrot.slane %v2159_v30, 2  ;;  %v3163_v3 = vrot.slane %v2765_v4, 2  ;;  %v3165_v20 = vrot.slane %v2767_v63, 1  ;;  %v1201_v36 = vpop.permute.xlu0 %1200 }
 0x2b0   :  { %v3158_v5 = vsel %vm2999_vm4, %v3157_v42, %v3156_v12  ;;  %v2070_v47 = vadd.f32 %v2069_v13, %v2068_v6  ;;  %v2145_v60 = vadd.f32 %v2144_v53, %v2143_v18  ;;  %v2207_v51 = vrot.slane %v2206_v1, 4  ;;  %v1117_v42 = vpop.permute.xlu1 %1116  ;;  %v173_v18 = vld [vmem:[#allocation2 + $0xde] sm:$0x3] }
 0x2b1   :  { %v3160_v33 = vsel %vm3002_vm5, %v3159_v27, %v3158_v5  ;;  %v312_v49 = vunpack.c.l.bf16 %v184_v44  ;;  %v300_v34 = vunpack.c.l.bf16 %v172_v58  ;;  %v306_v9 = vunpack.c.l.bf16 %v178_v29  ;;  %v182_v58 = vld [vmem:[#allocation2 + $0xf0] sm:$0x3] }
 0x2b2   :  { %v3162_v62 = vsel %vm3005_vm6, %v3161_v41, %v3160_v33  ;;  %v2154_v59 = vadd.f32 %v2153_v45, %v2152_v28  ;;  %v2083_v25 = vrot.slane %v2082_v55, 2  ;;  %v2126_v43 = vadd.f32 %v2125_v40, %v2124_v37 }
 0x2b3   :  { %v3164_v6 = vsel %vm3008_vm7, %v3163_v3, %v3162_v62  ;;  %v1352_v4 = vmul.f32 %v1194_v2, %v312_v49  ;;  %v1340_v27 = vmul.f32 %v6899_v26, %v300_v34  ;;  %v1346_v50 = vmul.f32 %v1152_v31, %v306_v9 }
 0x2b4   :  { %v3166_v61 = vsel %vm3011_vm8, %v3165_v20, %v3164_v6  ;;  %v2146_v15 = vrot.slane %v2145_v60, 2  ;;  %v2208_v41 = vadd.f32 %v2207_v51, %v2206_v1  ;;  %v305_v63 = vunpack.c.l.bf16 %v177_v19  ;;  %v1180_v3 = vpop.permute.xlu1 %1179  ;;  %v186_v6 = vld [vmem:[#allocation2 + $0xf8] sm:$0x3] }
 0x2b5   :  { %4125 = vmatmul.mubr.f32.gmra.mrb[10].mxu0 %v3166_v61  ;;  %v313_v13 = vunpack.c.l.bf16 %v185_v56  ;;  %v2213_v53 = vsel %vm1358_vm1, %v1352_v4, 0.0  ;;  %v2129_v28 = vsel %vm1358_vm1, %v1340_v27, 0.0  ;;  %v2171_v37 = vsel %vm1358_vm1, %v1346_v50, 0.0 }
 0x2b6   :  { %v301_v12 = vunpack.c.l.bf16 %v173_v18  ;;  %v2071_v44 = vrot.slane %v2070_v47, 1  ;;  %v2161_v45 = vadd.f32 %v2160_v7, %v2159_v30  ;;  %v2214_v40 = vrot.slane %v2213_v53, 4 }
 0x2b7   :  { %v2130_v2 = vrot.slane %v2129_v28, 4  ;;  %v2155_v26 = vrot.slane %v2154_v59, 1  ;;  %v2084_v29 = vadd.f32 %v2083_v25, %v2082_v55  ;;  %v1345_v5 = vmul.f32 %v1145_v22, %v305_v63 }
 0x2b8   :  { %v1341_v1 = vmul.f32 %v1117_v42, %v301_v12  ;;  %v2127_v20 = vrot.slane %v2126_v43, 1  ;;  %v2209_v31 = vrot.slane %v2208_v41, 2  ;;  %v2172_v51 = vrot.slane %v2171_v37, 4 }
 0x2b9   :  { %v1353_v33 = vmul.f32 %v1201_v36, %v313_v13  ;;  %v2078_v62 = vrot.slane %v6933_v21, 1  ;;  %v2147_v49 = vadd.f32 %v2146_v15, %v2145_v60  ;;  %v310_v9 = vunpack.c.l.bf16 %v182_v58  ;;  %v6954_v13 = vpop.permute.xlu1 %1158  ;;  %v7636_v58 = vld [vmem:[#allocation75_spill] sm:$0xff] }
 0x2ba   :  { %v2136_v34 = vsel %vm1358_vm1, %v1341_v1, 0.0  ;;  %v2162_v19 = vrot.slane %v2161_v45, 1  ;;  %v2215_v30 = vadd.f32 %v2214_v40, %v2213_v53  ;;  %v2131_v7 = vadd.f32 %v2130_v2, %v2129_v28  ;;  %v7635_v40 = vld [vmem:[#allocation85_spill] sm:$0xff] }
 0x2bb   :  { %v2164_v56 = vsel %vm1358_vm1, %v1345_v5, 0.0  ;;  %v2072_v55 = vadd.f32 %v2071_v44, %v2070_v47  ;;  %v2156_v22 = vadd.f32 %v2155_v26, %v2154_v59  ;;  %v2085_v42 = vrot.slane %v2084_v29, 1  ;;  %v1208_v47 = vpop.permute.xlu0 %1207  ;;  %v7634_v59 = vld [vmem:[#allocation39_spill] sm:$0xff] }
 0x2bc   :  { %v2137_v25 = vrot.slane %v2136_v34, 4  ;;  %v2128_v18 = vadd.f32 %v2127_v20, %v2126_v43  ;;  %v2210_v61 = vadd.f32 %v2209_v31, %v2208_v41  ;;  %v2173_v4 = vadd.f32 %v2172_v51, %v2171_v37  ;;  %v7637_v31 = vld [vmem:[#allocation83_spill] sm:$0xff] }
 0x2bd   :  { %v2220_v27 = vsel %vm1358_vm1, %v1353_v33, 0.0  ;;  %v2148_v50 = vrot.slane %v2147_v49, 1  ;;  %v2165_v60 = vrot.slane %v2164_v56, 4  ;;  %v314_v15 = vunpack.c.l.bf16 %v186_v6 }
 0x2be   :  { %v1350_v63 = vmul.f32 %v1180_v3, %v310_v9  ;;  %v2079_v53 = vadd.f32 %v2078_v62, %v6933_v21  ;;  %v2163_v28 = vadd.f32 %v2162_v19, %v2161_v45  ;;  %v2216_v36 = vrot.slane %v2215_v30, 2  ;;  %v7638_v9 = vld [vmem:[#allocation57_spill] sm:$0xff] }
 0x2bf   :  { %v2132_v12 = vrot.slane %v2131_v7, 2  ;;  %v2779_v44 = vmul.f32 %v7634_v59, %v2072_v55  ;;  %v6959_v43 = vmul.f32 %v7635_v40, %v2156_v22  ;;  %v2221_v41 = vrot.slane %v2220_v27, 4  ;;  %v1166_v22 = vpop.permute.xlu1 %1165 }
 0x2c0   :  { %v2138_v37 = vadd.f32 %v2137_v25, %v2136_v34  ;;  %v2086_v2 = vadd.f32 %v2085_v42, %v2084_v29  ;;  %v6962_v26 = vmul.f32 %v7636_v58, %v2128_v18  ;;  %v2211_v5 = vrot.slane %v2210_v61, 1 }
 0x2c1   :  { %v2174_v1 = vrot.slane %v2173_v4, 2  ;;  %v2149_v3 = vadd.f32 %v2148_v50, %v2147_v49  ;;  %v2166_v20 = vadd.f32 %v2165_v60, %v2164_v56  ;;  %v1354_v21 = vmul.f32 %v1208_v47, %v314_v15  ;;  %v7639_v56 = vld [vmem:[#allocation60_spill] sm:$0xff]  ;;  %v7640_v60 = vld [vmem:[#allocation82_spill] sm:$0xff] }
 0x2c2   :  { %v2199_v45 = vsel %vm1358_vm1, %v1350_v63, 0.0  ;;  %v6966_v51 = vmul.f32 %v7637_v31, %v2163_v28  ;;  %v2217_v33 = vadd.f32 %v2216_v36, %v2215_v30  ;;  %v2133_v62 = vadd.f32 %v2132_v12, %v2131_v7  ;;  %v1215_v63 = vpop.permute.xlu0 %1214  ;;  %v181_v31 = vld [vmem:[#allocation2 + $0xee] sm:$0x3] }
 0x2c3   :  { %v2781_v19 = vmul.f32 %v7638_v9, %v2079_v53  ;;  %v3175_v6 = vrot.slane %v2779_v44, 3  ;;  %v3195_v29 = vrot.slane %v6959_v43, 7  ;;  %v2222_v34 = vadd.f32 %v2221_v41, %v2220_v27  ;;  %v187_v27 = vld [vmem:[#allocation2 + $0xfa] sm:$0x3]  ;;  %v179_v44 = vld [vmem:[#allocation2 + $0xea] sm:$0x3] }
 0x2c4   :  { %v2139_v55 = vrot.slane %v2138_v37, 2  ;;  %v2212_v42 = vadd.f32 %v2211_v5, %v2210_v61  ;;  %v6970_v25 = vadd.f32 %v2174_v1, %v2173_v4  ;;  %v2200_v49 = vrot.slane %v2199_v45, 4  ;;  %v180_v5 = vld [vmem:[#allocation2 + $0xec] sm:$0x3]  ;;  %v1173_v1 = vpop.permute.xlu1 %1172 }
 0x2c5   :  { %v2783_v18 = vmul.f32 %v7639_v56, %v2086_v2  ;;  %v3189_v50 = vrot.slane %v6962_v26, 3  ;;  %v6975_v15 = vmul.f32 %v7640_v60, %v2149_v3  ;;  %v2167_v30 = vrot.slane %v2166_v20, 2 }
 0x2c6   :  { %v2227_v7 = vsel %vm1358_vm1, %v1354_v21, 0.0  ;;  %v2218_v53 = vrot.slane %v2217_v33, 1  ;;  %v2134_v28 = vrot.slane %v2133_v62, 1  ;;  %v3170_v61 = vsel %vm2996_vm3, %v3169_v23, %v6868_v0  ;;  %v6992_v23 = vpop.f32.mrb[4].mxu0 }
 0x2c7   :  { %v3177_v4 = vrot.slane %v2781_v19, 2  ;;  %v2223_v36 = vrot.slane %v2222_v34, 2  ;;  %v2140_v12 = vadd.f32 %v2139_v55, %v2138_v37  ;;  %v3172_v47 = vsel %vm2999_vm4, %v3171_v11, %v3170_v61  ;;  %v188_v11 = vld [vmem:[#allocation2 + $0xfc] sm:$0x3]  ;;  %v6995_v3 = vpop.f32.mrb[5].mxu0 }
 0x2c8   :  { %v3179_v59 = vrot.slane %v2783_v18, 1  ;;  %v6986_v40 = vmul.f32 %v6566_v52, %v2212_v42  ;;  %v2176_v41 = vrot.slane %v6970_v25, 1  ;;  %v2201_v2 = vadd.f32 %v2200_v49, %v2199_v45 }
 0x2c9   :  { %v3174_v54 = vsel %vm3002_vm5, %v3173_v17, %v3172_v47  ;;  %v2168_v0 = vadd.f32 %v2167_v30, %v2166_v20  ;;  %v2228_v37 = vrot.slane %v2227_v7, 4  ;;  %v315_v58 = vunpack.c.l.bf16 %v187_v27 }
 0x2ca   :  { %v3176_v10 = vsel %vm3005_vm6, %v3175_v6, %v3174_v54  ;;  %v6997_v52 = vadd.f32 %v2218_v53, %v2217_v33  ;;  %v2135_v21 = vadd.f32 %v2134_v28, %v2133_v62  ;;  %v307_v24 = vunpack.c.l.bf16 %v179_v44  ;;  %v1222_v6 = vpop.permute.xlu0 %1221  ;;  %v189_v33 = vld [vmem:[#allocation2 + $0xfe] sm:$0x3]  ;;  %v7641_v54 = vld [vmem:[#allocation78_spill] sm:$0xff] }
 0x2cb   :  { %v3178_v45 = vsel %vm3008_vm7, %v3177_v4, %v3176_v10  ;;  %v7000_v17 = vadd.f32 %v2223_v36, %v2222_v34  ;;  %v2141_v9 = vrot.slane %v2140_v12, 1  ;;  %v1355_v19 = vmul.f32 %v1215_v63, %v315_v58  ;;  %v1229_v36 = vpop.permute.xlu1 %1228 }
 0x2cc   :  { %v3180_v20 = vsel %vm3011_vm8, %v3179_v59, %v3178_v45  ;;  %v2202_v55 = vrot.slane %v2201_v2, 2  ;;  %v1347_v42 = vmul.f32 %v6954_v13, %v307_v24  ;;  %v316_v49 = vunpack.c.l.bf16 %v188_v11 }
 0x2cd   :  { %4127 = vmatprep.mubr.f32.mxu0 %v3180_v20  ;;  %v308_v56 = vunpack.c.l.bf16 %v180_v5  ;;  %v2169_v18 = vrot.slane %v2168_v0, 1  ;;  %v2229_v62 = vadd.f32 %v2228_v37, %v2227_v7  ;;  %v2234_v60 = vsel %vm1358_vm1, %v1355_v19, 0.0  ;;  %v7643_v19 = vld [vmem:[#allocation80_spill] sm:$0xff] }
 0x2ce   :  { %v309_v30 = vunpack.c.l.bf16 %v181_v31  ;;  %v2235_v53 = vrot.slane %v2234_v60, 4  ;;  %v2178_v34 = vsel %vm1358_vm1, %v1347_v42, 0.0  ;;  %v1356_v28 = vmul.f32 %v1222_v6, %v316_v49 }
 0x2cf   :  { %v1348_v61 = vmul.f32 %v1166_v22, %v308_v56  ;;  %v2142_v4 = vadd.f32 %v2141_v9, %v2140_v12  ;;  %v2179_v63 = vrot.slane %v2178_v34, 4  ;;  %v317_v47 = vunpack.c.l.bf16 %v189_v33  ;;  %v7642_v9 = vld [vmem:[#allocation58_spill] sm:$0xff] }
 0x2d0   :  { %v1349_v27 = vmul.f32 %v1173_v1, %v309_v30  ;;  %v2203_v59 = vadd.f32 %v2202_v55, %v2201_v2  ;;  %v2241_v13 = vsel %vm1358_vm1, %v1356_v28, 0.0  ;;  %v2797_v7 = vmul.f32 %v7641_v54, %v2135_v21  ;;  %v7645_v54 = vld [vmem:[#allocation87_spill] sm:$0xff] }
 0x2d1   :  { %v2185_v44 = vsel %vm1358_vm1, %v1348_v61, 0.0  ;;  %v2236_v37 = vadd.f32 %v2235_v53, %v2234_v60  ;;  %v2180_v10 = vadd.f32 %v2179_v63, %v2178_v34  ;;  %v2242_v5 = vrot.slane %v2241_v13, 4 }
 0x2d2   :  { %v2186_v58 = vrot.slane %v2185_v44, 4  ;;  %v2192_v11 = vsel %vm1358_vm1, %v1349_v27, 0.0  ;;  %v1357_v22 = vmul.f32 %v1229_v36, %v317_v47  ;;  %v3184_v12 = vsel %vm2996_vm3, %v3183_v39, %v6926_v14  ;;  %v7644_v14 = vld [vmem:[#allocation76_spill] sm:$0xff] }
 0x2d3   :  { %v2193_v45 = vrot.slane %v2192_v11, 4  ;;  %v2225_v2 = vrot.slane %v7000_v17, 1  ;;  %v2230_v1 = vrot.slane %v2229_v62, 2  ;;  %v2181_v24 = vrot.slane %v2180_v10, 2 }
 0x2d4   :  { %v2187_v31 = vadd.f32 %v2186_v58, %v2185_v44  ;;  %v2438_v21 = vrot.slane %v7642_v9, 5  ;;  %v2248_v20 = vsel %vm1358_vm1, %v1357_v22, 0.0  ;;  %v2799_v6 = vmul.f32 %v7643_v19, %v2142_v4 }
 0x2d5   :  { %v3186_v55 = vsel %vm2999_vm4, %v3185_v57, %v3184_v12  ;;  %v2204_v42 = vrot.slane %v2203_v59, 1  ;;  %v2237_v49 = vrot.slane %v2236_v37, 2  ;;  %v2194_v35 = vadd.f32 %v2193_v45, %v2192_v11 }
 0x2d6   :  { %v2249_v56 = vrot.slane %v2248_v20, 4  ;;  %v2170_v39 = vadd.f32 %v2169_v18, %v2168_v0  ;;  %v2445_v33 = vrot.slane %v7644_v14, 5  ;;  %v2243_v60 = vadd.f32 %v2242_v5, %v2241_v13 }
 0x2d7   :  { %v3191_v30 = vrot.slane %v2797_v7, 2  ;;  %v2182_v53 = vadd.f32 %v2181_v24, %v2180_v10  ;;  %v2188_v34 = vrot.slane %v2187_v31, 2  ;;  %v3188_v61 = vsel %vm3002_vm5, %v3187_v46, %v3186_v55  ;;  %v7646_v24 = vld [vmem:[#allocation86_spill] sm:$0xff] }
 0x2d8   :  { %v2250_v28 = vadd.f32 %v2249_v56, %v2248_v20  ;;  %v2231_v4 = vadd.f32 %v2230_v1, %v2229_v62  ;;  %4681 = vrcp.f32 %v2438_v21  ;;  %v3190_v38 = vsel %vm3005_vm6, %v3189_v50, %v3188_v61 }
 0x2d9   :  { %v3193_v57 = vrot.slane %v2799_v6, 1  ;;  %v2205_v63 = vadd.f32 %v2204_v42, %v2203_v59  ;;  %v2238_v0 = vadd.f32 %v2237_v49, %v2236_v37  ;;  %v2195_v18 = vrot.slane %v2194_v35, 2 }
 0x2da   :  { %v3192_v27 = vsel %vm3008_vm7, %v3191_v30, %v3190_v38  ;;  %4683 = vrcp.f32 %v2445_v33  ;;  %v2244_v36 = vrot.slane %v2243_v60, 2  ;;  %v2439_v48 = vrot.slane %v7642_v9, 6 }
 0x2db   :  { %v3194_v47 = vsel %vm3011_vm8, %v3193_v57, %v3192_v27  ;;  %v2177_v46 = vadd.f32 %v2176_v41, %v6970_v25  ;;  %v2183_v62 = vrot.slane %v2182_v53, 1  ;;  %v2189_v26 = vadd.f32 %v2188_v34, %v2187_v31 }
 0x2dc   :  { %v2251_v13 = vrot.slane %v2250_v28, 2  ;;  %4128 = vmatmul.mubr.f32.gmra.mrb[12].mxu0 %v3194_v47  ;;  %v2226_v50 = vadd.f32 %v2225_v2, %v7000_v17  ;;  %v2232_v59 = vrot.slane %v2231_v4, 1  ;;  %v2440_v44 = vrot.slane %v7642_v9, 7 }
 0x2dd   :  { %4685 = vrcp.f32 %v2439_v48  ;;  %v2807_v7 = vmul.f32 %v7645_v54, %v2170_v39  ;;  %v2239_v37 = vrot.slane %v2238_v0, 1  ;;  %v2196_v10 = vadd.f32 %v2195_v18, %v2194_v35  ;;  %v7647_v35 = vld [vmem:[#allocation48_spill] sm:$0xff] }
 0x2de   :  { %v2446_v58 = vrot.slane %v7644_v14, 6  ;;  %v2817_v11 = vmul.f32 %v6563_v16, %v2205_v63  ;;  %v2245_v5 = vadd.f32 %v2244_v36, %v2243_v60  ;;  %4687 = vrcp.f32 %v2440_v44 }
 0x2df   :  { %v2447_v25 = vrot.slane %v7644_v14, 7  ;;  %v2184_v41 = vadd.f32 %v2183_v62, %v2182_v53  ;;  %v2190_v45 = vrot.slane %v2189_v26, 1  ;;  %v2252_v22 = vadd.f32 %v2251_v13, %v2250_v28 }
 0x2e0   :  { %4689 = vrcp.f32 %v2446_v58  ;;  %v2821_v17 = vmul.f32 %v6574_v8, %v6997_v52  ;;  %v2233_v12 = vadd.f32 %v2232_v59, %v2231_v4  ;;  %v4341_v2 = vpack.c.bf16 %v6992_v23, %v6995_v3 }
 0x2e1   :  { %4691 = vrcp.f32 %v2447_v25  ;;  %v3209_v1 = vrot.slane %v6986_v40, 7  ;;  %v2809_v16 = vmul.f32 %v7646_v24, %v2177_v46  ;;  %v2240_v31 = vadd.f32 %v2239_v37, %v2238_v0  ;;  %v3581_v24 = vld [vmem:[#allocation7 + $0x20] sm:$0xff] }
 0x2e2   :  { %v2197_v9 = vrot.slane %v2196_v10, 1  ;;  %v4682_v21 = vpop.eup %4681  ;;  %v3196_v20 = vsel %vm2993_vm2, %v3195_v29, %v6975_v15  ;;  %v3199_v19 = vrot.slane %v2807_v7, 5  ;;  %v2823_v8 = vmul.f32 %v6587_v32, %v2226_v50  ;;  %4342 = vmatprep.subr.bf16.mxu1 %v4341_v2 }
 0x2e3   :  { %v2246_v52 = vrot.slane %v2245_v5, 1  ;;  %v3210_v6 = vsel %vm2993_vm2, %v3209_v1, %v2817_v11  ;;  %v2811_v23 = vmul.f32 %v4682_v21, %v2184_v41  ;;  %v2191_v3 = vadd.f32 %v2190_v45, %v2189_v26  ;;  %4344 = vmatpush3.bf16.msra.mxu1 %v4341_v2  ;;  %v7069_v11 = vld [vmem:[%s7195_s2] sm:$0xff]  ;;  %v3580_v2 = vld [vmem:[#allocation7 + $0x18] sm:$0xff] }
 0x2e4   :  { %v2253_v40 = vrot.slane %v2252_v22, 1  ;;  %v4684_v55 = vpop.eup %4683  ;;  %v3197_v42 = vrot.slane %v6966_v51, 6  ;;  %v3211_v49 = vrot.slane %v2821_v17, 6  ;;  %v2825_v56 = vmul.f32 %v7647_v35, %v2233_v12  ;;  %4165 = vmatprep.mubr.f32.mxu1 %v7069_v11  ;;  %v3577_v45 = vld [vmem:[#allocation7] sm:$0xff]  ;;  %v3579_v17 = vld [vmem:[#allocation7 + $0x10] sm:$0xff]  ;;  %v3584_v21 = vld [vmem:[#allocation7 + $0x38] sm:$0xff] }
 0x2e5   :  { %v3201_v43 = vrot.slane %v2809_v16, 4  ;;  %v2827_v39 = vmul.f32 %v4684_v55, %v2240_v31  ;;  %v2198_v29 = vadd.f32 %v2197_v9, %v2196_v10  ;;  %v3213_v14 = vrot.slane %v2823_v8, 5  ;;  %v3582_v16 = vld [vmem:[#allocation7 + $0x28] sm:$0xff]  ;;  %v3583_v9 = vld [vmem:[#allocation7 + $0x30] sm:$0xff] }
 0x2e6   :  { %v2247_v32 = vadd.f32 %v2246_v52, %v2245_v5  ;;  %v3198_v33 = vsel %vm2996_vm3, %v3197_v42, %v3196_v20  ;;  %v3212_v60 = vsel %vm2996_vm3, %v3211_v49, %v3210_v6  ;;  %v3203_v30 = vrot.slane %v2811_v23, 3  ;;  %v3586_v8 = vld [vmem:[#allocation7 + $0x48] sm:$0xff]  ;;  %v3587_v6 = vld [vmem:[#allocation7 + $0x50] sm:$0xff]  ;;  %v3588_v23 = vld [vmem:[#allocation7 + $0x58] sm:$0xff] }
 0x2e7   :  { %v4686_v15 = vpop.eup %4685  ;;  %v2254_v53 = vadd.f32 %v2253_v40, %v2252_v22  ;;  %v3200_v28 = vsel %vm2999_vm4, %v3199_v19, %v3198_v33  ;;  %v3215_v51 = vrot.slane %v2825_v56, 4  ;;  %v3217_v38 = vrot.slane %v2827_v39, 3  ;;  %v3578_v22 = vld [vmem:[#allocation7 + $0x8] sm:$0xff]  ;;  %v3585_v19 = vld [vmem:[#allocation7 + $0x40] sm:$0xff] }
 0x2e8   :  { %v2813_v34 = vmul.f32 %v4686_v15, %v2191_v3  ;;  %v4688_v61 = vpop.eup %4687  ;;  %v3214_v0 = vsel %vm2999_vm4, %v3213_v14, %v3212_v60  ;;  %v3202_v27 = vsel %vm3002_vm5, %v3201_v43, %v3200_v28  ;;  %v4365_v12 = vpack.c.bf16 %v3578_v22, %v3577_v45  ;;  %v3589_v40 = vld [vmem:[#allocation7 + $0x60] sm:$0xff]  ;;  %v3590_v55 = vld [vmem:[#allocation7 + $0x68] sm:$0xff]  ;;  %v7080_v60 = vld [vmem:[%s7195_s2 + $0x10] sm:$0xff] }
 0x2e9   :  { %v2815_v57 = vmul.f32 %v4688_v61, %v2198_v29  ;;  %v3204_v47 = vsel %vm3005_vm6, %v3203_v30, %v3202_v27  ;;  %v3216_v26 = vsel %vm3002_vm5, %v3215_v51, %v3214_v0  ;;  %v4369_v1 = vpack.c.bf16 %v3580_v2, %v3579_v17  ;;  %v7075_v33 = vld [vmem:[%s7195_s2 + $0x8] sm:$0xff]  ;;  %v7087_v30 = vld [vmem:[%s7195_s2 + $0x18] sm:$0xff]  ;;  %v7104_v28 = vld [vmem:[%s7195_s2 + $0x30] sm:$0xff] }
 0x2ea   :  { %v4690_v4 = vpop.eup %4689  ;;  %v3205_v63 = vrot.slane %v2813_v34, 2  ;;  %v3218_v59 = vsel %vm3005_vm6, %v3217_v38, %v3216_v26  ;;  %4366 = vmatprep.subr.bf16.mxu0 %v4365_v12  ;;  %v4373_v31 = vpack.c.bf16 %v3582_v16, %v3581_v24  ;;  %v4377_v20 = vpack.c.bf16 %v3584_v21, %v3583_v9  ;;  %v7099_v34 = vld [vmem:[%s7195_s2 + $0x28] sm:$0xff]  ;;  %v7111_v61 = vld [vmem:[%s7195_s2 + $0x38] sm:$0xff]  ;;  %v7116_v51 = vld [vmem:[%s7195_s2 + $0x40] sm:$0xff] }
 0x2eb   :  { %v4692_v18 = vpop.eup %4691  ;;  %v2829_v36 = vmul.f32 %v4690_v4, %v2247_v32  ;;  %v3207_v48 = vrot.slane %v2815_v57, 1  ;;  %4368 = vmatpush3.bf16.msra.mxu0 %v4365_v12  ;;  %v4381_v52 = vpack.c.bf16 %v3586_v8, %v3585_v19  ;;  %v4385_v3 = vpack.c.bf16 %v3588_v23, %v3587_v6  ;;  %v7123_v4 = vld [vmem:[%s7195_s2 + $0x48] sm:$0xff]  ;;  %v7128_v38 = vld [vmem:[%s7195_s2 + $0x50] sm:$0xff]  ;;  %v7135_v57 = vld [vmem:[%s7195_s2 + $0x58] sm:$0xff] }
 0x2ec   :  { %v2831_v46 = vmul.f32 %v4692_v18, %v2254_v53  ;;  %v3206_v62 = vsel %vm3008_vm7, %v3205_v63, %v3204_v47  ;;  %4370 = vmatprep.subr.bf16.mxu0 %v4369_v1  ;;  %v4389_v42 = vpack.c.bf16 %v3590_v55, %v3589_v40  ;;  %v7092_v53 = vld [vmem:[%s7195_s2 + $0x20] sm:$0xff]  ;;  %v7147_v0 = vld [vmem:[%s7195_s2 + $0x68] sm:$0xff]  ;;  %v7152_v18 = vld [vmem:[%s7195_s2 + $0x70] sm:$0xff] }
 0x2ed   :  { %v3219_v13 = vrot.slane %v2829_v36, 2  ;;  %v3208_v50 = vsel %vm3011_vm8, %v3207_v48, %v3206_v62  ;;  %v7140_v63 = vld [vmem:[%s7195_s2 + $0x60] sm:$0xff]  ;;  %v7159_v27 = vld [vmem:[%s7195_s2 + $0x78] sm:$0xff]  ;;  %v3591_v36 = vld [vmem:[#allocation7 + $0x70] sm:$0xff]  ;;  %s4805_s2 = smov [#allocation8]  }
 0x2ee   :  { %v3221_v44 = vrot.slane %v2831_v46, 1  ;;  %4130 = vmatprep.mubr.f32.mxu0 %v3208_v50  ;;  %v3592_v47 = vld [vmem:[#allocation7 + $0x78] sm:$0xff]  ;;  %s3936_s4 = sshll.u32 %s4805_s2, 4  ;;  %s3937_s4 = int_to_ptr.vmem [resolvable:$true] %s3936_s4 }
 0x2ef   :  { %v3220_v54 = vsel %vm3008_vm7, %v3219_v13, %v3218_v59  ;;  %4372 = vmatpush3.bf16.msra.mxu0 %v4369_v1  ;;  %v4393_v48 = vpack.c.bf16 %v3592_v47, %v3591_v36  ;;  %s4770_s14 = scalar_lea.vmem %s3937_s4, 2048  ;;  %p4775_p11 = scmp.lt.s32.totalorder %s3937_s4, %s3937_s4 }
 0x2f0   :  { %v3222_v7 = vsel %vm3011_vm8, %v3221_v44, %v3220_v54  ;;  %4374 = vmatprep.subr.bf16.mxu0 %v4373_v31  ;;  %p4771_p10 = scmp.ne.s32.totalorder %s3937_s4, %s4770_s14  ;;  %p4776_p12 = scmp.lt.s32.totalorder %s4770_s14, %s4770_s14 }
 0x2f1   :  { %4131 = vmatmul.mubr.f32.gmra.mrb[14].mxu0 %v3222_v7 }
 0x2f2   :  { %p4777_p13 = por %p4776_p12, %p4775_p11 }
 0x2f3   :  { %4376 = vmatpush3.bf16.msra.mxu0 %v4373_v31 }
 0x2f4   :  { %4378 = vmatprep.subr.bf16.mxu0 %v4377_v20  ;;  %p4778_p0 = pnand %p4777_p13, %p4771_p10 }
 0x2f7   :  { %4380 = vmatpush3.bf16.msra.mxu0 %v4377_v20 }
 0x2f8   :  { %4382 = vmatprep.subr.bf16.mxu0 %v4381_v52 }
 0x2fb   :  { %4384 = vmatpush3.bf16.msra.mxu0 %v4381_v52 }
 0x2fc   :  { %4386 = vmatprep.subr.bf16.mxu0 %v4385_v3 }
 0x2ff   :  { %4388 = vmatpush3.bf16.msra.mxu0 %v4385_v3 }
 0x300   :  { %4390 = vmatprep.subr.bf16.mxu0 %v4389_v42 }
 0x303   :  { %4392 = vmatpush3.bf16.msra.mxu0 %v4389_v42 }
 0x304   :  { %4394 = vmatprep.subr.bf16.mxu0 %v4393_v48 }
 0x307   :  { %4396 = vmatpush3.bf16.msra.mxu0 %v4393_v48 }
 0x329   :  { %v4120_v37 = vpop.f32.mrb[6].mxu0 }
 0x32a   :  { %v3335_v10 = vpop.f32.mrb[7].mxu0 }
 0x32b   :  { %v4345_v58 = vpack.c.bf16 %v4120_v37, %v3335_v10 }
 0x32d   :  { %4346 = vmatprep.subr.bf16.mxu1 %v4345_v58 }
 0x32e   :  { %4348 = vmatpush3.bf16.msra.mxu1 %v4345_v58 }
 0x35a   :  { %v4123_v5 = vpop.f32.mrb[8].mxu0 }
 0x35b   :  { %v3345_v25 = vpop.f32.mrb[9].mxu0 }
 0x35c   :  { %v4349_v41 = vpack.c.bf16 %v4123_v5, %v3345_v25 }
 0x35e   :  { %4350 = vmatprep.subr.bf16.mxu1 %v4349_v41 }
 0x35f   :  { %4352 = vmatpush3.bf16.msra.mxu1 %v4349_v41 }
 0x388   :  { %v4126_v49 = vpop.f32.mrb[10].mxu0 }
 0x389   :  { %v3355_v35 = vpop.f32.mrb[11].mxu0 }
 0x38a   :  { %v4353_v56 = vpack.c.bf16 %v4126_v49, %v3355_v35 }
 0x38c   :  { %4354 = vmatprep.subr.bf16.mxu1 %v4353_v56 }
 0x38d   :  { %4356 = vmatpush3.bf16.msra.mxu1 %v4353_v56 }
 0x3af   :  { %v4129_v43 = vpop.f32.mrb[12].mxu0 }
 0x3b0   :  { %v3365_v39 = vpop.f32.mrb[13].mxu0 }
 0x3b1   :  { %v4357_v29 = vpack.c.bf16 %v4129_v43, %v3365_v39 }
 0x3b3   :  { %4358 = vmatprep.subr.bf16.mxu1 %v4357_v29 }
 0x3b4   :  { %4360 = vmatpush3.bf16.msra.mxu1 %v4357_v29 }
 0x3c4   :  { %v4132_v15 = vpop.f32.mrb[14].mxu0 }
 0x3c5   :  { %v3375_v14 = vpop.f32.mrb[15].mxu0 }
 0x3c6   :  { %v4361_v32 = vpack.c.bf16 %v4132_v15, %v3375_v14 }
 0x3c8   :  { %4362 = vmatprep.subr.bf16.mxu1 %v4361_v32 }
 0x3c9   :  { %4364 = vmatpush3.bf16.msra.mxu1 %v4361_v32 }
 0x3cc   :  { %4166 = vmatmul.mubr.f32.vlgmr.msra.gmra.mrb[0].mxu1 %v7075_v33 }
 0x3cd   :  { %4168 = vmatprep.mubr.f32.mxu1 %v7080_v60 }
 0x3d0   :  { %4169 = vmatmul.mubr.f32.gmra.mrb[2].mxu1 %v7087_v30 }
 0x3d1   :  { %4171 = vmatprep.mubr.f32.mxu1 %v7092_v53 }
 0x3d4   :  { %4172 = vmatmul.mubr.f32.gmra.mrb[4].mxu1 %v7099_v34 }
 0x3d5   :  { %4174 = vmatprep.mubr.f32.mxu1 %v7104_v28 }
 0x3d8   :  { %4175 = vmatmul.mubr.f32.gmra.mrb[6].mxu1 %v7111_v61 }
 0x3d9   :  { %4177 = vmatprep.mubr.f32.mxu1 %v7116_v51 }
 0x3dc   :  { %4178 = vmatmul.mubr.f32.gmra.mrb[8].mxu1 %v7123_v4 }
 0x3dd   :  { %4180 = vmatprep.mubr.f32.mxu1 %v7128_v38 }
 0x3e0   :  { %4181 = vmatmul.mubr.f32.gmra.mrb[10].mxu1 %v7135_v57 }
 0x3e1   :  { %4183 = vmatprep.mubr.f32.mxu1 %v7140_v63 }
 0x3e4   :  { %4184 = vmatmul.mubr.f32.gmra.mrb[12].mxu1 %v7147_v0 }
 0x3e5   :  { %4186 = vmatprep.mubr.f32.mxu1 %v7152_v18 }
 0x3e8   :  { %4187 = vmatmul.mubr.f32.gmra.mrb[14].mxu1 %v7159_v27 }
 0x3e9   :  { %4277 = vmatprep.mubr.f32.mxu1 %v7069_v11 }
 0x49f   :  { %v4167_v46 = vpop.f32.mrb[0].mxu1 }
 0x4a0   :  { %v3546_v62 = vmul.f32 0.2, %v4167_v46  ;;  %v3450_v26 = vpop.f32.mrb[1].mxu1  ;;  %vm3530_vm9 = vcmp.gt.f32.partialorder %v4167_v46, 0.0 }
 0x4a1   :  { %vm3529_vm10 = vcmp.gt.f32.partialorder %v3450_v26, 0.0  ;;  %v3545_v13 = vmul.f32 0.2, %v3450_v26 }
 0x4a2   :  { %v3562_v44 = vsel %vm3530_vm9, %v4167_v46, %v3546_v62 }
 0x4a3   :  { %v4170_v50 = vpop.f32.mrb[2].mxu1  ;;  %v3561_v59 = vsel %vm3529_vm10, %v3450_v26, %v3545_v13 }
 0x4a4   :  { %v3548_v54 = vmul.f32 0.2, %v4170_v50  ;;  %v3460_v7 = vpop.f32.mrb[3].mxu1  ;;  %4221 = vmatprep.mubr.f32.mxu0 %v3561_v59  ;;  %vm3532_vm11 = vcmp.gt.f32.partialorder %v4170_v50, 0.0 }
 0x4a5   :  { %vm3531_vm12 = vcmp.gt.f32.partialorder %v3460_v7, 0.0  ;;  %v3547_v37 = vmul.f32 0.2, %v3460_v7  ;;  %4222 = vmatmul.mubr.f32.vlgmr.msra.gmra.mrb[16].mxu0 %v3562_v44 }
 0x4a6   :  { %v3564_v25 = vsel %vm3532_vm11, %v4170_v50, %v3548_v54 }
 0x4a7   :  { %v4173_v10 = vpop.f32.mrb[4].mxu1  ;;  %v3563_v58 = vsel %vm3531_vm12, %v3460_v7, %v3547_v37 }
 0x4a8   :  { %v3550_v11 = vmul.f32 0.2, %v4173_v10  ;;  %v3470_v5 = vpop.f32.mrb[5].mxu1  ;;  %4224 = vmatprep.mubr.f32.mxu0 %v3563_v58  ;;  %vm3534_vm13 = vcmp.gt.f32.partialorder %v4173_v10, 0.0 }
 0x4a9   :  { %vm3533_vm14 = vcmp.gt.f32.partialorder %v3470_v5, 0.0  ;;  %v3549_v41 = vmul.f32 0.2, %v3470_v5  ;;  %4225 = vmatmul.mubr.f32.gmra.mrb[18].mxu0 %v3564_v25 }
 0x4aa   :  { %v3566_v2 = vsel %vm3534_vm13, %v4173_v10, %v3550_v11 }
 0x4ab   :  { %v4176_v45 = vpop.f32.mrb[6].mxu1  ;;  %v3565_v22 = vsel %vm3533_vm14, %v3470_v5, %v3549_v41 }
 0x4ac   :  { %v3552_v17 = vmul.f32 0.2, %v4176_v45  ;;  %v3480_v12 = vpop.f32.mrb[7].mxu1  ;;  %4227 = vmatprep.mubr.f32.mxu0 %v3565_v22  ;;  %vm3536_vm15 = vcmp.gt.f32.partialorder %v4176_v45, 0.0 }
 0x4ad   :  { %vm3535_vm0 = vcmp.gt.f32.partialorder %v3480_v12, 0.0  ;;  %v3551_v1 = vmul.f32 0.2, %v3480_v12  ;;  %4228 = vmatmul.mubr.f32.gmra.mrb[20].mxu0 %v3566_v2 }
 0x4ae   :  { %v3568_v21 = vsel %vm3536_vm15, %v4176_v45, %v3552_v17 }
 0x4af   :  { %v4179_v24 = vpop.f32.mrb[8].mxu1  ;;  %v3567_v16 = vsel %vm3535_vm0, %v3480_v12, %v3551_v1 }
 0x4b0   :  { %v3554_v31 = vmul.f32 0.2, %v4179_v24  ;;  %v3490_v9 = vpop.f32.mrb[9].mxu1  ;;  %4230 = vmatprep.mubr.f32.mxu0 %v3567_v16  ;;  %vm3538_vm1 = vcmp.gt.f32.partialorder %v4179_v24, 0.0 }
 0x4b1   :  { %vm3537_vm2 = vcmp.gt.f32.partialorder %v3490_v9, 0.0  ;;  %v3553_v20 = vmul.f32 0.2, %v3490_v9  ;;  %4231 = vmatmul.mubr.f32.gmra.mrb[22].mxu0 %v3568_v21 }
 0x4b2   :  { %v3570_v23 = vsel %vm3538_vm1, %v4179_v24, %v3554_v31 }
 0x4b3   :  { %v4182_v19 = vpop.f32.mrb[10].mxu1  ;;  %v3569_v8 = vsel %vm3537_vm2, %v3490_v9, %v3553_v20 }
 0x4b4   :  { %v3556_v52 = vmul.f32 0.2, %v4182_v19  ;;  %v3500_v6 = vpop.f32.mrb[11].mxu1  ;;  %4233 = vmatprep.mubr.f32.mxu0 %v3569_v8  ;;  %vm3540_vm3 = vcmp.gt.f32.partialorder %v4182_v19, 0.0 }
 0x4b5   :  { %vm3539_vm4 = vcmp.gt.f32.partialorder %v3500_v6, 0.0  ;;  %v3555_v3 = vmul.f32 0.2, %v3500_v6  ;;  %4234 = vmatmul.mubr.f32.gmra.mrb[24].mxu0 %v3570_v23 }
 0x4b6   :  { %v3572_v35 = vsel %vm3540_vm3, %v4182_v19, %v3556_v52 }
 0x4b7   :  { %v4185_v40 = vpop.f32.mrb[12].mxu1  ;;  %v3571_v55 = vsel %vm3539_vm4, %v3500_v6, %v3555_v3 }
 0x4b8   :  { %v3558_v42 = vmul.f32 0.2, %v4185_v40  ;;  %v3510_v49 = vpop.f32.mrb[13].mxu1  ;;  %4236 = vmatprep.mubr.f32.mxu0 %v3571_v55  ;;  %vm3542_vm5 = vcmp.gt.f32.partialorder %v4185_v40, 0.0 }
 0x4b9   :  { %vm3541_vm6 = vcmp.gt.f32.partialorder %v3510_v49, 0.0  ;;  %v3557_v56 = vmul.f32 0.2, %v3510_v49  ;;  %4237 = vmatmul.mubr.f32.gmra.mrb[26].mxu0 %v3572_v35 }
 0x4ba   :  { %v3574_v14 = vsel %vm3542_vm5, %v4185_v40, %v3558_v42 }
 0x4bb   :  { %v4188_v43 = vpop.f32.mrb[14].mxu1  ;;  %v3573_v39 = vsel %vm3541_vm6, %v3510_v49, %v3557_v56 }
 0x4bc   :  { %v3560_v29 = vmul.f32 0.2, %v4188_v43  ;;  %v3520_v15 = vpop.f32.mrb[15].mxu1  ;;  %4239 = vmatprep.mubr.f32.mxu0 %v3573_v39  ;;  %vm3544_vm7 = vcmp.gt.f32.partialorder %v4188_v43, 0.0 }
 0x4bd   :  { %vm3543_vm8 = vcmp.gt.f32.partialorder %v3520_v15, 0.0  ;;  %v3559_v32 = vmul.f32 0.2, %v3520_v15  ;;  %4240 = vmatmul.mubr.f32.gmra.mrb[28].mxu0 %v3574_v14 }
 0x4be   :  { %v3576_v47 = vsel %vm3544_vm7, %v4188_v43, %v3560_v29 }
 0x4bf   :  { %v3575_v36 = vsel %vm3543_vm8, %v3520_v15, %v3559_v32 }
 0x4c0   :  { %4242 = vmatprep.mubr.f32.mxu0 %v3575_v36 }
 0x4c1   :  { %4243 = vmatmul.mubr.f32.gmra.mrb[30].mxu0 %v3576_v47 }
 0x578   :  { %v4223_v48 = vpop.f32.mrb[16].mxu0 }
 0x579   :  { %v3659_v46 = vpop.f32.mrb[17].mxu0 }
 0x57a   :  { %v4397_v62 = vpack.c.bf16 %v4223_v48, %v3659_v46 }
 0x57c   :  { %v4226_v26 = vpop.f32.mrb[18].mxu0  ;;  %4398 = vmatprep.subr.bf16.mxu1 %v4397_v62 }
 0x57d   :  { %v3669_v13 = vpop.f32.mrb[19].mxu0  ;;  %4400 = vmatpush3.bf16.msra.mxu1 %v4397_v62 }
 0x57e   :  { %v4401_v50 = vpack.c.bf16 %v4226_v26, %v3669_v13 }
 0x580   :  { %v4229_v59 = vpop.f32.mrb[20].mxu0  ;;  %4402 = vmatprep.subr.bf16.mxu1 %v4401_v50 }
 0x581   :  { %v3679_v44 = vpop.f32.mrb[21].mxu0  ;;  %4404 = vmatpush3.bf16.msra.mxu1 %v4401_v50 }
 0x582   :  { %v4405_v54 = vpack.c.bf16 %v4229_v59, %v3679_v44 }
 0x584   :  { %v4232_v7 = vpop.f32.mrb[22].mxu0  ;;  %4406 = vmatprep.subr.bf16.mxu1 %v4405_v54 }
 0x585   :  { %v3689_v37 = vpop.f32.mrb[23].mxu0  ;;  %4408 = vmatpush3.bf16.msra.mxu1 %v4405_v54 }
 0x586   :  { %v4409_v10 = vpack.c.bf16 %v4232_v7, %v3689_v37 }
 0x588   :  { %v4235_v58 = vpop.f32.mrb[24].mxu0  ;;  %4410 = vmatprep.subr.bf16.mxu1 %v4409_v10 }
 0x589   :  { %v3699_v11 = vpop.f32.mrb[25].mxu0  ;;  %4412 = vmatpush3.bf16.msra.mxu1 %v4409_v10 }
 0x58a   :  { %v4413_v5 = vpack.c.bf16 %v4235_v58, %v3699_v11 }
 0x58c   :  { %v4238_v25 = vpop.f32.mrb[26].mxu0  ;;  %4414 = vmatprep.subr.bf16.mxu1 %v4413_v5 }
 0x58d   :  { %v3709_v41 = vpop.f32.mrb[27].mxu0  ;;  %4416 = vmatpush3.bf16.msra.mxu1 %v4413_v5 }
 0x58e   :  { %v4417_v45 = vpack.c.bf16 %v4238_v25, %v3709_v41 }
 0x590   :  { %v4241_v22 = vpop.f32.mrb[28].mxu0  ;;  %4418 = vmatprep.subr.bf16.mxu1 %v4417_v45 }
 0x591   :  { %v3719_v17 = vpop.f32.mrb[29].mxu0  ;;  %4420 = vmatpush3.bf16.msra.mxu1 %v4417_v45 }
 0x592   :  { %v4421_v12 = vpack.c.bf16 %v4241_v22, %v3719_v17 }
 0x594   :  { %v4244_v2 = vpop.f32.mrb[30].mxu0  ;;  %4422 = vmatprep.subr.bf16.mxu1 %v4421_v12 }
 0x595   :  { %v3729_v1 = vpop.f32.mrb[31].mxu0  ;;  %4424 = vmatpush3.bf16.msra.mxu1 %v4421_v12 }
 0x596   :  { %v4425_v24 = vpack.c.bf16 %v4244_v2, %v3729_v1 }
 0x598   :  { %4426 = vmatprep.subr.bf16.mxu1 %v4425_v24 }
 0x599   :  { %4428 = vmatpush3.bf16.msra.mxu1 %v4425_v24 }
 0x59c   :  { %4278 = vmatmul.mubr.f32.vlgmr.msra.gmra.mrb[16].mxu1 %v7075_v33 }
 0x59d   :  { %4280 = vmatprep.mubr.f32.mxu1 %v7080_v60 }
 0x5a0   :  { %4281 = vmatmul.mubr.f32.gmra.mrb[18].mxu1 %v7087_v30 }
 0x5a1   :  { %4283 = vmatprep.mubr.f32.mxu1 %v7092_v53 }
 0x5a4   :  { %4284 = vmatmul.mubr.f32.gmra.mrb[20].mxu1 %v7099_v34 }
 0x5a5   :  { %4286 = vmatprep.mubr.f32.mxu1 %v7104_v28 }
 0x5a8   :  { %4287 = vmatmul.mubr.f32.gmra.mrb[22].mxu1 %v7111_v61 }
 0x5a9   :  { %4289 = vmatprep.mubr.f32.mxu1 %v7116_v51 }
 0x5ac   :  { %4290 = vmatmul.mubr.f32.gmra.mrb[24].mxu1 %v7123_v4 }
 0x5ad   :  { %4292 = vmatprep.mubr.f32.mxu1 %v7128_v38 }
 0x5b0   :  { %4293 = vmatmul.mubr.f32.gmra.mrb[26].mxu1 %v7135_v57 }
 0x5b1   :  { %4295 = vmatprep.mubr.f32.mxu1 %v7140_v63 }
 0x5b4   :  { %4296 = vmatmul.mubr.f32.gmra.mrb[28].mxu1 %v7147_v0 }
 0x5b5   :  { %4298 = vmatprep.mubr.f32.mxu1 %v7152_v18 }
 0x5b8   :  { %4299 = vmatmul.mubr.f32.gmra.mrb[30].mxu1 %v7159_v27 }
 0x66f   :  { %v4279_v33 = vpop.f32.mrb[16].mxu1 }
 0x670   :  { %v3804_v60 = vpop.f32.mrb[17].mxu1 }
 0x671   :  { %3883 = vxpose.xlu0.b32.start [1/16] %v3804_v60, 128 }
 0x673   :  { %v4282_v30 = vpop.f32.mrb[18].mxu1 }
 0x674   :  { %v3814_v53 = vpop.f32.mrb[19].mxu1 }
 0x675   :  { %3884 = vxpose.xlu0.b32.cont [2/16] %v4279_v33, 128 }
 0x677   :  { %v4285_v34 = vpop.f32.mrb[20].mxu1 }
 0x678   :  { %v3824_v28 = vpop.f32.mrb[21].mxu1 }
 0x679   :  { %3885 = vxpose.xlu0.b32.cont [3/16] %v3814_v53, 128 }
 0x67b   :  { %v4288_v61 = vpop.f32.mrb[22].mxu1 }
 0x67c   :  { %v3834_v51 = vpop.f32.mrb[23].mxu1 }
 0x67d   :  { %3886 = vxpose.xlu0.b32.cont [4/16] %v4282_v30, 128 }
 0x67f   :  { %v4291_v4 = vpop.f32.mrb[24].mxu1 }
 0x680   :  { %v3844_v38 = vpop.f32.mrb[25].mxu1 }
 0x681   :  { %3887 = vxpose.xlu0.b32.cont [5/16] %v3824_v28, 128 }
 0x683   :  { %v4294_v57 = vpop.f32.mrb[26].mxu1 }
 0x684   :  { %v3854_v63 = vpop.f32.mrb[27].mxu1 }
 0x685   :  { %3888 = vxpose.xlu0.b32.cont [6/16] %v4285_v34, 128 }
 0x687   :  { %v4297_v0 = vpop.f32.mrb[28].mxu1 }
 0x688   :  { %v3864_v18 = vpop.f32.mrb[29].mxu1 }
 0x689   :  { %3889 = vxpose.xlu0.b32.cont [7/16] %v3834_v51, 128 }
 0x68b   :  { %v4300_v27 = vpop.f32.mrb[30].mxu1 }
 0x68c   :  { %v3874_v16 = vpop.f32.mrb[31].mxu1 }
 0x68d   :  { %3890 = vxpose.xlu0.b32.cont [8/16] %v4288_v61, 128 }
 0x691   :  { %3891 = vxpose.xlu0.b32.cont [9/16] %v3844_v38, 128 }
 0x695   :  { %3892 = vxpose.xlu0.b32.cont [10/16] %v4291_v4, 128 }
 0x699   :  { %3893 = vxpose.xlu0.b32.cont [11/16] %v3854_v63, 128 }
 0x69d   :  { %3894 = vxpose.xlu0.b32.cont [12/16] %v4294_v57, 128 }
 0x6a1   :  { %3895 = vxpose.xlu0.b32.cont [13/16] %v3864_v18, 128 }
 0x6a5   :  { %3896 = vxpose.xlu0.b32.cont [14/16] %v4297_v0, 128 }
 0x6a9   :  { %3897 = vxpose.xlu0.b32.cont [15/16] %v3874_v16, 128 }
 0x6ad   :  { %3898 = vxpose.xlu0.b32.end [16/16] %v4300_v27, 128 }
 0x6f1   :  { %v3899_v31 = vpop.trf.xlu0 }
 0x6f2   :  { %3915 = vst [vmem:[#allocation8] sm:$0xff] %v3899_v31 }
 0x6f5   :  { %v3900_v9 = vpop.trf.xlu0 }
 0x6f6   :  { %3916 = vst [vmem:[#allocation8 + $0x8] sm:$0xff] %v3900_v9 }
 0x6f9   :  { %v3901_v21 = vpop.trf.xlu0 }
 0x6fa   :  { %3917 = vst [vmem:[#allocation8 + $0x10] sm:$0xff] %v3901_v21 }
 0x6fd   :  { %v3902_v20 = vpop.trf.xlu0 }
 0x6fe   :  { %3918 = vst [vmem:[#allocation8 + $0x18] sm:$0xff] %v3902_v20 }
 0x701   :  { %v3903_v19 = vpop.trf.xlu0 }
 0x702   :  { %3919 = vst [vmem:[#allocation8 + $0x20] sm:$0xff] %v3903_v19 }
 0x705   :  { %v3904_v8 = vpop.trf.xlu0 }
 0x706   :  { %3920 = vst [vmem:[#allocation8 + $0x28] sm:$0xff] %v3904_v8 }
 0x709   :  { %v3905_v52 = vpop.trf.xlu0 }
 0x70a   :  { %3921 = vst [vmem:[#allocation8 + $0x30] sm:$0xff] %v3905_v52 }
 0x70d   :  { %v3906_v6 = vpop.trf.xlu0 }
 0x70e   :  { %3922 = vst [vmem:[#allocation8 + $0x38] sm:$0xff] %v3906_v6 }
 0x711   :  { %v3907_v23 = vpop.trf.xlu0 }
 0x712   :  { %3923 = vst [vmem:[#allocation8 + $0x40] sm:$0xff] %v3907_v23 }
 0x715   :  { %v3908_v3 = vpop.trf.xlu0 }
 0x716   :  { %3924 = vst [vmem:[#allocation8 + $0x48] sm:$0xff] %v3908_v3 }
 0x719   :  { %v3909_v40 = vpop.trf.xlu0 }
 0x71a   :  { %3925 = vst [vmem:[#allocation8 + $0x50] sm:$0xff] %v3909_v40 }
 0x71d   :  { %v3910_v55 = vpop.trf.xlu0 }
 0x71e   :  { %3926 = vst [vmem:[#allocation8 + $0x58] sm:$0xff] %v3910_v55 }
 0x721   :  { %v3911_v42 = vpop.trf.xlu0 }
 0x722   :  { %3927 = vst [vmem:[#allocation8 + $0x60] sm:$0xff] %v3911_v42 }
 0x725   :  { %v3912_v49 = vpop.trf.xlu0 }
 0x726   :  { %3928 = vst [vmem:[#allocation8 + $0x68] sm:$0xff] %v3912_v49 }
 0x729   :  { %v3913_v35 = vpop.trf.xlu0 }
 0x72a   :  { %3929 = vst [vmem:[#allocation8 + $0x70] sm:$0xff] %v3913_v35 }
 0x72d   :  { %v3914_v56 = vpop.trf.xlu0 }
 0x72e   :  { %3930 = vst [vmem:[#allocation8 + $0x78] sm:$0xff] %v3914_v56 }
 0x72f   :  { %4781 = shalt.err (!%p4778_p0)
}
 0x730   :  { %s4782_s3 = scalar_lea.hbm %s7198_s5, 2048 }
 0x731   :  { %p4783_p1 = scmp.ne.s32.totalorder %s7198_s5, %s4782_s3  ;;  %p4786_p2 = scmp.lt.u32.totalorder %s4782_s3, %s7198_s5 }
 0x733   :  { %p4788_p3 = pnand %p4786_p2, %p4783_p1 }
 0x735   :  { %4791 = shalt.err (!%p4788_p3)
}
 0x736   :  { %3942 = dma.vmem_to_hbm [thread:$0]  %s3937_s4, 2048, %s7198_s5, [#allocation4], %s4799_s28, %s4799_s28, %s4800_s29  }
 0x737   :  { %4796 = dma.done.wait [#allocation4], 2048  }
 0x738   :  { %4797 = vsyncadd [#allocation4], 4294965248 }
 0x739   :  { %3946 = vsyncpa [#allocation3], 1 }
 0x73a   :  { %3947 = vsyncpa [#allocation6], 1 }
 0x73b   :  { %3948 = vsyncpa [#allocation4], 1 }

</bundles_post_ra>
